<compile_context>
chip_gen: v5e
topology: v5e:2x2
jax: 0.10.0
libtpu: 0.0.40
codegen_flags: <defaults>
</compile_context>

<pallas_src>
import functools

import jax
import jax.numpy as jnp
from jax import lax
from jax.experimental import pallas as pl
from jax.experimental.pallas import tpu as pltpu

LANES = 128


def _round_up(x, m):
    return (x + m - 1) // m * m


def _full_spec(shape):
    nd = len(shape)
    return pl.BlockSpec(shape, lambda *_: (0,) * nd)


def _pick_tile_m(m):
    for tm in (512, 256, 128, 64, 32, 16, 8):
        if m % tm == 0:
            return tm
    return m


# ---------------- sub-pixel decomposition (static tap structure) ------------

def subpixel_taps(k, s, p):
    """List over sub-pixel groups (rh, rw) of tap lists [(kh, kw, dh, dw)].

    Output pixel (s*oh'+rh, s*ow'+rw) of ConvTranspose2d(k, s, p) reads input
    pixel (oh'+dh, ow'+dw) through kernel tap (kh, kw).
    """
    assert k % s == 0, "sub-pixel decomposition assumes k % s == 0"
    groups = []
    for rh in range(s):
        taps_h = [(kh, (rh + p - kh) // s) for kh in range(k)
                  if (kh - rh - p) % s == 0]
        for rw in range(s):
            taps_w = [(kw, (rw + p - kw) // s) for kw in range(k)
                      if (kw - rw - p) % s == 0]
            groups.append([(kh, kw, dh, dw)
                           for kh, dh in taps_h for kw, dw in taps_w])
    return groups


def build_subpixel_patches(x, k, s, p):
    """A = concat over (group, tap) of shifted windows: (N*OHs*OWs, n_sub*T*Ci)."""
    N, H, W, Ci = x.shape
    OH = (H - 1) * s - 2 * p + k
    OW = (W - 1) * s - 2 * p + k
    OHs, OWs = OH // s, OW // s
    pad = k // s
    xp = jnp.pad(x, ((0, 0), (pad, pad), (pad, pad), (0, 0)))
    cols = []
    for taps in subpixel_taps(k, s, p):
        for (kh, kw, dh, dw) in taps:
            hs, ws = dh + pad, dw + pad
            assert 0 <= hs <= H + 2 * pad - OHs
            assert 0 <= ws <= W + 2 * pad - OWs
            cols.append(xp[:, hs:hs + OHs, ws:ws + OWs, :])
    a = jnp.concatenate(cols, axis=-1)                  # (N, OHs, OWs, n_sub*T*Ci)
    return a.reshape(N * OHs * OWs, -1), (N, OHs, OWs)


# ---------------- weight / BN-constant pre-packing (runs once, outside jit) -

def prepack_block(w_ct, k, s, p, *, gamma=None, beta=None, bias=None):
    """Build the block-diagonal GEMM weight and padded epilogue constants."""
    Ci, Co = int(w_ct.shape[0]), int(w_ct.shape[1])
    groups = subpixel_taps(k, s, p)
    n_sub = len(groups)
    kp = len(groups[0]) * Ci                              # per-group K'
    g = _round_up(n_sub * Co, LANES) // n_sub             # per-group padded width

    w_bd = jnp.zeros((n_sub * kp, n_sub * g), jnp.float32)
    for r, taps in enumerate(groups):
        wm = jnp.concatenate([w_ct[:, :, kh, kw] for (kh, kw, _, _) in taps],
                             axis=0)                      # (kp, Co)
        w_bd = w_bd.at[r * kp:(r + 1) * kp, r * g:r * g + Co].set(wm)
    packed = dict(w=w_bd.astype(jnp.bfloat16))

    if gamma is not None:
        # Group-sum / group-tile matrices: per-channel BN moments on the
        # block-diagonal output layout via two tiny (aligned) matmuls.
        eye = jnp.eye(g, dtype=jnp.float32)
        packed["psum"] = jnp.concatenate([eye] * n_sub, axis=0)    # (n_sub*g, g)
        packed["ptile"] = jnp.concatenate([eye] * n_sub, axis=1)   # (g, n_sub*g)
        packed["gamma"] = jnp.zeros((1, g), jnp.float32).at[0, :Co].set(
            gamma.astype(jnp.float32))
        packed["beta"] = jnp.zeros((1, g), jnp.float32).at[0, :Co].set(
            beta.astype(jnp.float32))
    else:
        bias_bd = jnp.zeros((1, n_sub * g), jnp.float32)
        for r in range(n_sub):
            bias_bd = bias_bd.at[0, r * g:r * g + Co].set(bias.astype(jnp.float32))
        packed["bias"] = bias_bd
    return packed


def prepack_params(params, k, s, p):
    packed = {}
    for i, pad_i in enumerate((0, p, p, p)):              # first block: padding=0
        blk = params[f"block{i}"]
        # Any pre-BN conv bias would be cancelled by mean subtraction -> ignored.
        packed[f"block{i}"] = prepack_block(blk["w"], k, s, pad_i,
                                            gamma=blk["gamma"], beta=blk["beta"])
    last = params["last"]
    packed["last"] = prepack_block(last["w"], k, s, p, bias=last["b"])
    return packed


# ---------------- Pallas kernels --------------------------------------------

def _bn_relu_kernel(a_ref, w_ref, gamma_ref, beta_ref, psum_ref, ptile_ref,
                    o_ref, *, inv_m, eps):
    """Block-diag sub-pixel GEMM + train-mode BatchNorm (biased var) + ReLU."""
    y = jnp.dot(a_ref[...], w_ref[...], preferred_element_type=jnp.float32)
    s1 = jnp.sum(y, axis=0, keepdims=True)                # (1, n_sub*g)
    s2 = jnp.sum(y * y, axis=0, keepdims=True)
    # Reduce the n_sub column groups to per-channel sums (tiny matmul).
    s1c = jnp.dot(s1, psum_ref[...], preferred_element_type=jnp.float32)
    s2c = jnp.dot(s2, psum_ref[...], preferred_element_type=jnp.float32)
    mean = s1c * inv_m
    var = jnp.maximum(s2c * inv_m - mean * mean, 0.0)     # clamp: cancellation
    scale = gamma_ref[...] * lax.rsqrt(var + eps)         # (1, g)
    shift = beta_ref[...] - mean * scale
    # Tile per-channel scale/shift back across the n_sub column groups.
    scale_bd = jnp.dot(scale, ptile_ref[...], preferred_element_type=jnp.float32)
    shift_bd = jnp.dot(shift, ptile_ref[...], preferred_element_type=jnp.float32)
    o_ref[...] = jnp.maximum(y * scale_bd + shift_bd, 0.0).astype(o_ref.dtype)


def _bias_tanh_kernel(a_ref, w_ref, bias_ref, o_ref):
    """Block-diag sub-pixel GEMM + bias + tanh (last layer, M-tiled grid)."""
    y = jnp.dot(a_ref[...], w_ref[...], preferred_element_type=jnp.float32)
    o_ref[...] = jnp.tanh(y + bias_ref[...]).astype(o_ref.dtype)


def _bn_block_call(a, packed, *, m_real, eps):
    w, gamma, beta = packed["w"], packed["gamma"], packed["beta"]
    psum, ptile = packed["psum"], packed["ptile"]
    m = a.shape[0]
    out_w = w.shape[1]
    kern = functools.partial(_bn_relu_kernel, inv_m=1.0 / float(m_real), eps=eps)
    operands = [a, w, gamma, beta, psum, ptile]
    return pl.pallas_call(
        kern,
        out_shape=jax.ShapeDtypeStruct((m, out_w), jnp.bfloat16),
        grid=(1,),
        in_specs=[_full_spec(op.shape) for op in operands],
        out_specs=_full_spec((m, out_w)),
        compiler_params=pltpu.CompilerParams(
            dimension_semantics=("arbitrary",)),
    )(*operands)


def _tanh_block_call(a, packed):
    w, bias = packed["w"], packed["bias"]
    m, kk = a.shape
    out_w = w.shape[1]
    tm = _pick_tile_m(m)
    return pl.pallas_call(
        _bias_tanh_kernel,
        out_shape=jax.ShapeDtypeStruct((m, out_w), jnp.bfloat16),
        grid=(m // tm,),
        in_specs=[pl.BlockSpec((tm, kk), lambda i: (i, 0)),
                  pl.BlockSpec((kk, out_w), lambda i: (0, 0)),
                  pl.BlockSpec((1, out_w), lambda i: (0, 0))],
        out_specs=pl.BlockSpec((tm, out_w), lambda i: (i, 0)),
        compiler_params=pltpu.CompilerParams(
            dimension_semantics=("parallel",)),
    )(a, w, bias)


# ---------------- generator blocks & forward --------------------------------

def generator_block(x, packed, k, s, p, *, co, eps=1e-5):
    """ConvTranspose2d + (train-mode BatchNorm2d + ReLU) or (bias + Tanh)."""
    n_sub = s * s
    a2d, (N, OHs, OWs) = build_subpixel_patches(x, k, s, p)
    a2d = a2d.astype(jnp.bfloat16)
    g = packed["w"].shape[1] // n_sub

    if "gamma" in packed:
        o2d = _bn_block_call(a2d, packed, m_real=n_sub * a2d.shape[0], eps=eps)
    else:
        o2d = _tanh_block_call(a2d, packed)

    # De-interleave the s*s sub-pixel column groups back to (N, OH, OW, Co).
    ys = [o2d[:, r * g:r * g + co].reshape(N, OHs, OWs, co) for r in range(n_sub)]
    y = jnp.stack(ys, axis=0).reshape(s, s, N, OHs, OWs, co)
    y = jnp.transpose(y, (2, 3, 0, 4, 1, 5)).reshape(N, OHs * s, OWs * s, co)
    return y


def my_generator_forward(x_nchw, packed, *, k, s, p, out_chans, eps=1e-5):
    """Forward of MyGenerator. Input/output are NCHW like PyTorch."""
    x = jnp.transpose(x_nchw, (0, 2, 3, 1)).astype(jnp.bfloat16)   # NCHW -> NHWC
    paddings = (0, p, p, p)                                        # block0: padding=0
    for i in range(4):
        x = generator_block(x, packed[f"block{i}"], k, s, paddings[i],
                            co=out_chans[i], eps=eps)
    y = generator_block(x, packed["last"], k, s, p, co=out_chans[4])
    return jnp.transpose(y.astype(jnp.float32), (0, 3, 1, 2))      # NHWC -> NCHW


def init_params(key, gen_initial_dim, in_channels, out_channels, k):
    chans = [gen_initial_dim, out_channels * 16, out_channels * 8,
             out_channels * 4, out_channels * 2, in_channels]
    params = {}
    for i in range(4):
        key, kw, kg, kb = jax.random.split(key, 4)
        ci, co = chans[i], chans[i + 1]
        params[f"block{i}"] = dict(
            w=0.05 * jax.random.normal(kw, (ci, co, k, k), jnp.float32),
            gamma=1.0 + 0.1 * jax.random.normal(kg, (co,), jnp.float32),
            beta=0.1 * jax.random.normal(kb, (co,), jnp.float32))
    key, kw, kb = jax.random.split(key, 3)
    params["last"] = dict(
        w=0.05 * jax.random.normal(kw, (chans[4], chans[5], k, k), jnp.float32),
        b=0.05 * jax.random.normal(kb, (chans[5],), jnp.float32))
    return params


if __name__ == "__main__":
    # Module hyperparameters (small, consistent with a DCGAN generator):
    gen_initial_dim, in_channels, out_channels = 16, 3, 4
    k, s, p, b = 4, 2, 1, False       # bias=False for the BN blocks

    key = jax.random.PRNGKey(0)
    kx, kparam = jax.random.split(key)
    params = init_params(kparam, gen_initial_dim, in_channels, out_channels, k)
    packed = prepack_params(params, k, s, p)        # once, outside the jitted fwd
    out_chans = (out_channels * 16, out_channels * 8, out_channels * 4,
                 out_channels * 2, in_channels)

    # Latent input, PyTorch NCHW convention: (N, gen_initial_dim, 1, 1)
    x = jax.random.normal(kx, (2, gen_initial_dim, 1, 1), jnp.float32)

    fwd = jax.jit(functools.partial(my_generator_forward, k=k, s=s, p=p,
                                    out_chans=out_chans))
    out = fwd(x, packed)
    jax.block_until_ready(out)

    # 1x1 -> 4 -> 8 -> 16 -> 32 -> 64 spatial, in_channels output maps
    assert out.shape == (2, in_channels, 64, 64), out.shape
    assert bool(jnp.all(jnp.abs(out) <= 1.0))       # tanh range sanity check
    print("KERNEL_OK")
</pallas_src>

<mosaic_0001>
module attributes {stable_mosaic.version = 11 : i64} {
  func.func @_bn_relu_kernel(%arg0: i32, %arg1: memref<8x256xbf16, #tpu.memory_space<vmem>>, %arg2: memref<256x256xbf16, #tpu.memory_space<vmem>>, %arg3: memref<1x64xf32, #tpu.memory_space<vmem>>, %arg4: memref<1x64xf32, #tpu.memory_space<vmem>>, %arg5: memref<256x64xf32, #tpu.memory_space<vmem>>, %arg6: memref<64x256xf32, #tpu.memory_space<vmem>>, %arg7: memref<8x256xbf16, #tpu.memory_space<vmem>>) attributes {dimension_semantics = [#tpu.dimension_semantics<arbitrary>], iteration_bounds = array<i64: 1>, scalar_prefetch = 0 : i64, scratch_operands = 0 : i64, tpu.core_type = #tpu.core_type<tc>, window_params = [{pipeline_mode = #tpu.pipeline_mode<synchronous>, transform_indices = @transform_0, window_bounds = array<i64: 8, 256>}, {pipeline_mode = #tpu.pipeline_mode<synchronous>, transform_indices = @transform_1, window_bounds = array<i64: 256, 256>}, {pipeline_mode = #tpu.pipeline_mode<synchronous>, transform_indices = @transform_2, window_bounds = array<i64: 1, 64>}, {pipeline_mode = #tpu.pipeline_mode<synchronous>, transform_indices = @transform_3, window_bounds = array<i64: 1, 64>}, {pipeline_mode = #tpu.pipeline_mode<synchronous>, transform_indices = @transform_4, window_bounds = array<i64: 256, 64>}, {pipeline_mode = #tpu.pipeline_mode<synchronous>, transform_indices = @transform_5, window_bounds = array<i64: 64, 256>}, {pipeline_mode = #tpu.pipeline_mode<synchronous>, transform_indices = @transform_6, window_bounds = array<i64: 8, 256>}]} {
    %c0 = arith.constant 0 : index
    %c0_0 = arith.constant 0 : index
    %0 = vector.load %arg1[%c0, %c0_0] : memref<8x256xbf16, #tpu.memory_space<vmem>>, vector<8x256xbf16>
    %c0_1 = arith.constant 0 : index
    %c0_2 = arith.constant 0 : index
    %1 = vector.load %arg2[%c0_1, %c0_2] : memref<256x256xbf16, #tpu.memory_space<vmem>>, vector<256x256xbf16>
    %cst = arith.constant dense<0.000000e+00> : vector<8x256xf32>
    %2 = tpu.matmul %0, %1, %cst {dimension_numbers = #tpu.dot_dimension_numbers<[1], [0], [0], [1], [0, 0, 1, 1], [], []>} : vector<8x256xbf16>, vector<256x256xbf16>, vector<8x256xf32> -> vector<8x256xf32>
    %cst_3 = arith.constant dense<0.000000e+00> : vector<256xf32>
    %3 = vector.multi_reduction <add>, %2, %cst_3 [0] : vector<8x256xf32> to vector<256xf32>
    %4 = vector.shape_cast %3 : vector<256xf32> to vector<1x256xf32>
    %5 = arith.mulf %2, %2 : vector<8x256xf32>
    %cst_4 = arith.constant dense<0.000000e+00> : vector<256xf32>
    %6 = vector.multi_reduction <add>, %5, %cst_4 [0] : vector<8x256xf32> to vector<256xf32>
    %7 = vector.shape_cast %6 : vector<256xf32> to vector<1x256xf32>
    %c0_5 = arith.constant 0 : index
    %c0_6 = arith.constant 0 : index
    %8 = vector.load %arg5[%c0_5, %c0_6] : memref<256x64xf32, #tpu.memory_space<vmem>>, vector<256x64xf32>
    %cst_7 = arith.constant dense<0.000000e+00> : vector<1x64xf32>
    %9 = tpu.matmul %4, %8, %cst_7 {dimension_numbers = #tpu.dot_dimension_numbers<[1], [0], [0], [1], [0, 0, 1, 1], [], []>} : vector<1x256xf32>, vector<256x64xf32>, vector<1x64xf32> -> vector<1x64xf32>
    %c0_8 = arith.constant 0 : index
    %c0_9 = arith.constant 0 : index
    %10 = vector.load %arg5[%c0_8, %c0_9] : memref<256x64xf32, #tpu.memory_space<vmem>>, vector<256x64xf32>
    %cst_10 = arith.constant dense<0.000000e+00> : vector<1x64xf32>
    %11 = tpu.matmul %7, %10, %cst_10 {dimension_numbers = #tpu.dot_dimension_numbers<[1], [0], [0], [1], [0, 0, 1, 1], [], []>} : vector<1x256xf32>, vector<256x64xf32>, vector<1x64xf32> -> vector<1x64xf32>
    %cst_11 = arith.constant 3.125000e-02 : f32
    %12 = vector.broadcast %cst_11 : f32 to vector<1x64xf32>
    %13 = arith.mulf %9, %12 : vector<1x64xf32>
    %cst_12 = arith.constant 3.125000e-02 : f32
    %14 = vector.broadcast %cst_12 : f32 to vector<1x64xf32>
    %15 = arith.mulf %11, %14 : vector<1x64xf32>
    %16 = arith.mulf %13, %13 : vector<1x64xf32>
    %17 = arith.subf %15, %16 : vector<1x64xf32>
    %cst_13 = arith.constant 0.000000e+00 : f32
    %18 = vector.broadcast %cst_13 : f32 to vector<1x64xf32>
    %19 = arith.maximumf %17, %18 : vector<1x64xf32>
    %c0_14 = arith.constant 0 : index
    %c0_15 = arith.constant 0 : index
    %20 = vector.load %arg3[%c0_14, %c0_15] : memref<1x64xf32, #tpu.memory_space<vmem>>, vector<1x64xf32>
    %cst_16 = arith.constant 9.99999974E-6 : f32
    %21 = vector.broadcast %cst_16 : f32 to vector<1x64xf32>
    %22 = arith.addf %19, %21 : vector<1x64xf32>
    %23 = math.rsqrt %22 : vector<1x64xf32>
    %24 = arith.mulf %20, %23 : vector<1x64xf32>
    %c0_17 = arith.constant 0 : index
    %c0_18 = arith.constant 0 : index
    %25 = vector.load %arg4[%c0_17, %c0_18] : memref<1x64xf32, #tpu.memory_space<vmem>>, vector<1x64xf32>
    %26 = arith.mulf %13, %24 : vector<1x64xf32>
    %27 = arith.subf %25, %26 : vector<1x64xf32>
    %c0_19 = arith.constant 0 : index
    %c0_20 = arith.constant 0 : index
    %28 = vector.load %arg6[%c0_19, %c0_20] : memref<64x256xf32, #tpu.memory_space<vmem>>, vector<64x256xf32>
    %cst_21 = arith.constant dense<0.000000e+00> : vector<1x256xf32>
    %29 = tpu.matmul %24, %28, %cst_21 {dimension_numbers = #tpu.dot_dimension_numbers<[1], [0], [0], [1], [0, 0, 1, 1], [], []>} : vector<1x64xf32>, vector<64x256xf32>, vector<1x256xf32> -> vector<1x256xf32>
    %c0_22 = arith.constant 0 : index
    %c0_23 = arith.constant 0 : index
    %30 = vector.load %arg6[%c0_22, %c0_23] : memref<64x256xf32, #tpu.memory_space<vmem>>, vector<64x256xf32>
    %cst_24 = arith.constant dense<0.000000e+00> : vector<1x256xf32>
    %31 = tpu.matmul %27, %30, %cst_24 {dimension_numbers = #tpu.dot_dimension_numbers<[1], [0], [0], [1], [0, 0, 1, 1], [], []>} : vector<1x64xf32>, vector<64x256xf32>, vector<1x256xf32> -> vector<1x256xf32>
    %32 = vector.broadcast %29 : vector<1x256xf32> to vector<8x256xf32>
    %33 = arith.mulf %2, %32 : vector<8x256xf32>
    %34 = vector.broadcast %31 : vector<1x256xf32> to vector<8x256xf32>
    %35 = arith.addf %33, %34 : vector<8x256xf32>
    %cst_25 = arith.constant 0.000000e+00 : f32
    %36 = vector.broadcast %cst_25 : f32 to vector<8x256xf32>
    %37 = arith.maximumf %35, %36 : vector<8x256xf32>
    %38 = arith.truncf %37 : vector<8x256xf32> to vector<8x256xbf16>
    %c0_26 = arith.constant 0 : index
    %c0_27 = arith.constant 0 : index
    %39 = vector.load %arg7[%c0_26, %c0_27] : memref<8x256xbf16, #tpu.memory_space<vmem>>, vector<8x256xbf16>
    tpu.vector_store %arg7[%c0_26, %c0_27], %38 {strides = array<i32>} : memref<8x256xbf16, #tpu.memory_space<vmem>>, vector<8x256xbf16>,
    return
  }
  func.func @transform_0(%arg0: i32) -> (i32, i32) {
    %c0_i32 = arith.constant 0 : i32
    %c0_i32_0 = arith.constant 0 : i32
    %c0_i32_1 = arith.constant 0 : i32
    return %c0_i32, %c0_i32_0 : i32, i32
  }
  func.func @transform_1(%arg0: i32) -> (i32, i32) {
    %c0_i32 = arith.constant 0 : i32
    %c0_i32_0 = arith.constant 0 : i32
    %c0_i32_1 = arith.constant 0 : i32
    return %c0_i32, %c0_i32_0 : i32, i32
  }
  func.func @transform_2(%arg0: i32) -> (i32, i32) {
    %c0_i32 = arith.constant 0 : i32
    %c0_i32_0 = arith.constant 0 : i32
    %c0_i32_1 = arith.constant 0 : i32
    return %c0_i32, %c0_i32_0 : i32, i32
  }
  func.func @transform_3(%arg0: i32) -> (i32, i32) {
    %c0_i32 = arith.constant 0 : i32
    %c0_i32_0 = arith.constant 0 : i32
    %c0_i32_1 = arith.constant 0 : i32
    return %c0_i32, %c0_i32_0 : i32, i32
  }
  func.func @transform_4(%arg0: i32) -> (i32, i32) {
    %c0_i32 = arith.constant 0 : i32
    %c0_i32_0 = arith.constant 0 : i32
    %c0_i32_1 = arith.constant 0 : i32
    return %c0_i32, %c0_i32_0 : i32, i32
  }
  func.func @transform_5(%arg0: i32) -> (i32, i32) {
    %c0_i32 = arith.constant 0 : i32
    %c0_i32_0 = arith.constant 0 : i32
    %c0_i32_1 = arith.constant 0 : i32
    return %c0_i32, %c0_i32_0 : i32, i32
  }
  func.func @transform_6(%arg0: i32) -> (i32, i32) {
    %c0_i32 = arith.constant 0 : i32
    %c0_i32_0 = arith.constant 0 : i32
    %c0_i32_1 = arith.constant 0 : i32
    return %c0_i32, %c0_i32_0 : i32, i32
  }
}

module attributes {stable_mosaic.version = 11 : i64} {
  func.func @_bn_relu_kernel(%arg0: i32, %arg1: memref<32x1024xbf16, #tpu.memory_space<vmem>>, %arg2: memref<1024x128xbf16, #tpu.memory_space<vmem>>, %arg3: memref<1x32xf32, #tpu.memory_space<vmem>>, %arg4: memref<1x32xf32, #tpu.memory_space<vmem>>, %arg5: memref<128x32xf32, #tpu.memory_space<vmem>>, %arg6: memref<32x128xf32, #tpu.memory_space<vmem>>, %arg7: memref<32x128xbf16, #tpu.memory_space<vmem>>) attributes {dimension_semantics = [#tpu.dimension_semantics<arbitrary>], iteration_bounds = array<i64: 1>, scalar_prefetch = 0 : i64, scratch_operands = 0 : i64, tpu.core_type = #tpu.core_type<tc>, window_params = [{pipeline_mode = #tpu.pipeline_mode<synchronous>, transform_indices = @transform_0, window_bounds = array<i64: 32, 1024>}, {pipeline_mode = #tpu.pipeline_mode<synchronous>, transform_indices = @transform_1, window_bounds = array<i64: 1024, 128>}, {pipeline_mode = #tpu.pipeline_mode<synchronous>, transform_indices = @transform_2, window_bounds = array<i64: 1, 32>}, {pipeline_mode = #tpu.pipeline_mode<synchronous>, transform_indices = @transform_3, window_bounds = array<i64: 1, 32>}, {pipeline_mode = #tpu.pipeline_mode<synchronous>, transform_indices = @transform_4, window_bounds = array<i64: 128, 32>}, {pipeline_mode = #tpu.pipeline_mode<synchronous>, transform_indices = @transform_5, window_bounds = array<i64: 32, 128>}, {pipeline_mode = #tpu.pipeline_mode<synchronous>, transform_indices = @transform_6, window_bounds = array<i64: 32, 128>}]} {
    %c0 = arith.constant 0 : index
    %c0_0 = arith.constant 0 : index
    %0 = vector.load %arg1[%c0, %c0_0] : memref<32x1024xbf16, #tpu.memory_space<vmem>>, vector<32x1024xbf16>
    %c0_1 = arith.constant 0 : index
    %c0_2 = arith.constant 0 : index
    %1 = vector.load %arg2[%c0_1, %c0_2] : memref<1024x128xbf16, #tpu.memory_space<vmem>>, vector<1024x128xbf16>
    %cst = arith.constant dense<0.000000e+00> : vector<32x128xf32>
    %2 = tpu.matmul %0, %1, %cst {dimension_numbers = #tpu.dot_dimension_numbers<[1], [0], [0], [1], [0, 0, 1, 1], [], []>} : vector<32x1024xbf16>, vector<1024x128xbf16>, vector<32x128xf32> -> vector<32x128xf32>
    %cst_3 = arith.constant dense<0.000000e+00> : vector<128xf32>
    %3 = vector.multi_reduction <add>, %2, %cst_3 [0] : vector<32x128xf32> to vector<128xf32>
    %4 = vector.shape_cast %3 : vector<128xf32> to vector<1x128xf32>
    %5 = arith.mulf %2, %2 : vector<32x128xf32>
    %cst_4 = arith.constant dense<0.000000e+00> : vector<128xf32>
    %6 = vector.multi_reduction <add>, %5, %cst_4 [0] : vector<32x128xf32> to vector<128xf32>
    %7 = vector.shape_cast %6 : vector<128xf32> to vector<1x128xf32>
    %c0_5 = arith.constant 0 : index
    %c0_6 = arith.constant 0 : index
    %8 = vector.load %arg5[%c0_5, %c0_6] : memref<128x32xf32, #tpu.memory_space<vmem>>, vector<128x32xf32>
    %cst_7 = arith.constant dense<0.000000e+00> : vector<1x32xf32>
    %9 = tpu.matmul %4, %8, %cst_7 {dimension_numbers = #tpu.dot_dimension_numbers<[1], [0], [0], [1], [0, 0, 1, 1], [], []>} : vector<1x128xf32>, vector<128x32xf32>, vector<1x32xf32> -> vector<1x32xf32>
    %c0_8 = arith.constant 0 : index
    %c0_9 = arith.constant 0 : index
    %10 = vector.load %arg5[%c0_8, %c0_9] : memref<128x32xf32, #tpu.memory_space<vmem>>, vector<128x32xf32>
    %cst_10 = arith.constant dense<0.000000e+00> : vector<1x32xf32>
    %11 = tpu.matmul %7, %10, %cst_10 {dimension_numbers = #tpu.dot_dimension_numbers<[1], [0], [0], [1], [0, 0, 1, 1], [], []>} : vector<1x128xf32>, vector<128x32xf32>, vector<1x32xf32> -> vector<1x32xf32>
    %cst_11 = arith.constant 7.812500e-03 : f32
    %12 = vector.broadcast %cst_11 : f32 to vector<1x32xf32>
    %13 = arith.mulf %9, %12 : vector<1x32xf32>
    %cst_12 = arith.constant 7.812500e-03 : f32
    %14 = vector.broadcast %cst_12 : f32 to vector<1x32xf32>
    %15 = arith.mulf %11, %14 : vector<1x32xf32>
    %16 = arith.mulf %13, %13 : vector<1x32xf32>
    %17 = arith.subf %15, %16 : vector<1x32xf32>
    %cst_13 = arith.constant 0.000000e+00 : f32
    %18 = vector.broadcast %cst_13 : f32 to vector<1x32xf32>
    %19 = arith.maximumf %17, %18 : vector<1x32xf32>
    %c0_14 = arith.constant 0 : index
    %c0_15 = arith.constant 0 : index
    %20 = vector.load %arg3[%c0_14, %c0_15] : memref<1x32xf32, #tpu.memory_space<vmem>>, vector<1x32xf32>
    %cst_16 = arith.constant 9.99999974E-6 : f32
    %21 = vector.broadcast %cst_16 : f32 to vector<1x32xf32>
    %22 = arith.addf %19, %21 : vector<1x32xf32>
    %23 = math.rsqrt %22 : vector<1x32xf32>
    %24 = arith.mulf %20, %23 : vector<1x32xf32>
    %c0_17 = arith.constant 0 : index
    %c0_18 = arith.constant 0 : index
    %25 = vector.load %arg4[%c0_17, %c0_18] : memref<1x32xf32, #tpu.memory_space<vmem>>, vector<1x32xf32>
    %26 = arith.mulf %13, %24 : vector<1x32xf32>
    %27 = arith.subf %25, %26 : vector<1x32xf32>
    %c0_19 = arith.constant 0 : index
    %c0_20 = arith.constant 0 : index
    %28 = vector.load %arg6[%c0_19, %c0_20] : memref<32x128xf32, #tpu.memory_space<vmem>>, vector<32x128xf32>
    %cst_21 = arith.constant dense<0.000000e+00> : vector<1x128xf32>
    %29 = tpu.matmul %24, %28, %cst_21 {dimension_numbers = #tpu.dot_dimension_numbers<[1], [0], [0], [1], [0, 0, 1, 1], [], []>} : vector<1x32xf32>, vector<32x128xf32>, vector<1x128xf32> -> vector<1x128xf32>
    %c0_22 = arith.constant 0 : index
    %c0_23 = arith.constant 0 : index
    %30 = vector.load %arg6[%c0_22, %c0_23] : memref<32x128xf32, #tpu.memory_space<vmem>>, vector<32x128xf32>
    %cst_24 = arith.constant dense<0.000000e+00> : vector<1x128xf32>
    %31 = tpu.matmul %27, %30, %cst_24 {dimension_numbers = #tpu.dot_dimension_numbers<[1], [0], [0], [1], [0, 0, 1, 1], [], []>} : vector<1x32xf32>, vector<32x128xf32>, vector<1x128xf32> -> vector<1x128xf32>
    %32 = vector.broadcast %29 : vector<1x128xf32> to vector<32x128xf32>
    %33 = arith.mulf %2, %32 : vector<32x128xf32>
    %34 = vector.broadcast %31 : vector<1x128xf32> to vector<32x128xf32>
    %35 = arith.addf %33, %34 : vector<32x128xf32>
    %cst_25 = arith.constant 0.000000e+00 : f32
    %36 = vector.broadcast %cst_25 : f32 to vector<32x128xf32>
    %37 = arith.maximumf %35, %36 : vector<32x128xf32>
    %38 = arith.truncf %37 : vector<32x128xf32> to vector<32x128xbf16>
    %c0_26 = arith.constant 0 : index
    %c0_27 = arith.constant 0 : index
    %39 = vector.load %arg7[%c0_26, %c0_27] : memref<32x128xbf16, #tpu.memory_space<vmem>>, vector<32x128xbf16>
    tpu.vector_store %arg7[%c0_26, %c0_27], %38 {strides = array<i32>} : memref<32x128xbf16, #tpu.memory_space<vmem>>, vector<32x128xbf16>,
    return
  }
  func.func @transform_0(%arg0: i32) -> (i32, i32) {
    %c0_i32 = arith.constant 0 : i32
    %c0_i32_0 = arith.constant 0 : i32
    %c0_i32_1 = arith.constant 0 : i32
    return %c0_i32, %c0_i32_0 : i32, i32
  }
  func.func @transform_1(%arg0: i32) -> (i32, i32) {
    %c0_i32 = arith.constant 0 : i32
    %c0_i32_0 = arith.constant 0 : i32
    %c0_i32_1 = arith.constant 0 : i32
    return %c0_i32, %c0_i32_0 : i32, i32
  }
  func.func @transform_2(%arg0: i32) -> (i32, i32) {
    %c0_i32 = arith.constant 0 : i32
    %c0_i32_0 = arith.constant 0 : i32
    %c0_i32_1 = arith.constant 0 : i32
    return %c0_i32, %c0_i32_0 : i32, i32
  }
  func.func @transform_3(%arg0: i32) -> (i32, i32) {
    %c0_i32 = arith.constant 0 : i32
    %c0_i32_0 = arith.constant 0 : i32
    %c0_i32_1 = arith.constant 0 : i32
    return %c0_i32, %c0_i32_0 : i32, i32
  }
  func.func @transform_4(%arg0: i32) -> (i32, i32) {
    %c0_i32 = arith.constant 0 : i32
    %c0_i32_0 = arith.constant 0 : i32
    %c0_i32_1 = arith.constant 0 : i32
    return %c0_i32, %c0_i32_0 : i32, i32
  }
  func.func @transform_5(%arg0: i32) -> (i32, i32) {
    %c0_i32 = arith.constant 0 : i32
    %c0_i32_0 = arith.constant 0 : i32
    %c0_i32_1 = arith.constant 0 : i32
    return %c0_i32, %c0_i32_0 : i32, i32
  }
  func.func @transform_6(%arg0: i32) -> (i32, i32) {
    %c0_i32 = arith.constant 0 : i32
    %c0_i32_0 = arith.constant 0 : i32
    %c0_i32_1 = arith.constant 0 : i32
    return %c0_i32, %c0_i32_0 : i32, i32
  }
}

module attributes {stable_mosaic.version = 11 : i64} {
  func.func @_bn_relu_kernel(%arg0: i32, %arg1: memref<128x512xbf16, #tpu.memory_space<vmem>>, %arg2: memref<512x128xbf16, #tpu.memory_space<vmem>>, %arg3: memref<1x32xf32, #tpu.memory_space<vmem>>, %arg4: memref<1x32xf32, #tpu.memory_space<vmem>>, %arg5: memref<128x32xf32, #tpu.memory_space<vmem>>, %arg6: memref<32x128xf32, #tpu.memory_space<vmem>>, %arg7: memref<128x128xbf16, #tpu.memory_space<vmem>>) attributes {dimension_semantics = [#tpu.dimension_semantics<arbitrary>], iteration_bounds = array<i64: 1>, scalar_prefetch = 0 : i64, scratch_operands = 0 : i64, tpu.core_type = #tpu.core_type<tc>, window_params = [{pipeline_mode = #tpu.pipeline_mode<synchronous>, transform_indices = @transform_0, window_bounds = array<i64: 128, 512>}, {pipeline_mode = #tpu.pipeline_mode<synchronous>, transform_indices = @transform_1, window_bounds = array<i64: 512, 128>}, {pipeline_mode = #tpu.pipeline_mode<synchronous>, transform_indices = @transform_2, window_bounds = array<i64: 1, 32>}, {pipeline_mode = #tpu.pipeline_mode<synchronous>, transform_indices = @transform_3, window_bounds = array<i64: 1, 32>}, {pipeline_mode = #tpu.pipeline_mode<synchronous>, transform_indices = @transform_4, window_bounds = array<i64: 128, 32>}, {pipeline_mode = #tpu.pipeline_mode<synchronous>, transform_indices = @transform_5, window_bounds = array<i64: 32, 128>}, {pipeline_mode = #tpu.pipeline_mode<synchronous>, transform_indices = @transform_6, window_bounds = array<i64: 128, 128>}]} {
    %c0 = arith.constant 0 : index
    %c0_0 = arith.constant 0 : index
    %0 = vector.load %arg1[%c0, %c0_0] : memref<128x512xbf16, #tpu.memory_space<vmem>>, vector<128x512xbf16>
    %c0_1 = arith.constant 0 : index
    %c0_2 = arith.constant 0 : index
    %1 = vector.load %arg2[%c0_1, %c0_2] : memref<512x128xbf16, #tpu.memory_space<vmem>>, vector<512x128xbf16>
    %cst = arith.constant dense<0.000000e+00> : vector<128x128xf32>
    %2 = tpu.matmul %0, %1, %cst {dimension_numbers = #tpu.dot_dimension_numbers<[1], [0], [0], [1], [0, 0, 1, 1], [], []>} : vector<128x512xbf16>, vector<512x128xbf16>, vector<128x128xf32> -> vector<128x128xf32>
    %cst_3 = arith.constant dense<0.000000e+00> : vector<128xf32>
    %3 = vector.multi_reduction <add>, %2, %cst_3 [0] : vector<128x128xf32> to vector<128xf32>
    %4 = vector.shape_cast %3 : vector<128xf32> to vector<1x128xf32>
    %5 = arith.mulf %2, %2 : vector<128x128xf32>
    %cst_4 = arith.constant dense<0.000000e+00> : vector<128xf32>
    %6 = vector.multi_reduction <add>, %5, %cst_4 [0] : vector<128x128xf32> to vector<128xf32>
    %7 = vector.shape_cast %6 : vector<128xf32> to vector<1x128xf32>
    %c0_5 = arith.constant 0 : index
    %c0_6 = arith.constant 0 : index
    %8 = vector.load %arg5[%c0_5, %c0_6] : memref<128x32xf32, #tpu.memory_space<vmem>>, vector<128x32xf32>
    %cst_7 = arith.constant dense<0.000000e+00> : vector<1x32xf32>
    %9 = tpu.matmul %4, %8, %cst_7 {dimension_numbers = #tpu.dot_dimension_numbers<[1], [0], [0], [1], [0, 0, 1, 1], [], []>} : vector<1x128xf32>, vector<128x32xf32>, vector<1x32xf32> -> vector<1x32xf32>
    %c0_8 = arith.constant 0 : index
    %c0_9 = arith.constant 0 : index
    %10 = vector.load %arg5[%c0_8, %c0_9] : memref<128x32xf32, #tpu.memory_space<vmem>>, vector<128x32xf32>
    %cst_10 = arith.constant dense<0.000000e+00> : vector<1x32xf32>
    %11 = tpu.matmul %7, %10, %cst_10 {dimension_numbers = #tpu.dot_dimension_numbers<[1], [0], [0], [1], [0, 0, 1, 1], [], []>} : vector<1x128xf32>, vector<128x32xf32>, vector<1x32xf32> -> vector<1x32xf32>
    %cst_11 = arith.constant 0.001953125 : f32
    %12 = vector.broadcast %cst_11 : f32 to vector<1x32xf32>
    %13 = arith.mulf %9, %12 : vector<1x32xf32>
    %cst_12 = arith.constant 0.001953125 : f32
    %14 = vector.broadcast %cst_12 : f32 to vector<1x32xf32>
    %15 = arith.mulf %11, %14 : vector<1x32xf32>
    %16 = arith.mulf %13, %13 : vector<1x32xf32>
    %17 = arith.subf %15, %16 : vector<1x32xf32>
    %cst_13 = arith.constant 0.000000e+00 : f32
    %18 = vector.broadcast %cst_13 : f32 to vector<1x32xf32>
    %19 = arith.maximumf %17, %18 : vector<1x32xf32>
    %c0_14 = arith.constant 0 : index
    %c0_15 = arith.constant 0 : index
    %20 = vector.load %arg3[%c0_14, %c0_15] : memref<1x32xf32, #tpu.memory_space<vmem>>, vector<1x32xf32>
    %cst_16 = arith.constant 9.99999974E-6 : f32
    %21 = vector.broadcast %cst_16 : f32 to vector<1x32xf32>
    %22 = arith.addf %19, %21 : vector<1x32xf32>
    %23 = math.rsqrt %22 : vector<1x32xf32>
    %24 = arith.mulf %20, %23 : vector<1x32xf32>
    %c0_17 = arith.constant 0 : index
    %c0_18 = arith.constant 0 : index
    %25 = vector.load %arg4[%c0_17, %c0_18] : memref<1x32xf32, #tpu.memory_space<vmem>>, vector<1x32xf32>
    %26 = arith.mulf %13, %24 : vector<1x32xf32>
    %27 = arith.subf %25, %26 : vector<1x32xf32>
    %c0_19 = arith.constant 0 : index
    %c0_20 = arith.constant 0 : index
    %28 = vector.load %arg6[%c0_19, %c0_20] : memref<32x128xf32, #tpu.memory_space<vmem>>, vector<32x128xf32>
    %cst_21 = arith.constant dense<0.000000e+00> : vector<1x128xf32>
    %29 = tpu.matmul %24, %28, %cst_21 {dimension_numbers = #tpu.dot_dimension_numbers<[1], [0], [0], [1], [0, 0, 1, 1], [], []>} : vector<1x32xf32>, vector<32x128xf32>, vector<1x128xf32> -> vector<1x128xf32>
    %c0_22 = arith.constant 0 : index
    %c0_23 = arith.constant 0 : index
    %30 = vector.load %arg6[%c0_22, %c0_23] : memref<32x128xf32, #tpu.memory_space<vmem>>, vector<32x128xf32>
    %cst_24 = arith.constant dense<0.000000e+00> : vector<1x128xf32>
    %31 = tpu.matmul %27, %30, %cst_24 {dimension_numbers = #tpu.dot_dimension_numbers<[1], [0], [0], [1], [0, 0, 1, 1], [], []>} : vector<1x32xf32>, vector<32x128xf32>, vector<1x128xf32> -> vector<1x128xf32>
    %32 = vector.broadcast %29 : vector<1x128xf32> to vector<128x128xf32>
    %33 = arith.mulf %2, %32 : vector<128x128xf32>
    %34 = vector.broadcast %31 : vector<1x128xf32> to vector<128x128xf32>
    %35 = arith.addf %33, %34 : vector<128x128xf32>
    %cst_25 = arith.constant 0.000000e+00 : f32
    %36 = vector.broadcast %cst_25 : f32 to vector<128x128xf32>
    %37 = arith.maximumf %35, %36 : vector<128x128xf32>
    %38 = arith.truncf %37 : vector<128x128xf32> to vector<128x128xbf16>
    %c0_26 = arith.constant 0 : index
    %c0_27 = arith.constant 0 : index
    %39 = vector.load %arg7[%c0_26, %c0_27] : memref<128x128xbf16, #tpu.memory_space<vmem>>, vector<128x128xbf16>
    tpu.vector_store %arg7[%c0_26, %c0_27], %38 {strides = array<i32>} : memref<128x128xbf16, #tpu.memory_space<vmem>>, vector<128x128xbf16>,
    return
  }
  func.func @transform_0(%arg0: i32) -> (i32, i32) {
    %c0_i32 = arith.constant 0 : i32
    %c0_i32_0 = arith.constant 0 : i32
    %c0_i32_1 = arith.constant 0 : i32
    return %c0_i32, %c0_i32_0 : i32, i32
  }
  func.func @transform_1(%arg0: i32) -> (i32, i32) {
    %c0_i32 = arith.constant 0 : i32
    %c0_i32_0 = arith.constant 0 : i32
    %c0_i32_1 = arith.constant 0 : i32
    return %c0_i32, %c0_i32_0 : i32, i32
  }
  func.func @transform_2(%arg0: i32) -> (i32, i32) {
    %c0_i32 = arith.constant 0 : i32
    %c0_i32_0 = arith.constant 0 : i32
    %c0_i32_1 = arith.constant 0 : i32
    return %c0_i32, %c0_i32_0 : i32, i32
  }
  func.func @transform_3(%arg0: i32) -> (i32, i32) {
    %c0_i32 = arith.constant 0 : i32
    %c0_i32_0 = arith.constant 0 : i32
    %c0_i32_1 = arith.constant 0 : i32
    return %c0_i32, %c0_i32_0 : i32, i32
  }
  func.func @transform_4(%arg0: i32) -> (i32, i32) {
    %c0_i32 = arith.constant 0 : i32
    %c0_i32_0 = arith.constant 0 : i32
    %c0_i32_1 = arith.constant 0 : i32
    return %c0_i32, %c0_i32_0 : i32, i32
  }
  func.func @transform_5(%arg0: i32) -> (i32, i32) {
    %c0_i32 = arith.constant 0 : i32
    %c0_i32_0 = arith.constant 0 : i32
    %c0_i32_1 = arith.constant 0 : i32
    return %c0_i32, %c0_i32_0 : i32, i32
  }
  func.func @transform_6(%arg0: i32) -> (i32, i32) {
    %c0_i32 = arith.constant 0 : i32
    %c0_i32_0 = arith.constant 0 : i32
    %c0_i32_1 = arith.constant 0 : i32
    return %c0_i32, %c0_i32_0 : i32, i32
  }
}

module attributes {stable_mosaic.version = 11 : i64} {
  func.func @_bn_relu_kernel(%arg0: i32, %arg1: memref<512x256xbf16, #tpu.memory_space<vmem>>, %arg2: memref<256x128xbf16, #tpu.memory_space<vmem>>, %arg3: memref<1x32xf32, #tpu.memory_space<vmem>>, %arg4: memref<1x32xf32, #tpu.memory_space<vmem>>, %arg5: memref<128x32xf32, #tpu.memory_space<vmem>>, %arg6: memref<32x128xf32, #tpu.memory_space<vmem>>, %arg7: memref<512x128xbf16, #tpu.memory_space<vmem>>) attributes {dimension_semantics = [#tpu.dimension_semantics<arbitrary>], iteration_bounds = array<i64: 1>, scalar_prefetch = 0 : i64, scratch_operands = 0 : i64, tpu.core_type = #tpu.core_type<tc>, window_params = [{pipeline_mode = #tpu.pipeline_mode<synchronous>, transform_indices = @transform_0, window_bounds = array<i64: 512, 256>}, {pipeline_mode = #tpu.pipeline_mode<synchronous>, transform_indices = @transform_1, window_bounds = array<i64: 256, 128>}, {pipeline_mode = #tpu.pipeline_mode<synchronous>, transform_indices = @transform_2, window_bounds = array<i64: 1, 32>}, {pipeline_mode = #tpu.pipeline_mode<synchronous>, transform_indices = @transform_3, window_bounds = array<i64: 1, 32>}, {pipeline_mode = #tpu.pipeline_mode<synchronous>, transform_indices = @transform_4, window_bounds = array<i64: 128, 32>}, {pipeline_mode = #tpu.pipeline_mode<synchronous>, transform_indices = @transform_5, window_bounds = array<i64: 32, 128>}, {pipeline_mode = #tpu.pipeline_mode<synchronous>, transform_indices = @transform_6, window_bounds = array<i64: 512, 128>}]} {
    %c0 = arith.constant 0 : index
    %c0_0 = arith.constant 0 : index
    %0 = vector.load %arg1[%c0, %c0_0] : memref<512x256xbf16, #tpu.memory_space<vmem>>, vector<512x256xbf16>
    %c0_1 = arith.constant 0 : index
    %c0_2 = arith.constant 0 : index
    %1 = vector.load %arg2[%c0_1, %c0_2] : memref<256x128xbf16, #tpu.memory_space<vmem>>, vector<256x128xbf16>
    %cst = arith.constant dense<0.000000e+00> : vector<512x128xf32>
    %2 = tpu.matmul %0, %1, %cst {dimension_numbers = #tpu.dot_dimension_numbers<[1], [0], [0], [1], [0, 0, 1, 1], [], []>} : vector<512x256xbf16>, vector<256x128xbf16>, vector<512x128xf32> -> vector<512x128xf32>
    %cst_3 = arith.constant dense<0.000000e+00> : vector<128xf32>
    %3 = vector.multi_reduction <add>, %2, %cst_3 [0] : vector<512x128xf32> to vector<128xf32>
    %4 = vector.shape_cast %3 : vector<128xf32> to vector<1x128xf32>
    %5 = arith.mulf %2, %2 : vector<512x128xf32>
    %cst_4 = arith.constant dense<0.000000e+00> : vector<128xf32>
    %6 = vector.multi_reduction <add>, %5, %cst_4 [0] : vector<512x128xf32> to vector<128xf32>
    %7 = vector.shape_cast %6 : vector<128xf32> to vector<1x128xf32>
    %c0_5 = arith.constant 0 : index
    %c0_6 = arith.constant 0 : index
    %8 = vector.load %arg5[%c0_5, %c0_6] : memref<128x32xf32, #tpu.memory_space<vmem>>, vector<128x32xf32>
    %cst_7 = arith.constant dense<0.000000e+00> : vector<1x32xf32>
    %9 = tpu.matmul %4, %8, %cst_7 {dimension_numbers = #tpu.dot_dimension_numbers<[1], [0], [0], [1], [0, 0, 1, 1], [], []>} : vector<1x128xf32>, vector<128x32xf32>, vector<1x32xf32> -> vector<1x32xf32>
    %c0_8 = arith.constant 0 : index
    %c0_9 = arith.constant 0 : index
    %10 = vector.load %arg5[%c0_8, %c0_9] : memref<128x32xf32, #tpu.memory_space<vmem>>, vector<128x32xf32>
    %cst_10 = arith.constant dense<0.000000e+00> : vector<1x32xf32>
    %11 = tpu.matmul %7, %10, %cst_10 {dimension_numbers = #tpu.dot_dimension_numbers<[1], [0], [0], [1], [0, 0, 1, 1], [], []>} : vector<1x128xf32>, vector<128x32xf32>, vector<1x32xf32> -> vector<1x32xf32>
    %cst_11 = arith.constant 4.8828125E-4 : f32
    %12 = vector.broadcast %cst_11 : f32 to vector<1x32xf32>
    %13 = arith.mulf %9, %12 : vector<1x32xf32>
    %cst_12 = arith.constant 4.8828125E-4 : f32
    %14 = vector.broadcast %cst_12 : f32 to vector<1x32xf32>
    %15 = arith.mulf %11, %14 : vector<1x32xf32>
    %16 = arith.mulf %13, %13 : vector<1x32xf32>
    %17 = arith.subf %15, %16 : vector<1x32xf32>
    %cst_13 = arith.constant 0.000000e+00 : f32
    %18 = vector.broadcast %cst_13 : f32 to vector<1x32xf32>
    %19 = arith.maximumf %17, %18 : vector<1x32xf32>
    %c0_14 = arith.constant 0 : index
    %c0_15 = arith.constant 0 : index
    %20 = vector.load %arg3[%c0_14, %c0_15] : memref<1x32xf32, #tpu.memory_space<vmem>>, vector<1x32xf32>
    %cst_16 = arith.constant 9.99999974E-6 : f32
    %21 = vector.broadcast %cst_16 : f32 to vector<1x32xf32>
    %22 = arith.addf %19, %21 : vector<1x32xf32>
    %23 = math.rsqrt %22 : vector<1x32xf32>
    %24 = arith.mulf %20, %23 : vector<1x32xf32>
    %c0_17 = arith.constant 0 : index
    %c0_18 = arith.constant 0 : index
    %25 = vector.load %arg4[%c0_17, %c0_18] : memref<1x32xf32, #tpu.memory_space<vmem>>, vector<1x32xf32>
    %26 = arith.mulf %13, %24 : vector<1x32xf32>
    %27 = arith.subf %25, %26 : vector<1x32xf32>
    %c0_19 = arith.constant 0 : index
    %c0_20 = arith.constant 0 : index
    %28 = vector.load %arg6[%c0_19, %c0_20] : memref<32x128xf32, #tpu.memory_space<vmem>>, vector<32x128xf32>
    %cst_21 = arith.constant dense<0.000000e+00> : vector<1x128xf32>
    %29 = tpu.matmul %24, %28, %cst_21 {dimension_numbers = #tpu.dot_dimension_numbers<[1], [0], [0], [1], [0, 0, 1, 1], [], []>} : vector<1x32xf32>, vector<32x128xf32>, vector<1x128xf32> -> vector<1x128xf32>
    %c0_22 = arith.constant 0 : index
    %c0_23 = arith.constant 0 : index
    %30 = vector.load %arg6[%c0_22, %c0_23] : memref<32x128xf32, #tpu.memory_space<vmem>>, vector<32x128xf32>
    %cst_24 = arith.constant dense<0.000000e+00> : vector<1x128xf32>
    %31 = tpu.matmul %27, %30, %cst_24 {dimension_numbers = #tpu.dot_dimension_numbers<[1], [0], [0], [1], [0, 0, 1, 1], [], []>} : vector<1x32xf32>, vector<32x128xf32>, vector<1x128xf32> -> vector<1x128xf32>
    %32 = vector.broadcast %29 : vector<1x128xf32> to vector<512x128xf32>
    %33 = arith.mulf %2, %32 : vector<512x128xf32>
    %34 = vector.broadcast %31 : vector<1x128xf32> to vector<512x128xf32>
    %35 = arith.addf %33, %34 : vector<512x128xf32>
    %cst_25 = arith.constant 0.000000e+00 : f32
    %36 = vector.broadcast %cst_25 : f32 to vector<512x128xf32>
    %37 = arith.maximumf %35, %36 : vector<512x128xf32>
    %38 = arith.truncf %37 : vector<512x128xf32> to vector<512x128xbf16>
    %c0_26 = arith.constant 0 : index
    %c0_27 = arith.constant 0 : index
    %39 = vector.load %arg7[%c0_26, %c0_27] : memref<512x128xbf16, #tpu.memory_space<vmem>>, vector<512x128xbf16>
    tpu.vector_store %arg7[%c0_26, %c0_27], %38 {strides = array<i32>} : memref<512x128xbf16, #tpu.memory_space<vmem>>, vector<512x128xbf16>,
    return
  }
  func.func @transform_0(%arg0: i32) -> (i32, i32) {
    %c0_i32 = arith.constant 0 : i32
    %c0_i32_0 = arith.constant 0 : i32
    %c0_i32_1 = arith.constant 0 : i32
    return %c0_i32, %c0_i32_0 : i32, i32
  }
  func.func @transform_1(%arg0: i32) -> (i32, i32) {
    %c0_i32 = arith.constant 0 : i32
    %c0_i32_0 = arith.constant 0 : i32
    %c0_i32_1 = arith.constant 0 : i32
    return %c0_i32, %c0_i32_0 : i32, i32
  }
  func.func @transform_2(%arg0: i32) -> (i32, i32) {
    %c0_i32 = arith.constant 0 : i32
    %c0_i32_0 = arith.constant 0 : i32
    %c0_i32_1 = arith.constant 0 : i32
    return %c0_i32, %c0_i32_0 : i32, i32
  }
  func.func @transform_3(%arg0: i32) -> (i32, i32) {
    %c0_i32 = arith.constant 0 : i32
    %c0_i32_0 = arith.constant 0 : i32
    %c0_i32_1 = arith.constant 0 : i32
    return %c0_i32, %c0_i32_0 : i32, i32
  }
  func.func @transform_4(%arg0: i32) -> (i32, i32) {
    %c0_i32 = arith.constant 0 : i32
    %c0_i32_0 = arith.constant 0 : i32
    %c0_i32_1 = arith.constant 0 : i32
    return %c0_i32, %c0_i32_0 : i32, i32
  }
  func.func @transform_5(%arg0: i32) -> (i32, i32) {
    %c0_i32 = arith.constant 0 : i32
    %c0_i32_0 = arith.constant 0 : i32
    %c0_i32_1 = arith.constant 0 : i32
    return %c0_i32, %c0_i32_0 : i32, i32
  }
  func.func @transform_6(%arg0: i32) -> (i32, i32) {
    %c0_i32 = arith.constant 0 : i32
    %c0_i32_0 = arith.constant 0 : i32
    %c0_i32_1 = arith.constant 0 : i32
    return %c0_i32, %c0_i32_0 : i32, i32
  }
}

module attributes {stable_mosaic.version = 11 : i64} {
  func.func @_bias_tanh_kernel(%arg0: i32, %arg1: memref<512x128xbf16, #tpu.memory_space<vmem>>, %arg2: memref<128x128xbf16, #tpu.memory_space<vmem>>, %arg3: memref<1x128xf32, #tpu.memory_space<vmem>>, %arg4: memref<512x128xbf16, #tpu.memory_space<vmem>>) attributes {dimension_semantics = [#tpu.dimension_semantics<parallel>], iteration_bounds = array<i64: 4>, scalar_prefetch = 0 : i64, scratch_operands = 0 : i64, tpu.core_type = #tpu.core_type<tc>, window_params = [{transform_indices = @transform_0, window_bounds = array<i64: 512, 128>}, {pipeline_mode = #tpu.pipeline_mode<synchronous>, transform_indices = @transform_1, window_bounds = array<i64: 128, 128>}, {pipeline_mode = #tpu.pipeline_mode<synchronous>, transform_indices = @transform_2, window_bounds = array<i64: 1, 128>}, {transform_indices = @transform_3, window_bounds = array<i64: 512, 128>}]} {
    %c0 = arith.constant 0 : index
    %c0_0 = arith.constant 0 : index
    %0 = vector.load %arg1[%c0, %c0_0] : memref<512x128xbf16, #tpu.memory_space<vmem>>, vector<512x128xbf16>
    %c0_1 = arith.constant 0 : index
    %c0_2 = arith.constant 0 : index
    %1 = vector.load %arg2[%c0_1, %c0_2] : memref<128x128xbf16, #tpu.memory_space<vmem>>, vector<128x128xbf16>
    %cst = arith.constant dense<0.000000e+00> : vector<512x128xf32>
    %2 = tpu.matmul %0, %1, %cst {dimension_numbers = #tpu.dot_dimension_numbers<[1], [0], [0], [1], [0, 0, 1, 1], [], []>} : vector<512x128xbf16>, vector<128x128xbf16>, vector<512x128xf32> -> vector<512x128xf32>
    %c0_3 = arith.constant 0 : index
    %c0_4 = arith.constant 0 : index
    %3 = vector.load %arg3[%c0_3, %c0_4] : memref<1x128xf32, #tpu.memory_space<vmem>>, vector<1x128xf32>
    %4 = vector.broadcast %3 : vector<1x128xf32> to vector<512x128xf32>
    %5 = arith.addf %2, %4 : vector<512x128xf32>
    %6 = math.tanh %5 : vector<512x128xf32>
    %7 = arith.truncf %6 : vector<512x128xf32> to vector<512x128xbf16>
    %c0_5 = arith.constant 0 : index
    %c0_6 = arith.constant 0 : index
    %8 = vector.load %arg4[%c0_5, %c0_6] : memref<512x128xbf16, #tpu.memory_space<vmem>>, vector<512x128xbf16>
    tpu.vector_store %arg4[%c0_5, %c0_6], %7 {strides = array<i32>} : memref<512x128xbf16, #tpu.memory_space<vmem>>, vector<512x128xbf16>,
    return
  }
  func.func @transform_0(%arg0: i32) -> (i32, i32) {
    %c0_i32 = arith.constant 0 : i32
    %c0_i32_0 = arith.constant 0 : i32
    return %arg0, %c0_i32 : i32, i32
  }
  func.func @transform_1(%arg0: i32) -> (i32, i32) {
    %c0_i32 = arith.constant 0 : i32
    %c0_i32_0 = arith.constant 0 : i32
    %c0_i32_1 = arith.constant 0 : i32
    return %c0_i32, %c0_i32_0 : i32, i32
  }
  func.func @transform_2(%arg0: i32) -> (i32, i32) {
    %c0_i32 = arith.constant 0 : i32
    %c0_i32_0 = arith.constant 0 : i32
    %c0_i32_1 = arith.constant 0 : i32
    return %c0_i32, %c0_i32_0 : i32, i32
  }
  func.func @transform_3(%arg0: i32) -> (i32, i32) {
    %c0_i32 = arith.constant 0 : i32
    %c0_i32_0 = arith.constant 0 : i32
    return %arg0, %c0_i32 : i32, i32
  }
}

</mosaic_0001>

<bundles_post_ra>
// kernel: my_generator_forward.5
= control target key start
LH: loop header
LB: loop body
LE: loop exit
PB: predicated region body
PF: predicated region fallthrough
CT: control target
= control target key end

     0   :  { %11 = vsyncpa [#allocation3], 0  ;;  %s1062_s0 = inlined_call_operand.vmem [shape: bf16[8,256], index: 0, kind: input, shape index: {}]   ;;  %s1063_s1 = inlined_call_operand.hbm [shape: bf16[256,256], index: 1, kind: input, shape index: {}]   ;;  %s1064_s2 = inlined_call_operand.hbm [shape: f32[1,64], index: 2, kind: input, shape index: {}]   ;;  %s1065_s3 = inlined_call_operand.hbm [shape: f32[1,64], index: 3, kind: input, shape index: {}]   ;;  %s1066_s4 = inlined_call_operand.vmem [shape: f32[256,64], index: 4, kind: input, shape index: {}]   ;;  %s1067_s5 = inlined_call_operand.hbm [shape: f32[64,256], index: 5, kind: input, shape index: {}]   ;;  %s1068_s6 = inlined_call_operand.vmem [shape: bf16[8,256], index: 6, kind: output, shape index: {}]  }
   0x1   :  { %12 = vsyncpa [#allocation5], 0  ;;  %s34_s23 = sshll.u32 %s1064_s2, 4  ;;  %s35_s23 = int_to_ptr.hbm [resolvable:$true] %s34_s23 }
   0x2   :  { %13 = vsyncpa [#allocation8], 0  ;;  %s891_s24 = smov [#allocation4]   ;;  %s20_s28 = sshll.u32 %s1063_s1, 4  ;;  %s21_s28 = int_to_ptr.hbm [resolvable:$true] %s20_s28 }
   0x3   :  { %s36_s25 = sshll.u32 %s891_s24, 4  ;;  %s892_s29 = smov [#allocation2]   ;;  %s37_s25 = int_to_ptr.vmem [resolvable:$true] %s36_s25 }
   0x4   :  { %39 = dma.hbm_to_vmem [thread:$0]  %s35_s23, 16, %s37_s25, [#allocation5]  }
   0x5   :  { %s22_s30 = sshll.u32 %s892_s29, 4  ;;  %s893_s7 = smov 128   ;;  %s23_s30 = int_to_ptr.vmem [resolvable:$true] %s22_s30 }
   0x6   :  { %s894_s8 = smov 8   ;;  %s45_s2 = sshll.u32 %s1065_s3, 4  ;;  %s46_s2 = int_to_ptr.hbm [resolvable:$true] %s45_s2 }
   0x7   :  { %28 = dma.hbm_to_vmem [thread:$0]  %s21_s28, 4096, %s23_s30, [#allocation3], %s893_s7, %s893_s7, %s894_s8  }
   0x8   :  { %s895_s11 = smov [#allocation6]   ;;  %s57_s1 = sshll.u32 %s1067_s5, 4  ;;  %s58_s1 = int_to_ptr.hbm [resolvable:$true] %s57_s1 }
   0x9   :  { %s47_s12 = sshll.u32 %s895_s11, 4  ;;  %s896_s15 = smov [#allocation7]   ;;  %s48_s12 = int_to_ptr.vmem [resolvable:$true] %s47_s12 }
   0xa   :  { %50 = dma.hbm_to_vmem [thread:$0]  %s46_s2, 16, %s48_s12, [#allocation5]  }
   0xb   :  { %s59_s16 = sshll.u32 %s896_s15, 4  ;;  %s897_s17 = smov 256   ;;  %s60_s16 = int_to_ptr.vmem [resolvable:$true] %s59_s16 }
   0xc   :  { %s898_s18 = smov 16  }
   0xd   :  { %65 = dma.hbm_to_vmem [thread:$0]  %s58_s1, 2048, %s60_s16, [#allocation8], %s897_s17, %s897_s17, %s898_s18  }
   0xe   :  { %885 = dma.done.wait [#allocation3], 4096  }
   0xf   :  { %886 = vsyncadd [#allocation3], 4294963200 }
  0x10   :  { %887 = dma.done.wait [#allocation5], 32  }
  0x11   :  { %888 = vsyncadd [#allocation5], 4294967264 }
  0x12   :  { %889 = dma.done.wait [#allocation8], 2048  }
  0x13   :  { %890 = vsyncadd [#allocation8], 4294965248  ;;  %v673_v0 = vld [vmem:[#allocation2 + $0x70] sm:$0xf]  ;;  %v762_v1 = vld [vmem:[#allocation2 + $0x74] sm:$0xf0] }
  0x14   :  { %v737_v2 = vld [vmem:[#allocation2 + $0xf0] sm:$0xf]  ;;  %v674_v3 = vor.u32 %v762_v1, %v673_v0  ;;  %v778_v4 = vld [vmem:[#allocation2 + $0xf4] sm:$0xf0]  ;;  %v761_v5 = vld [vmem:[#allocation2 + $0x74] sm:$0xf] }
  0x15   :  { %v675_v6 = vld [vmem:[#allocation2 + $0x78] sm:$0xf0]  ;;  %v738_v7 = vor.u32 %v778_v4, %v737_v2  ;;  %v777_v9 = vld [vmem:[#allocation2 + $0xf4] sm:$0xf]  ;;  %v665_v11 = vld [vmem:[#allocation2 + $0x60] sm:$0xf] }
  0x16   :  { %v678_v8 = vor.u32 %v761_v5, %v675_v6  ;;  %v739_v10 = vld [vmem:[#allocation2 + $0xf8] sm:$0xf0]  ;;  %282 = vmatpush.bf16.msra.mxu0 %v674_v3  ;;  %v760_v13 = vld [vmem:[#allocation2 + $0x64] sm:$0xf0]  ;;  %v729_v14 = vld [vmem:[#allocation2 + $0xe0] sm:$0xf] }
  0x17   :  { %v742_v12 = vor.u32 %v777_v9, %v739_v10  ;;  %v776_v15 = vld [vmem:[#allocation2 + $0xe4] sm:$0xf0]  ;;  %295 = vmatpush.bf16.msra.mxu1 %v738_v7  ;;  %v666_v16 = vor.u32 %v760_v13, %v665_v11  ;;  %v759_v18 = vld [vmem:[#allocation2 + $0x64] sm:$0xf]  ;;  %v667_v19 = vld [vmem:[#allocation2 + $0x68] sm:$0xf0] }
  0x18   :  { %308 = vmatpush.bf16.msra.mxu2 %v678_v8  ;;  %v730_v17 = vor.u32 %v776_v15, %v729_v14  ;;  %v775_v20 = vld [vmem:[#allocation2 + $0xe4] sm:$0xf]  ;;  %v670_v21 = vor.u32 %v759_v18, %v667_v19  ;;  %v731_v22 = vld [vmem:[#allocation2 + $0xe8] sm:$0xf0]  ;;  %v657_v23 = vld [vmem:[#allocation2 + $0x50] sm:$0xf] }
  0x19   :  { %321 = vmatpush.bf16.msra.mxu3 %v742_v12  ;;  %v758_v24 = vld [vmem:[#allocation2 + $0x54] sm:$0xf0]  ;;  %v734_v25 = vor.u32 %v775_v20, %v731_v22  ;;  %v721_v26 = vld [vmem:[#allocation2 + $0xd0] sm:$0xf]  ;;  %v757_v28 = vld [vmem:[#allocation2 + $0x54] sm:$0xf] }
  0x1a   :  { %v774_v27 = vld [vmem:[#allocation2 + $0xd4] sm:$0xf0]  ;;  %283 = vmatpush.bf16.msra.mxu0 %v666_v16  ;;  %v658_v29 = vor.u32 %v758_v24, %v657_v23  ;;  %v659_v30 = vld [vmem:[#allocation2 + $0x58] sm:$0xf0]  ;;  %v773_v31 = vld [vmem:[#allocation2 + $0xd4] sm:$0xf] }
  0x1b   :  { %v723_v32 = vld [vmem:[#allocation2 + $0xd8] sm:$0xf0]  ;;  %296 = vmatpush.bf16.msra.mxu1 %v730_v17  ;;  %v722_v33 = vor.u32 %v774_v27, %v721_v26  ;;  %v662_v34 = vor.u32 %v757_v28, %v659_v30  ;;  %v649_v35 = vld [vmem:[#allocation2 + $0x40] sm:$0xf]  ;;  %v756_v36 = vld [vmem:[#allocation2 + $0x44] sm:$0xf0] }
  0x1c   :  { %309 = vmatpush.bf16.msra.mxu2 %v670_v21  ;;  %v713_v37 = vld [vmem:[#allocation2 + $0xc0] sm:$0xf]  ;;  %v726_v38 = vor.u32 %v773_v31, %v723_v32  ;;  %v772_v39 = vld [vmem:[#allocation2 + $0xc4] sm:$0xf0]  ;;  %v755_v40 = vld [vmem:[#allocation2 + $0x44] sm:$0xf]  ;;  %v650_v44 = vor.u32 %v756_v36, %v649_v35 }
  0x1d   :  { %322 = vmatpush.bf16.msra.mxu3 %v734_v25  ;;  %v651_v41 = vld [vmem:[#allocation2 + $0x48] sm:$0xf0]  ;;  %v771_v42 = vld [vmem:[#allocation2 + $0xc4] sm:$0xf]  ;;  %v714_v45 = vor.u32 %v772_v39, %v713_v37  ;;  %v641_v47 = vld [vmem:[#allocation2 + $0x30] sm:$0xf] }
  0x1e   :  { %v715_v43 = vld [vmem:[#allocation2 + $0xc8] sm:$0xf0]  ;;  %284 = vmatpush.bf16.msra.mxu0 %v658_v29  ;;  %v654_v46 = vor.u32 %v755_v40, %v651_v41  ;;  %v754_v48 = vld [vmem:[#allocation2 + $0x34] sm:$0xf0]  ;;  %v705_v49 = vld [vmem:[#allocation2 + $0xb0] sm:$0xf] }
  0x1f   :  { %297 = vmatpush.bf16.msra.mxu1 %v722_v33  ;;  %v718_v50 = vor.u32 %v771_v42, %v715_v43  ;;  %v770_v51 = vld [vmem:[#allocation2 + $0xb4] sm:$0xf0]  ;;  %v753_v52 = vld [vmem:[#allocation2 + $0x34] sm:$0xf]  ;;  %v643_v53 = vld [vmem:[#allocation2 + $0x38] sm:$0xf0]  ;;  %v642_v56 = vor.u32 %v754_v48, %v641_v47 }
  0x20   :  { %310 = vmatpush.bf16.msra.mxu2 %v662_v34  ;;  %v769_v54 = vld [vmem:[#allocation2 + $0xb4] sm:$0xf]  ;;  %v707_v55 = vld [vmem:[#allocation2 + $0xb8] sm:$0xf0]  ;;  %v706_v57 = vor.u32 %v770_v51, %v705_v49  ;;  %v646_v58 = vor.u32 %v753_v52, %v643_v53  ;;  %v633_v59 = vld [vmem:[#allocation2 + $0x20] sm:$0xf] }
  0x21   :  { %323 = vmatpush.bf16.msra.mxu3 %v726_v38  ;;  %v752_v60 = vld [vmem:[#allocation2 + $0x24] sm:$0xf0]  ;;  %v697_v61 = vld [vmem:[#allocation2 + $0xa0] sm:$0xf]  ;;  %v710_v62 = vor.u32 %v769_v54, %v707_v55  ;;  %v751_v0 = vld [vmem:[#allocation2 + $0x24] sm:$0xf] }
  0x22   :  { %285 = vmatpush.bf16.msra.mxu0 %v650_v44  ;;  %v768_v63 = vld [vmem:[#allocation2 + $0xa4] sm:$0xf0]  ;;  %v635_v1 = vld [vmem:[#allocation2 + $0x28] sm:$0xf0]  ;;  %v767_v2 = vld [vmem:[#allocation2 + $0xa4] sm:$0xf]  ;;  %v634_v4 = vor.u32 %v752_v60, %v633_v59 }
  0x23   :  { %298 = vmatpush.bf16.msra.mxu1 %v714_v45  ;;  %v699_v3 = vld [vmem:[#allocation2 + $0xa8] sm:$0xf0]  ;;  %v698_v5 = vor.u32 %v768_v63, %v697_v61  ;;  %v638_v6 = vor.u32 %v751_v0, %v635_v1  ;;  %v625_v7 = vld [vmem:[#allocation2 + $0x10] sm:$0xf]  ;;  %v750_v8 = vld [vmem:[#allocation2 + $0x14] sm:$0xf0] }
  0x24   :  { %311 = vmatpush.bf16.msra.mxu2 %v654_v46  ;;  %v689_v9 = vld [vmem:[#allocation2 + $0x90] sm:$0xf]  ;;  %v702_v10 = vor.u32 %v767_v2, %v699_v3  ;;  %v766_v11 = vld [vmem:[#allocation2 + $0x94] sm:$0xf0]  ;;  %v749_v12 = vld [vmem:[#allocation2 + $0x14] sm:$0xf]  ;;  %v626_v16 = vor.u32 %v750_v8, %v625_v7 }
  0x25   :  { %324 = vmatpush.bf16.msra.mxu3 %v718_v50  ;;  %v627_v13 = vld [vmem:[#allocation2 + $0x18] sm:$0xf0]  ;;  %v765_v14 = vld [vmem:[#allocation2 + $0x94] sm:$0xf]  ;;  %v82_v17 = vld [vmem:[%s1062_s0] sm:$0xff]  ;;  %v690_v18 = vor.u32 %v766_v11, %v689_v9  ;;  %vm509_vm3 = vcmask 523264  }
  0x26   :  { %286 = vmatpush.bf16.msra.mxu0 %v642_v56  ;;  %v691_v15 = vld [vmem:[#allocation2 + $0x98] sm:$0xf0]  ;;  %v630_v19 = vor.u32 %v749_v12, %v627_v13  ;;  %v617_v20 = vld [vmem:[#allocation2] sm:$0xf]  ;;  %v748_v21 = vld [vmem:[#allocation2 + $0x4] sm:$0xf0]  ;;  %v116_v29 = vunpack.c.l.b16 %v82_v17  ;;  %v117_v31 = vunpack.c.h.b16 %v82_v17 }
  0x27   :  { %299 = vmatpush.bf16.msra.mxu1 %v706_v57  ;;  %v681_v22 = vld [vmem:[#allocation2 + $0x80] sm:$0xf]  ;;  %v694_v23 = vor.u32 %v765_v14, %v691_v15  ;;  %v764_v24 = vld [vmem:[#allocation2 + $0x84] sm:$0xf0]  ;;  %v747_v25 = vld [vmem:[#allocation2 + $0x4] sm:$0xf]  ;;  %v618_v30 = vor.u32 %v748_v21, %v617_v20 }
  0x28   :  { %312 = vmatpush.bf16.msra.mxu2 %v646_v58  ;;  %v619_v26 = vld [vmem:[#allocation2 + $0x8] sm:$0xf0]  ;;  %v763_v27 = vld [vmem:[#allocation2 + $0x84] sm:$0xf]  ;;  %v682_v32 = vor.u32 %v764_v24, %v681_v22  ;;  %v118_v35 = vpack.c.b16 %v116_v29, %v116_v29  ;;  %v375_v36 = vld [vmem:[%s1066_s4 + $0x78] sm:$0xff]  ;;  %v119_v37 = vpack.c.b16 %v117_v31, %v117_v31 }
  0x29   :  { %325 = vmatpush.bf16.msra.mxu3 %v710_v62  ;;  %v683_v28 = vld [vmem:[#allocation2 + $0x88] sm:$0xf0]  ;;  %v622_v33 = vor.u32 %v747_v25, %v619_v26  ;;  %v374_v38 = vld [vmem:[%s1066_s4 + $0x70] sm:$0xff]  ;;  %v391_v39 = vld [vmem:[%s1066_s4 + $0xf8] sm:$0xff] }
  0x2a   :  { %287 = vmatpush.bf16.msra.mxu0 %v634_v4  ;;  %v686_v34 = vor.u32 %v763_v27, %v683_v28  ;;  %v373_v40 = vld [vmem:[%s1066_s4 + $0x68] sm:$0xff]  ;;  %v390_v41 = vld [vmem:[%s1066_s4 + $0xf0] sm:$0xff]  ;;  %v372_v42 = vld [vmem:[%s1066_s4 + $0x60] sm:$0xff] }
  0x2b   :  { %300 = vmatpush.bf16.msra.mxu1 %v698_v5  ;;  %v389_v43 = vld [vmem:[%s1066_s4 + $0xe8] sm:$0xff]  ;;  %v371_v44 = vld [vmem:[%s1066_s4 + $0x58] sm:$0xff]  ;;  %v388_v45 = vld [vmem:[%s1066_s4 + $0xe0] sm:$0xff] }
  0x2c   :  { %313 = vmatpush.bf16.msra.mxu2 %v638_v6  ;;  %v370_v46 = vld [vmem:[%s1066_s4 + $0x50] sm:$0xff]  ;;  %v387_v47 = vld [vmem:[%s1066_s4 + $0xd8] sm:$0xff]  ;;  %v369_v48 = vld [vmem:[%s1066_s4 + $0x48] sm:$0xff] }
  0x2d   :  { %326 = vmatpush.bf16.msra.mxu3 %v702_v10  ;;  %v368_v49 = vld [vmem:[%s1066_s4 + $0x40] sm:$0xff]  ;;  %v367_v50 = vld [vmem:[%s1066_s4 + $0x38] sm:$0xff]  ;;  %v386_v51 = vld [vmem:[%s1066_s4 + $0xd0] sm:$0xff] }
  0x2e   :  { %288 = vmatpush.bf16.msra.mxu0 %v626_v16  ;;  %v366_v52 = vld [vmem:[%s1066_s4 + $0x30] sm:$0xff]  ;;  %v385_v53 = vld [vmem:[%s1066_s4 + $0xc8] sm:$0xff]  ;;  %v384_v55 = vld [vmem:[%s1066_s4 + $0xc0] sm:$0xff] }
  0x2f   :  { %301 = vmatpush.bf16.msra.mxu1 %v690_v18  ;;  %v365_v54 = vld [vmem:[%s1066_s4 + $0x28] sm:$0xff]  ;;  %v364_v56 = vld [vmem:[%s1066_s4 + $0x20] sm:$0xff]  ;;  %v383_v57 = vld [vmem:[%s1066_s4 + $0xb8] sm:$0xff] }
  0x30   :  { %314 = vmatpush.bf16.msra.mxu2 %v630_v19  ;;  %v363_v58 = vld [vmem:[%s1066_s4 + $0x18] sm:$0xff]  ;;  %v382_v59 = vld [vmem:[%s1066_s4 + $0xb0] sm:$0xff]  ;;  %v381_v61 = vld [vmem:[%s1066_s4 + $0xa8] sm:$0xff] }
  0x31   :  { %327 = vmatpush.bf16.msra.mxu3 %v694_v23  ;;  %v362_v60 = vld [vmem:[%s1066_s4 + $0x10] sm:$0xff]  ;;  %v361_v62 = vld [vmem:[%s1066_s4 + $0x8] sm:$0xff]  ;;  %v380_v63 = vld [vmem:[%s1066_s4 + $0xa0] sm:$0xff] }
  0x32   :  { %289 = vmatpush.bf16.msra.mxu0 %v618_v30  ;;  %v360_v0 = vld [vmem:[%s1066_s4] sm:$0xff]  ;;  %v379_v1 = vld [vmem:[%s1066_s4 + $0x98] sm:$0xff]  ;;  %v378_v2 = vld [vmem:[%s1066_s4 + $0x90] sm:$0xff] }
  0x33   :  { %302 = vmatpush.bf16.msra.mxu1 %v682_v32  ;;  %v377_v3 = vld [vmem:[%s1066_s4 + $0x88] sm:$0xff]  ;;  %v376_v4 = vld [vmem:[%s1066_s4 + $0x80] sm:$0xff] }
  0x34   :  { %315 = vmatpush.bf16.msra.mxu2 %v622_v33 }
  0x35   :  { %328 = vmatpush.bf16.msra.mxu3 %v686_v34  ;;  %290 = vmatmul.bf16.vlgmr.msra.gmra.mxu0 %v118_v35 }
  0x36   :  { %392 = vmatpush.msrb.mxu0 %v375_v36  ;;  %303 = vmatmul.bf16.vlgmr.msra.gmra.mxu1 %v119_v37 }
  0x37   :  { %316 = vmatmul.bf16.vlgmr.msra.gmra.mxu2 %v118_v35  ;;  %412 = vmatpush.msrb.mxu1 %v391_v39 }
  0x38   :  { %432 = vmatpush.msrb.mxu2 %v375_v36  ;;  %329 = vmatmul.bf16.vlgmr.msra.gmra.mxu3 %v119_v37 }
  0x39   :  { %393 = vmatpush.msrb.mxu0 %v374_v38  ;;  %452 = vmatpush.msrb.mxu3 %v391_v39 }
  0x3a   :  { %433 = vmatpush.msrb.mxu2 %v374_v38  ;;  %413 = vmatpush.msrb.mxu1 %v390_v41 }
  0x3b   :  { %394 = vmatpush.msrb.mxu0 %v373_v40  ;;  %453 = vmatpush.msrb.mxu3 %v390_v41  ;;  %v507_v41 = vld [vmem:[#allocation7 + $0x70] sm:$0xff] }
  0x3c   :  { %434 = vmatpush.msrb.mxu2 %v373_v40  ;;  %414 = vmatpush.msrb.mxu1 %v389_v43 }
  0x3d   :  { %395 = vmatpush.msrb.mxu0 %v372_v42  ;;  %454 = vmatpush.msrb.mxu3 %v389_v43  ;;  %v505_v43 = vld [vmem:[#allocation7 + $0x60] sm:$0xff] }
  0x3e   :  { %435 = vmatpush.msrb.mxu2 %v372_v42  ;;  %415 = vmatpush.msrb.mxu1 %v388_v45  ;;  %v508_v42 = vld [vmem:[#allocation7 + $0x78] sm:$0xff] }
  0x3f   :  { %396 = vmatpush.msrb.mxu0 %v371_v44  ;;  %455 = vmatpush.msrb.mxu3 %v388_v45  ;;  %v503_v45 = vld [vmem:[#allocation7 + $0x50] sm:$0xff] }
  0x40   :  { %436 = vmatpush.msrb.mxu2 %v371_v44  ;;  %416 = vmatpush.msrb.mxu1 %v387_v47  ;;  %v506_v44 = vld [vmem:[#allocation7 + $0x68] sm:$0xff] }
  0x41   :  { %397 = vmatpush.msrb.mxu0 %v370_v46  ;;  %456 = vmatpush.msrb.mxu3 %v387_v47  ;;  %v501_v47 = vld [vmem:[#allocation7 + $0x40] sm:$0xff] }
  0x42   :  { %437 = vmatpush.msrb.mxu2 %v370_v46  ;;  %417 = vmatpush.msrb.mxu1 %v386_v51  ;;  %v504_v46 = vld [vmem:[#allocation7 + $0x58] sm:$0xff] }
  0x43   :  { %398 = vmatpush.msrb.mxu0 %v369_v48  ;;  %457 = vmatpush.msrb.mxu3 %v386_v51 }
  0x44   :  { %438 = vmatpush.msrb.mxu2 %v369_v48  ;;  %418 = vmatpush.msrb.mxu1 %v385_v53  ;;  %v502_v48 = vld [vmem:[#allocation7 + $0x48] sm:$0xff] }
  0x45   :  { %399 = vmatpush.msrb.mxu0 %v368_v49  ;;  %458 = vmatpush.msrb.mxu3 %v385_v53  ;;  %v498_v53 = vld [vmem:[#allocation7 + $0x28] sm:$0xff] }
  0x46   :  { %439 = vmatpush.msrb.mxu2 %v368_v49  ;;  %419 = vmatpush.msrb.mxu1 %v384_v55  ;;  %v499_v49 = vld [vmem:[#allocation7 + $0x30] sm:$0xff] }
  0x47   :  { %400 = vmatpush.msrb.mxu0 %v367_v50  ;;  %459 = vmatpush.msrb.mxu3 %v384_v55 }
  0x48   :  { %440 = vmatpush.msrb.mxu2 %v367_v50  ;;  %420 = vmatpush.msrb.mxu1 %v383_v57  ;;  %v500_v50 = vld [vmem:[#allocation7 + $0x38] sm:$0xff] }
  0x49   :  { %401 = vmatpush.msrb.mxu0 %v366_v52  ;;  %460 = vmatpush.msrb.mxu3 %v383_v57  ;;  %v496_v57 = vld [vmem:[#allocation7 + $0x18] sm:$0xff] }
  0x4a   :  { %441 = vmatpush.msrb.mxu2 %v366_v52  ;;  %421 = vmatpush.msrb.mxu1 %v382_v59  ;;  %v497_v52 = vld [vmem:[#allocation7 + $0x20] sm:$0xff] }
  0x4b   :  { %402 = vmatpush.msrb.mxu0 %v365_v54  ;;  %461 = vmatpush.msrb.mxu3 %v382_v59  ;;  %v494_v59 = vld [vmem:[#allocation7 + $0x8] sm:$0xff] }
  0x4c   :  { %442 = vmatpush.msrb.mxu2 %v365_v54  ;;  %422 = vmatpush.msrb.mxu1 %v381_v61 }
  0x4d   :  { %403 = vmatpush.msrb.mxu0 %v364_v56  ;;  %462 = vmatpush.msrb.mxu3 %v381_v61 }
  0x4e   :  { %443 = vmatpush.msrb.mxu2 %v364_v56  ;;  %423 = vmatpush.msrb.mxu1 %v380_v63  ;;  %v495_v56 = vld [vmem:[#allocation7 + $0x10] sm:$0xff] }
  0x4f   :  { %404 = vmatpush.msrb.mxu0 %v363_v58  ;;  %463 = vmatpush.msrb.mxu3 %v380_v63 }
  0x50   :  { %444 = vmatpush.msrb.mxu2 %v363_v58  ;;  %424 = vmatpush.msrb.mxu1 %v379_v1  ;;  %v493_v58 = vld [vmem:[#allocation7] sm:$0xff] }
  0x51   :  { %405 = vmatpush.msrb.mxu0 %v362_v60  ;;  %464 = vmatpush.msrb.mxu3 %v379_v1 }
  0x52   :  { %445 = vmatpush.msrb.mxu2 %v362_v60  ;;  %425 = vmatpush.msrb.mxu1 %v378_v2 }
  0x53   :  { %406 = vmatpush.msrb.mxu0 %v361_v62  ;;  %465 = vmatpush.msrb.mxu3 %v378_v2 }
  0x54   :  { %446 = vmatpush.msrb.mxu2 %v361_v62  ;;  %426 = vmatpush.msrb.mxu1 %v377_v3 }
  0x55   :  { %407 = vmatpush.msrb.mxu0 %v360_v0  ;;  %466 = vmatpush.msrb.mxu3 %v377_v3 }
  0x56   :  { %447 = vmatpush.msrb.mxu2 %v360_v0  ;;  %427 = vmatpush.msrb.mxu1 %v376_v4 }
  0x57   :  { %467 = vmatpush.msrb.mxu3 %v376_v4  ;;  %521 = vmatpush.msra.mxu0 %v507_v41 }
  0x58   :  { %541 = vmatpush.msra.mxu1 %v508_v42  ;;  %564 = vmatpush.msra.mxu2 %v507_v41 }
  0x59   :  { %584 = vmatpush.msra.mxu3 %v508_v42  ;;  %522 = vmatpush.msra.mxu0 %v505_v43 }
  0x5a   :  { %542 = vmatpush.msra.mxu1 %v506_v44  ;;  %565 = vmatpush.msra.mxu2 %v505_v43 }
  0x5b   :  { %585 = vmatpush.msra.mxu3 %v506_v44  ;;  %523 = vmatpush.msra.mxu0 %v503_v45 }
  0x5c   :  { %543 = vmatpush.msra.mxu1 %v504_v46  ;;  %566 = vmatpush.msra.mxu2 %v503_v45 }
  0x5d   :  { %586 = vmatpush.msra.mxu3 %v504_v46  ;;  %524 = vmatpush.msra.mxu0 %v501_v47 }
  0x5e   :  { %544 = vmatpush.msra.mxu1 %v502_v48  ;;  %567 = vmatpush.msra.mxu2 %v501_v47 }
  0x5f   :  { %587 = vmatpush.msra.mxu3 %v502_v48  ;;  %525 = vmatpush.msra.mxu0 %v499_v49 }
  0x60   :  { %545 = vmatpush.msra.mxu1 %v500_v50  ;;  %568 = vmatpush.msra.mxu2 %v499_v49 }
  0x61   :  { %588 = vmatpush.msra.mxu3 %v500_v50  ;;  %526 = vmatpush.msra.mxu0 %v497_v52 }
  0x62   :  { %546 = vmatpush.msra.mxu1 %v498_v53  ;;  %569 = vmatpush.msra.mxu2 %v497_v52 }
  0x63   :  { %589 = vmatpush.msra.mxu3 %v498_v53  ;;  %527 = vmatpush.msra.mxu0 %v495_v56 }
  0x64   :  { %547 = vmatpush.msra.mxu1 %v496_v57  ;;  %570 = vmatpush.msra.mxu2 %v495_v56 }
  0x65   :  { %590 = vmatpush.msra.mxu3 %v496_v57  ;;  %528 = vmatpush.msra.mxu0 %v493_v58 }
  0x66   :  { %548 = vmatpush.msra.mxu1 %v494_v59  ;;  %571 = vmatpush.msra.mxu2 %v493_v58 }
  0x67   :  { %591 = vmatpush.msra.mxu3 %v494_v59 }
  0xb2   :  { %v291_v5 = vpop.f32.mrf.mxu0 }
  0xb3   :  { %v304_v6 = vpop.f32.mrf.mxu1 }
  0xb4   :  { %v1045_v7 = vadd.f32 %v304_v6, %v291_v5 }
  0xb6   :  { %v334_v8 = vrot.slane %v1045_v7, 4  ;;  %v346_v9 = vmul.f32 %v1045_v7, %v1045_v7 }
  0xb8   :  { %v335_v10 = vadd.f32 %v334_v8, %v1045_v7  ;;  %v348_v11 = vrot.slane %v346_v9, 4 }
  0xba   :  { %v317_v12 = vpop.f32.mrf.mxu2  ;;  %v293_v14 = vpop.f32.mrf.mxu0  ;;  %v336_v15 = vrot.slane %v335_v10, 2  ;;  %v349_v16 = vadd.f32 %v348_v11, %v346_v9 }
  0xbb   :  { %v330_v13 = vpop.f32.mrf.mxu3  ;;  %v306_v18 = vpop.f32.mrf.mxu1 }
  0xbc   :  { %v1051_v17 = vadd.f32 %v330_v13, %v317_v12  ;;  %v337_v19 = vadd.f32 %v336_v15, %v335_v10  ;;  %v350_v20 = vrot.slane %v349_v16, 2  ;;  %v477_v12 = vld [vmem:[#allocation4] sm:$0x1]  ;;  %v490_v15 = vld [vmem:[#allocation6] sm:$0x1] }
  0xbe   :  { %v340_v21 = vrot.slane %v1051_v17, 4  ;;  %v347_v22 = vmul.f32 %v1051_v17, %v1051_v17  ;;  %v338_v23 = vrot.slane %v337_v19, 1  ;;  %v351_v24 = vadd.f32 %v350_v20, %v349_v16 }
  0xc0   :  { %v341_v25 = vadd.f32 %v340_v21, %v1051_v17  ;;  %v354_v26 = vrot.slane %v347_v22, 4  ;;  %v339_v27 = vadd.f32 %v338_v23, %v337_v19  ;;  %v352_v28 = vrot.slane %v351_v24, 1 }
  0xc2   :  { %v319_v29 = vpop.f32.mrf.mxu2  ;;  %v342_v30 = vrot.slane %v341_v25, 2  ;;  %v355_v31 = vadd.f32 %v354_v26, %v347_v22  ;;  %408 = vmatmul.f32.vlgmr.msrb.gmra.mxu0 %v339_v27  ;;  %v353_v33 = vadd.f32 %v352_v28, %v351_v24 }
  0xc3   :  { %v332_v32 = vpop.f32.mrf.mxu3 }
  0xc4   :  { %v343_v34 = vadd.f32 %v342_v30, %v341_v25  ;;  %v356_v35 = vrot.slane %v355_v31, 2  ;;  %448 = vmatmul.f32.vlgmr.msrb.gmra.mxu2 %v353_v33 }
  0xc6   :  { %v344_v36 = vrot.slane %v343_v34, 1  ;;  %v357_v37 = vadd.f32 %v356_v35, %v355_v31 }
  0xc8   :  { %v345_v38 = vadd.f32 %v344_v36, %v343_v34  ;;  %v358_v39 = vrot.slane %v357_v37, 1 }
  0xca   :  { %428 = vmatmul.f32.vlgmr.msrb.gmra.mxu1 %v345_v38  ;;  %v359_v40 = vadd.f32 %v358_v39, %v357_v37 }
  0xcc   :  { %468 = vmatmul.f32.vlgmr.msrb.gmra.mxu3 %v359_v40 }
 0x13f   :  { %v409_v54 = vpop.f32.mrf.mxu0 }
 0x147   :  { %v429_v51 = vpop.f32.mrf.mxu1  ;;  %v449_v61 = vpop.f32.mrf.mxu2 }
 0x148   :  { %v430_v55 = vadd.f32 %v429_v51, %v409_v54 }
 0x14a   :  { %v472_v60 = vmul.f32 0.03125, %v430_v55 }
 0x14c   :  { %v474_v0 = vmul.f32 %v472_v60, %v472_v60 }
 0x14f   :  { %v469_v62 = vpop.f32.mrf.mxu3 }
 0x150   :  { %v470_v63 = vadd.f32 %v469_v62, %v449_v61 }
 0x152   :  { %v473_v1 = vmul.f32 0.03125, %v470_v63 }
 0x154   :  { %v475_v2 = vsub.f32 %v473_v1, %v474_v0 }
 0x156   :  { %v476_v3 = vmax.f32 %v475_v2, 0.0 }
 0x158   :  { %v478_v4 = vadd.f32 1e-05, %v476_v3 }
 0x15a   :  { %787 = vrsqrt.f32 %v478_v4  ;;  %vm485_vm1 = vweird.f32 %v478_v4 }
 0x160   :  { %v788_v5 = vpop.eup %787 }
 0x161   :  { %v480_v6 = vmul.f32 %v788_v5, %v478_v4  ;;  %vm486_vm0 = vweird.f32 %v788_v5 }
 0x162   :  { %vm487_vm2 = vmor %vm485_vm1, %vm486_vm0 }
 0x163   :  { %v481_v8 = vmul.f32 %v788_v5, %v480_v6 }
 0x165   :  { %v482_v9 = vmul.f32 0.5, %v481_v8 }
 0x167   :  { %v483_v10 = vsub.f32 1.5, %v482_v9 }
 0x169   :  { %v484_v11 = vmul.f32 %v788_v5, %v483_v10 }
 0x16b   :  { %v488_v13 = vsel %vm487_vm2, %v788_v5, %v484_v11 }
 0x16c   :  { %v489_v14 = vmul.f32 %v488_v13, %v477_v12 }
 0x16e   :  { %743 = vmatmul.msk.f32.vlgmr.msra.gmra.mxu0 %vm509_vm3, %v489_v14  ;;  %744 = vmatmul.msk.f32.vlgmr.msra.gmra.mxu1 %vm509_vm3, %v489_v14  ;;  %v491_v16 = vmul.f32 %v489_v14, %v472_v60 }
 0x170   :  { %v492_v18 = vsub.f32 %v490_v15, %v491_v16 }
 0x172   :  { %745 = vmatmul.msk.f32.vlgmr.msra.gmra.mxu2 %vm509_vm3, %v492_v18  ;;  %746 = vmatmul.msk.f32.vlgmr.msra.gmra.mxu3 %vm509_vm3, %v492_v18 }
 0x1eb   :  { %v530_v19 = vpop.f32.mrf.mxu0  ;;  %v550_v20 = vpop.f32.mrf.mxu1 }
 0x1ec   :  { %v596_v21 = vperm.slane %v530_v19, 0  ;;  %v597_v22 = vperm.slane %v550_v20, 0 }
 0x1ee   :  { %v598_v25 = vmul.f32 %v596_v21, %v1045_v7  ;;  %v599_v26 = vmul.f32 %v597_v22, %v1051_v17 }
 0x1f5   :  { %v573_v23 = vpop.f32.mrf.mxu2  ;;  %v593_v24 = vpop.f32.mrf.mxu3 }
 0x1f6   :  { %v600_v27 = vperm.slane %v573_v23, 0  ;;  %v601_v28 = vperm.slane %v593_v24, 0 }
 0x1f8   :  { %v602_v29 = vadd.f32 %v600_v27, %v598_v25  ;;  %v603_v30 = vadd.f32 %v601_v28, %v599_v26 }
 0x1fa   :  { %v604_v31 = vmax.f32 %v602_v29, 0.0  ;;  %v605_v32 = vmax.f32 %v603_v30, 0.0 }
 0x1fc   :  { %v606_v33 = vpack.c.bf16 %v605_v32, %v604_v31 }
 0x1fe   :  { %607 = vst [vmem:[%s1068_s6] sm:$0xff] %v606_v33 }
 0x1ff   :  { %612 = vsyncpa [#allocation3], 1 }
 0x200   :  { %613 = vsyncpa [#allocation5], 1 }
 0x201   :  { %614 = vsyncpa [#allocation8], 1 }

// kernel: my_generator_forward.6
= control target key start
LH: loop header
LB: loop body
LE: loop exit
PB: predicated region body
PF: predicated region fallthrough
CT: control target
= control target key end

     0   :  { %11 = vsyncpa [#allocation3], 0  ;;  %s1778_s0 = inlined_call_operand.vmem [shape: bf16[32,1024], index: 0, kind: input, shape index: {}]   ;;  %s1779_s1 = inlined_call_operand.hbm [shape: bf16[1024,128], index: 1, kind: input, shape index: {}]   ;;  %s1780_s2 = inlined_call_operand.hbm [shape: f32[1,32], index: 2, kind: input, shape index: {}]   ;;  %s1781_s3 = inlined_call_operand.hbm [shape: f32[1,32], index: 3, kind: input, shape index: {}]   ;;  %s1782_s4 = inlined_call_operand.vmem [shape: f32[128,32], index: 4, kind: input, shape index: {}]   ;;  %s1783_s5 = inlined_call_operand.hbm [shape: f32[32,128], index: 5, kind: input, shape index: {}]   ;;  %s1784_s6 = inlined_call_operand.vmem [shape: bf16[32,128], index: 6, kind: output, shape index: {}]  }
   0x1   :  { %12 = vsyncpa [#allocation5], 0  ;;  %s34_s23 = sshll.u32 %s1780_s2, 4  ;;  %s35_s23 = int_to_ptr.hbm [resolvable:$true] %s34_s23 }
   0x2   :  { %13 = vsyncpa [#allocation8], 0  ;;  %s1546_s24 = smov [#allocation4]   ;;  %s20_s28 = sshll.u32 %s1779_s1, 4  ;;  %s21_s28 = int_to_ptr.hbm [resolvable:$true] %s20_s28 }
   0x3   :  { %s36_s25 = sshll.u32 %s1546_s24, 4  ;;  %s1547_s29 = smov [#allocation2]   ;;  %s37_s25 = int_to_ptr.vmem [resolvable:$true] %s36_s25 }
   0x4   :  { %39 = dma.hbm_to_vmem [thread:$0]  %s35_s23, 16, %s37_s25, [#allocation5]  }
   0x5   :  { %s22_s30 = sshll.u32 %s1547_s29, 4  ;;  %s1548_s7 = smov 64   ;;  %s23_s30 = int_to_ptr.vmem [resolvable:$true] %s22_s30 }
   0x6   :  { %s1549_s8 = smov 4   ;;  %s45_s2 = sshll.u32 %s1781_s3, 4  ;;  %s46_s2 = int_to_ptr.hbm [resolvable:$true] %s45_s2 }
   0x7   :  { %28 = dma.hbm_to_vmem [thread:$0]  %s21_s28, 8192, %s23_s30, [#allocation3], %s1548_s7, %s1548_s7, %s1549_s8  }
   0x8   :  { %s1550_s11 = smov [#allocation6]   ;;  %s57_s1 = sshll.u32 %s1783_s5, 4  ;;  %s58_s1 = int_to_ptr.hbm [resolvable:$true] %s57_s1 }
   0x9   :  { %s47_s12 = sshll.u32 %s1550_s11, 4  ;;  %s1551_s15 = smov [#allocation7]   ;;  %s48_s12 = int_to_ptr.vmem [resolvable:$true] %s47_s12 }
   0xa   :  { %50 = dma.hbm_to_vmem [thread:$0]  %s46_s2, 16, %s48_s12, [#allocation5]  }
   0xb   :  { %s59_s16 = sshll.u32 %s1551_s15, 4  ;;  %s1552_s17 = smov 128   ;;  %s60_s16 = int_to_ptr.vmem [resolvable:$true] %s59_s16 }
   0xc   :  { %s1553_s18 = smov 8  }
   0xd   :  { %65 = dma.hbm_to_vmem [thread:$0]  %s58_s1, 512, %s60_s16, [#allocation8], %s1552_s17, %s1552_s17, %s1553_s18  }
   0xe   :  { %1540 = dma.done.wait [#allocation3], 8192  }
   0xf   :  { %1541 = vsyncadd [#allocation3], 4294959104 }
  0x10   :  { %1542 = dma.done.wait [#allocation5], 32  }
  0x11   :  { %1543 = vsyncadd [#allocation5], 4294967264 }
  0x12   :  { %1544 = dma.done.wait [#allocation8], 512  }
  0x13   :  { %1545 = vsyncadd [#allocation8], 4294966784  ;;  %v1366_v0 = vld [vmem:[#allocation2 + $0x38] sm:$0xff]  ;;  %v1365_v4 = vld [vmem:[#allocation2 + $0x30] sm:$0xff]  ;;  %vm945_vm3 = vcmask 261120  }
  0x14   :  { %v1374_v1 = vld [vmem:[#allocation2 + $0x78] sm:$0xff]  ;;  %690 = vmatpush.bf16.msra.mxu0 %v1366_v0  ;;  %v1373_v5 = vld [vmem:[#allocation2 + $0x70] sm:$0xff]  ;;  %v1364_v8 = vld [vmem:[#allocation2 + $0x28] sm:$0xff] }
  0x15   :  { %v1382_v2 = vld [vmem:[#allocation2 + $0xb8] sm:$0xff]  ;;  %709 = vmatpush.bf16.msra.mxu1 %v1374_v1  ;;  %v1381_v6 = vld [vmem:[#allocation2 + $0xb0] sm:$0xff]  ;;  %v1372_v9 = vld [vmem:[#allocation2 + $0x68] sm:$0xff] }
  0x16   :  { %v1390_v3 = vld [vmem:[#allocation2 + $0xf8] sm:$0xff]  ;;  %728 = vmatpush.bf16.msra.mxu2 %v1382_v2  ;;  %v1389_v7 = vld [vmem:[#allocation2 + $0xf0] sm:$0xff]  ;;  %v1380_v10 = vld [vmem:[#allocation2 + $0xa8] sm:$0xff] }
  0x17   :  { %747 = vmatpush.bf16.msra.mxu3 %v1390_v3  ;;  %v1388_v11 = vld [vmem:[#allocation2 + $0xe8] sm:$0xff]  ;;  %v1363_v12 = vld [vmem:[#allocation2 + $0x20] sm:$0xff]  ;;  %v1362_v16 = vld [vmem:[#allocation2 + $0x18] sm:$0xff] }
  0x18   :  { %691 = vmatpush.bf16.msra.mxu0 %v1365_v4  ;;  %v1371_v13 = vld [vmem:[#allocation2 + $0x60] sm:$0xff]  ;;  %v1370_v17 = vld [vmem:[#allocation2 + $0x58] sm:$0xff]  ;;  %v1361_v20 = vld [vmem:[#allocation2 + $0x10] sm:$0xff] }
  0x19   :  { %710 = vmatpush.bf16.msra.mxu1 %v1373_v5  ;;  %v1379_v14 = vld [vmem:[#allocation2 + $0xa0] sm:$0xff]  ;;  %v1378_v18 = vld [vmem:[#allocation2 + $0x98] sm:$0xff]  ;;  %v1369_v21 = vld [vmem:[#allocation2 + $0x50] sm:$0xff] }
  0x1a   :  { %729 = vmatpush.bf16.msra.mxu2 %v1381_v6  ;;  %v1387_v15 = vld [vmem:[#allocation2 + $0xe0] sm:$0xff]  ;;  %v1386_v19 = vld [vmem:[#allocation2 + $0xd8] sm:$0xff]  ;;  %v1377_v22 = vld [vmem:[#allocation2 + $0x90] sm:$0xff] }
  0x1b   :  { %748 = vmatpush.bf16.msra.mxu3 %v1389_v7  ;;  %v1385_v23 = vld [vmem:[#allocation2 + $0xd0] sm:$0xff]  ;;  %v1360_v24 = vld [vmem:[#allocation2 + $0x8] sm:$0xff]  ;;  %v1359_v28 = vld [vmem:[#allocation2] sm:$0xff] }
  0x1c   :  { %692 = vmatpush.bf16.msra.mxu0 %v1364_v8  ;;  %v1368_v25 = vld [vmem:[#allocation2 + $0x48] sm:$0xff]  ;;  %v1367_v29 = vld [vmem:[#allocation2 + $0x40] sm:$0xff]  ;;  %v1414_v40 = vld [vmem:[#allocation2 + $0x1b8] sm:$0xff] }
  0x1d   :  { %711 = vmatpush.bf16.msra.mxu1 %v1372_v9  ;;  %v1376_v26 = vld [vmem:[#allocation2 + $0x88] sm:$0xff]  ;;  %v1375_v30 = vld [vmem:[#allocation2 + $0x80] sm:$0xff]  ;;  %v1398_v41 = vld [vmem:[#allocation2 + $0x138] sm:$0xff] }
  0x1e   :  { %730 = vmatpush.bf16.msra.mxu2 %v1380_v10  ;;  %v1384_v27 = vld [vmem:[#allocation2 + $0xc8] sm:$0xff]  ;;  %v1383_v31 = vld [vmem:[#allocation2 + $0xc0] sm:$0xff]  ;;  %v1406_v46 = vld [vmem:[#allocation2 + $0x178] sm:$0xff] }
  0x1f   :  { %749 = vmatpush.bf16.msra.mxu3 %v1388_v11  ;;  %v1023_v32 = vld [vmem:[%s1778_s0] sm:$0xf]  ;;  %v1343_v34 = vld [vmem:[%s1778_s0 + $0x4] sm:$0xf]  ;;  %v1031_v36 = vld [vmem:[%s1778_s0 + $0x8] sm:$0xf] }
  0x20   :  { %693 = vmatpush.bf16.msra.mxu0 %v1363_v12  ;;  %v1347_v33 = vld [vmem:[%s1778_s0 + $0x1c] sm:$0xf0]  ;;  %v1025_v35 = vld [vmem:[%s1778_s0 + $0x20] sm:$0xf0]  ;;  %v1348_v37 = vld [vmem:[%s1778_s0 + $0x24] sm:$0xf0] }
  0x21   :  { %712 = vmatpush.bf16.msra.mxu1 %v1371_v13  ;;  %v1344_v38 = vld [vmem:[%s1778_s0 + $0xc] sm:$0xf]  ;;  %v1024_v42 = vor.u32 %v1347_v33, %v1023_v32  ;;  %v1028_v43 = vor.u32 %v1343_v34, %v1025_v35  ;;  %v1032_v44 = vor.u32 %v1348_v37, %v1031_v36  ;;  %v1422_v47 = vld [vmem:[#allocation2 + $0x1f8] sm:$0xff]  ;;  %v1413_v48 = vld [vmem:[#allocation2 + $0x1b0] sm:$0xff] }
  0x22   :  { %731 = vmatpush.bf16.msra.mxu2 %v1379_v14  ;;  %v1033_v39 = vld [vmem:[%s1778_s0 + $0x28] sm:$0xf0]  ;;  %v1397_v49 = vld [vmem:[#allocation2 + $0x130] sm:$0xff]  ;;  %v1411_v56 = vld [vmem:[#allocation2 + $0x1a0] sm:$0xff] }
  0x23   :  { %750 = vmatpush.bf16.msra.mxu3 %v1387_v15  ;;  %v1036_v45 = vor.u32 %v1344_v38, %v1033_v39  ;;  %v1405_v50 = vld [vmem:[#allocation2 + $0x170] sm:$0xff]  ;;  %v1412_v52 = vld [vmem:[#allocation2 + $0x1a8] sm:$0xff]  ;;  %v1395_v57 = vld [vmem:[#allocation2 + $0x120] sm:$0xff] }
  0x24   :  { %694 = vmatpush.bf16.msra.mxu0 %v1362_v16  ;;  %v1421_v51 = vld [vmem:[#allocation2 + $0x1f0] sm:$0xff]  ;;  %v1396_v53 = vld [vmem:[#allocation2 + $0x128] sm:$0xff]  ;;  %v1403_v58 = vld [vmem:[#allocation2 + $0x160] sm:$0xff] }
  0x25   :  { %713 = vmatpush.bf16.msra.mxu1 %v1370_v17  ;;  %v1404_v54 = vld [vmem:[#allocation2 + $0x168] sm:$0xff]  ;;  %v1419_v59 = vld [vmem:[#allocation2 + $0x1e0] sm:$0xff]  ;;  %v1410_v4 = vld [vmem:[#allocation2 + $0x198] sm:$0xff] }
  0x26   :  { %732 = vmatpush.bf16.msra.mxu2 %v1378_v18  ;;  %v1420_v55 = vld [vmem:[#allocation2 + $0x1e8] sm:$0xff]  ;;  %v1055_v60 = vld [vmem:[%s1778_s0 + $0x40] sm:$0xf]  ;;  %v1351_v62 = vld [vmem:[%s1778_s0 + $0x44] sm:$0xf] }
  0x27   :  { %751 = vmatpush.bf16.msra.mxu3 %v1386_v19  ;;  %v1355_v61 = vld [vmem:[%s1778_s0 + $0x5c] sm:$0xf0]  ;;  %v1057_v63 = vld [vmem:[%s1778_s0 + $0x60] sm:$0xf0]  ;;  %v1063_v0 = vld [vmem:[%s1778_s0 + $0x48] sm:$0xf] }
  0x28   :  { %695 = vmatpush.bf16.msra.mxu0 %v1361_v20  ;;  %v1356_v1 = vld [vmem:[%s1778_s0 + $0x64] sm:$0xf0]  ;;  %v1352_v2 = vld [vmem:[%s1778_s0 + $0x4c] sm:$0xf]  ;;  %v1394_v5 = vld [vmem:[#allocation2 + $0x118] sm:$0xff]  ;;  %v1056_v6 = vor.u32 %v1355_v61, %v1055_v60  ;;  %v1060_v7 = vor.u32 %v1351_v62, %v1057_v63 }
  0x29   :  { %714 = vmatpush.bf16.msra.mxu1 %v1369_v21  ;;  %v1065_v3 = vld [vmem:[%s1778_s0 + $0x68] sm:$0xf0]  ;;  %v1064_v8 = vor.u32 %v1356_v1, %v1063_v0  ;;  %v1402_v10 = vld [vmem:[#allocation2 + $0x158] sm:$0xff]  ;;  %v1409_v12 = vld [vmem:[#allocation2 + $0x190] sm:$0xff] }
  0x2a   :  { %733 = vmatpush.bf16.msra.mxu2 %v1377_v22  ;;  %v1068_v9 = vor.u32 %v1352_v2, %v1065_v3  ;;  %v1418_v11 = vld [vmem:[#allocation2 + $0x1d8] sm:$0xff]  ;;  %v1393_v13 = vld [vmem:[#allocation2 + $0x110] sm:$0xff]  ;;  %v1408_v16 = vld [vmem:[#allocation2 + $0x188] sm:$0xff] }
  0x2b   :  { %752 = vmatpush.bf16.msra.mxu3 %v1385_v23  ;;  %v1401_v14 = vld [vmem:[#allocation2 + $0x150] sm:$0xff]  ;;  %v1392_v17 = vld [vmem:[#allocation2 + $0x108] sm:$0xff]  ;;  %v1407_v20 = vld [vmem:[#allocation2 + $0x180] sm:$0xff] }
  0x2c   :  { %696 = vmatpush.bf16.msra.mxu0 %v1360_v24  ;;  %v1417_v15 = vld [vmem:[#allocation2 + $0x1d0] sm:$0xff]  ;;  %v1400_v18 = vld [vmem:[#allocation2 + $0x148] sm:$0xff]  ;;  %v1391_v21 = vld [vmem:[#allocation2 + $0x100] sm:$0xff] }
  0x2d   :  { %715 = vmatpush.bf16.msra.mxu1 %v1368_v25  ;;  %v1416_v19 = vld [vmem:[#allocation2 + $0x1c8] sm:$0xff]  ;;  %v1399_v22 = vld [vmem:[#allocation2 + $0x140] sm:$0xff]  ;;  %v1039_v24 = vld [vmem:[%s1778_s0 + $0x10] sm:$0xf] }
  0x2e   :  { %734 = vmatpush.bf16.msra.mxu2 %v1376_v26  ;;  %v1415_v23 = vld [vmem:[#allocation2 + $0x1c0] sm:$0xff]  ;;  %v1349_v25 = vld [vmem:[%s1778_s0 + $0x2c] sm:$0xf0]  ;;  %v1345_v26 = vld [vmem:[%s1778_s0 + $0x14] sm:$0xf] }
  0x2f   :  { %753 = vmatpush.bf16.msra.mxu3 %v1384_v27  ;;  %v1041_v27 = vld [vmem:[%s1778_s0 + $0x30] sm:$0xf0]  ;;  %v1040_v32 = vor.u32 %v1349_v25, %v1039_v24  ;;  %v1071_v36 = vld [vmem:[%s1778_s0 + $0x50] sm:$0xf]  ;;  %v877_v60 = vld [vmem:[%s1782_s4 + $0x68] sm:$0xff] }
  0x30   :  { %697 = vmatpush.bf16.msra.mxu0 %v1359_v28  ;;  %v1047_v28 = vld [vmem:[%s1778_s0 + $0x18] sm:$0xf]  ;;  %v1044_v33 = vor.u32 %v1345_v26, %v1041_v27  ;;  %v1357_v37 = vld [vmem:[%s1778_s0 + $0x6c] sm:$0xf0]  ;;  %v1353_v38 = vld [vmem:[%s1778_s0 + $0x54] sm:$0xf] }
  0x31   :  { %716 = vmatpush.bf16.msra.mxu1 %v1367_v29  ;;  %v1350_v29 = vld [vmem:[%s1778_s0 + $0x34] sm:$0xf0]  ;;  %v1073_v39 = vld [vmem:[%s1778_s0 + $0x70] sm:$0xf0]  ;;  %v876_v1 = vld [vmem:[%s1782_s4 + $0x60] sm:$0xff] }
  0x32   :  { %735 = vmatpush.bf16.msra.mxu2 %v1375_v30  ;;  %v1346_v30 = vld [vmem:[%s1778_s0 + $0x1c] sm:$0xf]  ;;  %v1048_v34 = vor.u32 %v1350_v29, %v1047_v28  ;;  %v874_v3 = vld [vmem:[%s1782_s4 + $0x50] sm:$0xff]  ;;  %v865_v26 = vld [vmem:[%s1782_s4 + $0x8] sm:$0xff] }
  0x33   :  { %754 = vmatpush.bf16.msra.mxu3 %v1383_v31  ;;  %698 = vmatmul.bf16.vlgmr.msra.gmra.mxu0 %v1024_v42  ;;  %v1049_v31 = vld [vmem:[%s1778_s0 + $0x38] sm:$0xf0]  ;;  %v866_v25 = vld [vmem:[%s1782_s4 + $0x10] sm:$0xff]  ;;  %v864_v29 = vld [vmem:[%s1782_s4] sm:$0xff] }
  0x34   :  { %766 = vmatpush.bf16.msrb.mxu0 %v1398_v41  ;;  %717 = vmatmul.bf16.vlgmr.msra.gmra.mxu1 %v1028_v43  ;;  %v1052_v35 = vor.u32 %v1346_v30, %v1049_v31  ;;  %v1358_v41 = vld [vmem:[%s1778_s0 + $0x74] sm:$0xf0]  ;;  %v1354_v42 = vld [vmem:[%s1778_s0 + $0x5c] sm:$0xf] }
  0x35   :  { %736 = vmatmul.bf16.vlgmr.msra.gmra.mxu2 %v1032_v44  ;;  %785 = vmatpush.bf16.msrb.mxu1 %v1406_v46  ;;  %v1081_v43 = vld [vmem:[%s1778_s0 + $0x78] sm:$0xf0]  ;;  %v1072_v44 = vor.u32 %v1357_v37, %v1071_v36 }
  0x36   :  { %804 = vmatpush.bf16.msrb.mxu2 %v1414_v40  ;;  %755 = vmatmul.bf16.vlgmr.msra.gmra.mxu3 %v1036_v45  ;;  %v1079_v40 = vld [vmem:[%s1778_s0 + $0x58] sm:$0xf]  ;;  %v1076_v45 = vor.u32 %v1353_v38, %v1073_v39 }
  0x37   :  { %823 = vmatpush.bf16.msrb.mxu3 %v1422_v47  ;;  %v1080_v46 = vor.u32 %v1358_v41, %v1079_v40  ;;  %v1084_v47 = vor.u32 %v1354_v42, %v1081_v43  ;;  %v875_v2 = vld [vmem:[%s1782_s4 + $0x58] sm:$0xff] }
  0x38   :  { %767 = vmatpush.bf16.msrb.mxu0 %v1397_v49 }
  0x39   :  { %786 = vmatpush.bf16.msrb.mxu1 %v1405_v50 }
  0x3a   :  { %805 = vmatpush.bf16.msrb.mxu2 %v1413_v48 }
  0x3b   :  { %824 = vmatpush.bf16.msrb.mxu3 %v1421_v51 }
  0x3c   :  { %768 = vmatpush.bf16.msrb.mxu0 %v1396_v53 }
  0x3d   :  { %787 = vmatpush.bf16.msrb.mxu1 %v1404_v54 }
  0x3e   :  { %806 = vmatpush.bf16.msrb.mxu2 %v1412_v52 }
  0x3f   :  { %825 = vmatpush.bf16.msrb.mxu3 %v1420_v55 }
  0x40   :  { %769 = vmatpush.bf16.msrb.mxu0 %v1395_v57 }
  0x41   :  { %788 = vmatpush.bf16.msrb.mxu1 %v1403_v58  ;;  %v879_v58 = vld [vmem:[%s1782_s4 + $0x78] sm:$0xff] }
  0x42   :  { %807 = vmatpush.bf16.msrb.mxu2 %v1411_v56 }
  0x43   :  { %826 = vmatpush.bf16.msrb.mxu3 %v1419_v59  ;;  %703 = vmatmul.bf16.gmra.mxu0 %v1056_v6  ;;  %v878_v59 = vld [vmem:[%s1782_s4 + $0x70] sm:$0xff] }
  0x44   :  { %770 = vmatpush.bf16.msrb.mxu0 %v1394_v5  ;;  %722 = vmatmul.bf16.gmra.mxu1 %v1060_v7 }
  0x45   :  { %741 = vmatmul.bf16.gmra.mxu2 %v1064_v8  ;;  %789 = vmatpush.bf16.msrb.mxu1 %v1402_v10  ;;  %v871_v10 = vld [vmem:[%s1782_s4 + $0x38] sm:$0xff] }
  0x46   :  { %808 = vmatpush.bf16.msrb.mxu2 %v1410_v4  ;;  %760 = vmatmul.bf16.gmra.mxu3 %v1068_v9  ;;  %v873_v4 = vld [vmem:[%s1782_s4 + $0x48] sm:$0xff]  ;;  %v872_v9 = vld [vmem:[%s1782_s4 + $0x40] sm:$0xff] }
  0x47   :  { %827 = vmatpush.bf16.msrb.mxu3 %v1418_v11  ;;  %v870_v11 = vld [vmem:[%s1782_s4 + $0x30] sm:$0xff] }
  0x48   :  { %771 = vmatpush.bf16.msrb.mxu0 %v1393_v13  ;;  %v869_v13 = vld [vmem:[%s1782_s4 + $0x28] sm:$0xff] }
  0x49   :  { %790 = vmatpush.bf16.msrb.mxu1 %v1401_v14 }
  0x4a   :  { %809 = vmatpush.bf16.msrb.mxu2 %v1409_v12 }
  0x4b   :  { %828 = vmatpush.bf16.msrb.mxu3 %v1417_v15 }
  0x4c   :  { %772 = vmatpush.bf16.msrb.mxu0 %v1392_v17 }
  0x4d   :  { %791 = vmatpush.bf16.msrb.mxu1 %v1400_v18  ;;  %v868_v18 = vld [vmem:[%s1782_s4 + $0x20] sm:$0xff] }
  0x4e   :  { %810 = vmatpush.bf16.msrb.mxu2 %v1408_v16 }
  0x4f   :  { %829 = vmatpush.bf16.msrb.mxu3 %v1416_v19 }
  0x50   :  { %773 = vmatpush.bf16.msrb.mxu0 %v1391_v21 }
  0x51   :  { %792 = vmatpush.bf16.msrb.mxu1 %v1399_v22  ;;  %v867_v22 = vld [vmem:[%s1782_s4 + $0x18] sm:$0xff] }
  0x52   :  { %811 = vmatpush.bf16.msrb.mxu2 %v1407_v20 }
  0x53   :  { %830 = vmatpush.bf16.msrb.mxu3 %v1415_v23  ;;  %774 = vmatmul.bf16.vlgmr.msrb.gmra.mxu0 %v1040_v32 }
  0x54   :  { %793 = vmatmul.bf16.vlgmr.msrb.gmra.mxu1 %v1044_v33  ;;  %880 = vmatpush.msra.mxu0 %v879_v58 }
  0x55   :  { %812 = vmatmul.bf16.vlgmr.msrb.gmra.mxu2 %v1048_v34  ;;  %900 = vmatpush.msra.mxu1 %v879_v58 }
  0x56   :  { %831 = vmatmul.bf16.vlgmr.msrb.gmra.mxu3 %v1052_v35  ;;  %881 = vmatpush.msra.mxu0 %v878_v59 }
  0x57   :  { %901 = vmatpush.msra.mxu1 %v878_v59 }
  0x58   :  { %882 = vmatpush.msra.mxu0 %v877_v60 }
  0x59   :  { %902 = vmatpush.msra.mxu1 %v877_v60 }
  0x5a   :  { %883 = vmatpush.msra.mxu0 %v876_v1 }
  0x5b   :  { %903 = vmatpush.msra.mxu1 %v876_v1 }
  0x5c   :  { %884 = vmatpush.msra.mxu0 %v875_v2 }
  0x5d   :  { %904 = vmatpush.msra.mxu1 %v875_v2 }
  0x5e   :  { %885 = vmatpush.msra.mxu0 %v874_v3 }
  0x5f   :  { %905 = vmatpush.msra.mxu1 %v874_v3 }
  0x60   :  { %886 = vmatpush.msra.mxu0 %v873_v4 }
  0x61   :  { %906 = vmatpush.msra.mxu1 %v873_v4 }
  0x62   :  { %887 = vmatpush.msra.mxu0 %v872_v9 }
  0x63   :  { %779 = vmatmul.bf16.gmra.mxu0 %v1072_v44  ;;  %907 = vmatpush.msra.mxu1 %v872_v9 }
  0x64   :  { %798 = vmatmul.bf16.gmra.mxu1 %v1076_v45  ;;  %888 = vmatpush.msra.mxu0 %v871_v10 }
  0x65   :  { %817 = vmatmul.bf16.gmra.mxu2 %v1080_v46  ;;  %908 = vmatpush.msra.mxu1 %v871_v10 }
  0x66   :  { %836 = vmatmul.bf16.gmra.mxu3 %v1084_v47  ;;  %889 = vmatpush.msra.mxu0 %v870_v11 }
  0x67   :  { %909 = vmatpush.msra.mxu1 %v870_v11 }
  0x68   :  { %890 = vmatpush.msra.mxu0 %v869_v13 }
  0x69   :  { %910 = vmatpush.msra.mxu1 %v869_v13 }
  0x6a   :  { %891 = vmatpush.msra.mxu0 %v868_v18 }
  0x6b   :  { %911 = vmatpush.msra.mxu1 %v868_v18  ;;  %v944_v18 = vld [vmem:[#allocation7 + $0x18] sm:$0xff] }
  0x6c   :  { %892 = vmatpush.msra.mxu0 %v867_v22  ;;  %961 = vmatpush.msra.mxu2 %v944_v18 }
  0x6d   :  { %912 = vmatpush.msra.mxu1 %v867_v22  ;;  %984 = vmatpush.msra.mxu3 %v944_v18 }
  0x6e   :  { %893 = vmatpush.msra.mxu0 %v866_v25 }
  0x6f   :  { %913 = vmatpush.msra.mxu1 %v866_v25 }
  0x70   :  { %894 = vmatpush.msra.mxu0 %v865_v26 }
  0x71   :  { %914 = vmatpush.msra.mxu1 %v865_v26 }
  0x72   :  { %895 = vmatpush.msra.mxu0 %v864_v29 }
  0x73   :  { %915 = vmatpush.msra.mxu1 %v864_v29 }
  0xb0   :  { %v699_v48 = vpop.f32.mrf.mxu0 }
  0xb1   :  { %v718_v49 = vpop.f32.mrf.mxu1 }
  0xb2   :  { %v719_v19 = vadd.f32 %v718_v49, %v699_v48 }
  0xb8   :  { %v737_v50 = vpop.f32.mrf.mxu2  ;;  %v701_v52 = vpop.f32.mrf.mxu0 }
  0xb9   :  { %v1697_v51 = vpop.f32.mrf.mxu3  ;;  %v720_v53 = vpop.f32.mrf.mxu1  ;;  %v738_v23 = vadd.f32 %v737_v50, %v719_v19  ;;  %v943_v19 = vld [vmem:[#allocation7 + $0x10] sm:$0xff] }
  0xba   :  { %v721_v14 = vadd.f32 %v720_v53, %v701_v52  ;;  %962 = vmatpush.msra.mxu2 %v943_v19  ;;  %985 = vmatpush.msra.mxu3 %v943_v19 }
  0xbb   :  { %v757_v30 = vadd.f32 %v1697_v51, %v738_v23 }
  0xc0   :  { %v739_v54 = vpop.f32.mrf.mxu2  ;;  %v704_v56 = vpop.f32.mrf.mxu0 }
  0xc1   :  { %v758_v55 = vpop.f32.mrf.mxu3  ;;  %v723_v57 = vpop.f32.mrf.mxu1  ;;  %v740_v20 = vadd.f32 %v739_v54, %v721_v14 }
  0xc2   :  { %v724_v21 = vadd.f32 %v723_v57, %v704_v56 }
  0xc3   :  { %v759_v27 = vadd.f32 %v758_v55, %v740_v20  ;;  %v942_v20 = vld [vmem:[#allocation7 + $0x8] sm:$0xff] }
  0xc4   :  { %963 = vmatpush.msra.mxu2 %v942_v20  ;;  %986 = vmatpush.msra.mxu3 %v942_v20 }
  0xc8   :  { %v742_v61 = vpop.f32.mrf.mxu2  ;;  %v706_v63 = vpop.f32.mrf.mxu0 }
  0xc9   :  { %v761_v62 = vpop.f32.mrf.mxu3  ;;  %v725_v0 = vpop.f32.mrf.mxu1  ;;  %v743_v24 = vadd.f32 %v742_v61, %v724_v21  ;;  %v941_v21 = vld [vmem:[#allocation7] sm:$0xff] }
  0xca   :  { %v726_v35 = vadd.f32 %v725_v0, %v706_v63  ;;  %964 = vmatpush.msra.mxu2 %v941_v21  ;;  %987 = vmatpush.msra.mxu3 %v941_v21 }
  0xcb   :  { %v762_v31 = vadd.f32 %v761_v62, %v743_v24 }
  0xd0   :  { %v744_v5 = vpop.f32.mrf.mxu2  ;;  %v775_v7 = vpop.f32.mrf.mxu0 }
  0xd1   :  { %v763_v6 = vpop.f32.mrf.mxu3  ;;  %v794_v8 = vpop.f32.mrf.mxu1  ;;  %v776_v36 = vadd.f32 %v775_v7, %v757_v30  ;;  %v745_v39 = vadd.f32 %v744_v5, %v726_v35  ;;  %v925_v35 = vld [vmem:[#allocation4] sm:$0x1] }
  0xd3   :  { %v795_v41 = vadd.f32 %v794_v8, %v776_v36  ;;  %v764_v45 = vadd.f32 %v763_v6, %v745_v39  ;;  %v938_v39 = vld [vmem:[#allocation6] sm:$0x1] }
  0xd8   :  { %v813_v12 = vpop.f32.mrf.mxu2  ;;  %v777_v16 = vpop.f32.mrf.mxu0 }
  0xd9   :  { %v832_v15 = vpop.f32.mrf.mxu3  ;;  %v796_v17 = vpop.f32.mrf.mxu1  ;;  %v778_v32 = vadd.f32 %v777_v16, %v759_v27  ;;  %v814_v46 = vadd.f32 %v813_v12, %v795_v41 }
  0xdb   :  { %v797_v40 = vadd.f32 %v796_v17, %v778_v32  ;;  %v1750_v52 = vadd.f32 %v832_v15, %v814_v46 }
  0xdd   :  { %v851_v58 = vmul.f32 %v1750_v52, %v1750_v52 }
  0xe0   :  { %v815_v28 = vpop.f32.mrf.mxu2  ;;  %v780_v34 = vpop.f32.mrf.mxu0 }
  0xe1   :  { %v834_v33 = vpop.f32.mrf.mxu3  ;;  %v781_v37 = vadd.f32 %v780_v34, %v762_v31  ;;  %v799_v38 = vpop.f32.mrf.mxu1  ;;  %v816_v42 = vadd.f32 %v815_v28, %v797_v40 }
  0xe3   :  { %v800_v43 = vadd.f32 %v799_v38, %v781_v37  ;;  %v1748_v50 = vadd.f32 %v834_v33, %v816_v42 }
  0xe5   :  { %v852_v55 = vmul.f32 %v1748_v50, %v1748_v50  ;;  %v842_v59 = vadd.f32 %v1748_v50, %v1750_v52 }
  0xe7   :  { %v855_v63 = vadd.f32 %v852_v55, %v851_v58 }
  0xe8   :  { %v818_v44 = vpop.f32.mrf.mxu2  ;;  %v782_v49 = vpop.f32.mrf.mxu0 }
  0xe9   :  { %v819_v47 = vadd.f32 %v818_v44, %v800_v43  ;;  %v837_v48 = vpop.f32.mrf.mxu3  ;;  %v783_v51 = vadd.f32 %v782_v49, %v764_v45  ;;  %v801_v54 = vpop.f32.mrf.mxu1 }
  0xeb   :  { %v1752_v53 = vadd.f32 %v837_v48, %v819_v47  ;;  %v802_v56 = vadd.f32 %v801_v54, %v783_v51 }
  0xed   :  { %v853_v60 = vmul.f32 %v1752_v53, %v1752_v53  ;;  %v843_v0 = vadd.f32 %v842_v59, %v1752_v53 }
  0xef   :  { %v856_v2 = vadd.f32 %v855_v63, %v853_v60 }
  0xf0   :  { %v820_v57 = vpop.f32.mrf.mxu2 }
  0xf1   :  { %v821_v61 = vadd.f32 %v820_v57, %v802_v56  ;;  %v839_v62 = vpop.f32.mrf.mxu3 }
  0xf3   :  { %v1763_v1 = vadd.f32 %v839_v62, %v821_v61 }
  0xf5   :  { %v844_v3 = vadd.f32 %v843_v0, %v1763_v1  ;;  %v854_v4 = vmul.f32 %v1763_v1, %v1763_v1 }
  0xf7   :  { %v845_v5 = vrot.slane %v844_v3, 4  ;;  %v857_v6 = vadd.f32 %v856_v2, %v854_v4 }
  0xf9   :  { %v846_v7 = vadd.f32 %v845_v5, %v844_v3  ;;  %v858_v8 = vrot.slane %v857_v6, 4 }
  0xfb   :  { %v847_v9 = vrot.slane %v846_v7, 2  ;;  %v859_v10 = vadd.f32 %v858_v8, %v857_v6 }
  0xfd   :  { %v848_v11 = vadd.f32 %v847_v9, %v846_v7  ;;  %v860_v12 = vrot.slane %v859_v10, 2 }
  0xff   :  { %v849_v13 = vrot.slane %v848_v11, 1  ;;  %v861_v14 = vadd.f32 %v860_v12, %v859_v10 }
 0x101   :  { %v850_v15 = vadd.f32 %v849_v13, %v848_v11  ;;  %v862_v16 = vrot.slane %v861_v14, 1 }
 0x103   :  { %896 = vmatmul.f32.vlgmr.msra.gmra.mxu0 %v850_v15  ;;  %v863_v17 = vadd.f32 %v862_v16, %v861_v14 }
 0x105   :  { %916 = vmatmul.f32.vlgmr.msra.gmra.mxu1 %v863_v17 }
 0x180   :  { %v897_v22 = vpop.f32.mrf.mxu0 }
 0x181   :  { %v920_v23 = vmul.f32 0.0078125, %v897_v22 }
 0x182   :  { %v917_v24 = vpop.f32.mrf.mxu1 }
 0x183   :  { %v922_v25 = vmul.f32 %v920_v23, %v920_v23  ;;  %v921_v26 = vmul.f32 0.0078125, %v917_v24 }
 0x185   :  { %v923_v27 = vsub.f32 %v921_v26, %v922_v25 }
 0x187   :  { %v924_v28 = vmax.f32 %v923_v27, 0.0 }
 0x189   :  { %v926_v29 = vadd.f32 1e-05, %v924_v28 }
 0x18b   :  { %1442 = vrsqrt.f32 %v926_v29  ;;  %vm933_vm1 = vweird.f32 %v926_v29 }
 0x191   :  { %v1443_v30 = vpop.eup %1442 }
 0x192   :  { %v928_v31 = vmul.f32 %v1443_v30, %v926_v29  ;;  %vm934_vm0 = vweird.f32 %v1443_v30 }
 0x193   :  { %vm935_vm2 = vmor %vm933_vm1, %vm934_vm0 }
 0x194   :  { %v929_v32 = vmul.f32 %v1443_v30, %v928_v31 }
 0x196   :  { %v930_v33 = vmul.f32 0.5, %v929_v32 }
 0x198   :  { %v931_v34 = vsub.f32 1.5, %v930_v33 }
 0x19a   :  { %v932_v36 = vmul.f32 %v1443_v30, %v931_v34 }
 0x19c   :  { %v936_v37 = vsel %vm935_vm2, %v1443_v30, %v932_v36 }
 0x19d   :  { %v937_v38 = vmul.f32 %v936_v37, %v925_v35 }
 0x19f   :  { %v939_v40 = vmul.f32 %v937_v38, %v920_v23  ;;  %1341 = vmatmul.msk.f32.vlgmr.msra.gmra.mxu2 %vm945_vm3, %v937_v38 }
 0x1a1   :  { %v940_v41 = vsub.f32 %v938_v39, %v939_v40 }
 0x1a3   :  { %1342 = vmatmul.msk.f32.vlgmr.msra.gmra.mxu3 %vm945_vm3, %v940_v41 }
 0x222   :  { %v966_v42 = vpop.f32.mrf.mxu2 }
 0x223   :  { %v992_v43 = vperm.slane %v966_v42, 0 }
 0x225   :  { %v993_v44 = vmul.f32 %v992_v43, %v1750_v52  ;;  %v994_v46 = vmul.f32 %v992_v43, %v1748_v50  ;;  %v995_v47 = vmul.f32 %v992_v43, %v1752_v53  ;;  %v996_v48 = vmul.f32 %v992_v43, %v1763_v1 }
 0x226   :  { %v989_v45 = vpop.f32.mrf.mxu3 }
 0x227   :  { %v997_v49 = vperm.slane %v989_v45, 0 }
 0x229   :  { %v998_v51 = vadd.f32 %v997_v49, %v993_v44  ;;  %v999_v54 = vadd.f32 %v997_v49, %v994_v46  ;;  %v1000_v55 = vadd.f32 %v997_v49, %v995_v47  ;;  %v1001_v56 = vadd.f32 %v997_v49, %v996_v48 }
 0x22b   :  { %v1002_v57 = vmax.f32 %v998_v51, 0.0  ;;  %v1003_v58 = vmax.f32 %v999_v54, 0.0  ;;  %v1004_v59 = vmax.f32 %v1000_v55, 0.0  ;;  %v1005_v60 = vmax.f32 %v1001_v56, 0.0 }
 0x22d   :  { %v1426_v61 = vpack.c.bf16 %v1003_v58, %v1002_v57  ;;  %v1431_v62 = vpack.c.bf16 %v1005_v60, %v1004_v59 }
 0x22f   :  { %1427 = vst [vmem:[%s1784_s6] sm:$0xff] %v1426_v61  }
 0x230   :  { %1433 = vst [vmem:[%s1784_s6 + $0x8] sm:$0xff] %v1431_v62  }
 0x231   :  { %1018 = vsyncpa [#allocation3], 1 }
 0x232   :  { %1019 = vsyncpa [#allocation5], 1 }
 0x233   :  { %1020 = vsyncpa [#allocation8], 1 }

// kernel: my_generator_forward.7
= control target key start
LH: loop header
LB: loop body
LE: loop exit
PB: predicated region body
PF: predicated region fallthrough
CT: control target
= control target key end

     0   :  { %11 = vsyncpa [#allocation3], 0  ;;  %s1921_s0 = inlined_call_operand.vmem [shape: bf16[128,512], index: 0, kind: input, shape index: {}]   ;;  %s1922_s1 = inlined_call_operand.hbm [shape: bf16[512,128], index: 1, kind: input, shape index: {}]   ;;  %s1923_s2 = inlined_call_operand.hbm [shape: f32[1,32], index: 2, kind: input, shape index: {}]   ;;  %s1924_s3 = inlined_call_operand.hbm [shape: f32[1,32], index: 3, kind: input, shape index: {}]   ;;  %s1925_s4 = inlined_call_operand.vmem [shape: f32[128,32], index: 4, kind: input, shape index: {}]   ;;  %s1926_s5 = inlined_call_operand.hbm [shape: f32[32,128], index: 5, kind: input, shape index: {}]   ;;  %s1927_s6 = inlined_call_operand.vmem [shape: bf16[128,128], index: 6, kind: output, shape index: {}]  }
   0x1   :  { %12 = vsyncpa [#allocation5], 0  ;;  %s34_s23 = sshll.u32 %s1923_s2, 4  ;;  %s35_s23 = int_to_ptr.hbm [resolvable:$true] %s34_s23 }
   0x2   :  { %13 = vsyncpa [#allocation8], 0  ;;  %s1482_s24 = smov [#allocation4]   ;;  %s20_s28 = sshll.u32 %s1922_s1, 4  ;;  %s21_s28 = int_to_ptr.hbm [resolvable:$true] %s20_s28 }
   0x3   :  { %s36_s25 = sshll.u32 %s1482_s24, 4  ;;  %s1483_s29 = smov [#allocation2]   ;;  %s37_s25 = int_to_ptr.vmem [resolvable:$true] %s36_s25 }
   0x4   :  { %39 = dma.hbm_to_vmem [thread:$0]  %s35_s23, 16, %s37_s25, [#allocation5]  }
   0x5   :  { %s22_s30 = sshll.u32 %s1483_s29, 4  ;;  %s1484_s7 = smov 64   ;;  %s23_s30 = int_to_ptr.vmem [resolvable:$true] %s22_s30 }
   0x6   :  { %s1485_s8 = smov 4   ;;  %s45_s2 = sshll.u32 %s1924_s3, 4  ;;  %s46_s2 = int_to_ptr.hbm [resolvable:$true] %s45_s2 }
   0x7   :  { %28 = dma.hbm_to_vmem [thread:$0]  %s21_s28, 4096, %s23_s30, [#allocation3], %s1484_s7, %s1484_s7, %s1485_s8  }
   0x8   :  { %s1486_s11 = smov [#allocation6]   ;;  %s57_s1 = sshll.u32 %s1926_s5, 4  ;;  %s58_s1 = int_to_ptr.hbm [resolvable:$true] %s57_s1 }
   0x9   :  { %s47_s12 = sshll.u32 %s1486_s11, 4  ;;  %s1487_s15 = smov [#allocation7]   ;;  %s48_s12 = int_to_ptr.vmem [resolvable:$true] %s47_s12 }
   0xa   :  { %50 = dma.hbm_to_vmem [thread:$0]  %s46_s2, 16, %s48_s12, [#allocation5]  }
   0xb   :  { %s59_s16 = sshll.u32 %s1487_s15, 4  ;;  %s1488_s17 = smov 128   ;;  %s60_s16 = int_to_ptr.vmem [resolvable:$true] %s59_s16 }
   0xc   :  { %s1489_s18 = smov 8  }
   0xd   :  { %65 = dma.hbm_to_vmem [thread:$0]  %s58_s1, 512, %s60_s16, [#allocation8], %s1488_s17, %s1488_s17, %s1489_s18  }
   0xe   :  { %1476 = dma.done.wait [#allocation3], 4096  }
   0xf   :  { %1477 = vsyncadd [#allocation3], 4294963200 }
  0x10   :  { %1478 = dma.done.wait [#allocation5], 32  }
  0x11   :  { %1479 = vsyncadd [#allocation5], 4294967264 }
  0x12   :  { %1480 = dma.done.wait [#allocation8], 512  }
  0x13   :  { %1481 = vsyncadd [#allocation8], 4294966784  ;;  %v1298_v0 = vld [vmem:[#allocation2 + $0x38] sm:$0xff]  ;;  %v1297_v4 = vld [vmem:[#allocation2 + $0x30] sm:$0xff]  ;;  %vm865_vm3 = vcmask 261120  }
  0x14   :  { %v1306_v1 = vld [vmem:[#allocation2 + $0x78] sm:$0xff]  ;;  %530 = vmatpush.bf16.msra.mxu0 %v1298_v0  ;;  %v1305_v5 = vld [vmem:[#allocation2 + $0x70] sm:$0xff]  ;;  %v1296_v8 = vld [vmem:[#allocation2 + $0x28] sm:$0xff] }
  0x15   :  { %v1314_v2 = vld [vmem:[#allocation2 + $0xb8] sm:$0xff]  ;;  %579 = vmatpush.bf16.msra.mxu1 %v1306_v1  ;;  %v1313_v6 = vld [vmem:[#allocation2 + $0xb0] sm:$0xff]  ;;  %v1304_v9 = vld [vmem:[#allocation2 + $0x68] sm:$0xff] }
  0x16   :  { %v1322_v3 = vld [vmem:[#allocation2 + $0xf8] sm:$0xff]  ;;  %628 = vmatpush.bf16.msra.mxu2 %v1314_v2  ;;  %v1321_v7 = vld [vmem:[#allocation2 + $0xf0] sm:$0xff]  ;;  %v1312_v10 = vld [vmem:[#allocation2 + $0xa8] sm:$0xff] }
  0x17   :  { %677 = vmatpush.bf16.msra.mxu3 %v1322_v3  ;;  %v1320_v11 = vld [vmem:[#allocation2 + $0xe8] sm:$0xff]  ;;  %v1295_v12 = vld [vmem:[#allocation2 + $0x20] sm:$0xff]  ;;  %v1294_v16 = vld [vmem:[#allocation2 + $0x18] sm:$0xff] }
  0x18   :  { %531 = vmatpush.bf16.msra.mxu0 %v1297_v4  ;;  %v1303_v13 = vld [vmem:[#allocation2 + $0x60] sm:$0xff]  ;;  %v1302_v17 = vld [vmem:[#allocation2 + $0x58] sm:$0xff]  ;;  %v1293_v20 = vld [vmem:[#allocation2 + $0x10] sm:$0xff] }
  0x19   :  { %580 = vmatpush.bf16.msra.mxu1 %v1305_v5  ;;  %v1311_v14 = vld [vmem:[#allocation2 + $0xa0] sm:$0xff]  ;;  %v1310_v18 = vld [vmem:[#allocation2 + $0x98] sm:$0xff]  ;;  %v1301_v21 = vld [vmem:[#allocation2 + $0x50] sm:$0xff] }
  0x1a   :  { %629 = vmatpush.bf16.msra.mxu2 %v1313_v6  ;;  %v1319_v15 = vld [vmem:[#allocation2 + $0xe0] sm:$0xff]  ;;  %v1318_v19 = vld [vmem:[#allocation2 + $0xd8] sm:$0xff]  ;;  %v1309_v22 = vld [vmem:[#allocation2 + $0x90] sm:$0xff] }
  0x1b   :  { %678 = vmatpush.bf16.msra.mxu3 %v1321_v7  ;;  %v1317_v23 = vld [vmem:[#allocation2 + $0xd0] sm:$0xff]  ;;  %v1292_v24 = vld [vmem:[#allocation2 + $0x8] sm:$0xff]  ;;  %v1291_v28 = vld [vmem:[#allocation2] sm:$0xff] }
  0x1c   :  { %532 = vmatpush.bf16.msra.mxu0 %v1296_v8  ;;  %v1300_v25 = vld [vmem:[#allocation2 + $0x48] sm:$0xff]  ;;  %v1299_v29 = vld [vmem:[#allocation2 + $0x40] sm:$0xff]  ;;  %v1261_v33 = vld [vmem:[%s1921_s0 + $0xc] sm:$0xf0] }
  0x1d   :  { %581 = vmatpush.bf16.msra.mxu1 %v1304_v9  ;;  %v1308_v26 = vld [vmem:[#allocation2 + $0x88] sm:$0xff]  ;;  %v1307_v30 = vld [vmem:[#allocation2 + $0x80] sm:$0xff]  ;;  %v1005_v35 = vld [vmem:[%s1921_s0 + $0x10] sm:$0xf0] }
  0x1e   :  { %630 = vmatpush.bf16.msra.mxu2 %v1312_v10  ;;  %v1316_v27 = vld [vmem:[#allocation2 + $0xc8] sm:$0xff]  ;;  %v1315_v31 = vld [vmem:[#allocation2 + $0xc0] sm:$0xff]  ;;  %v1262_v37 = vld [vmem:[%s1921_s0 + $0x14] sm:$0xf0] }
  0x1f   :  { %679 = vmatpush.bf16.msra.mxu3 %v1320_v11  ;;  %v1003_v32 = vld [vmem:[%s1921_s0] sm:$0xf]  ;;  %v1259_v34 = vld [vmem:[%s1921_s0 + $0x4] sm:$0xf]  ;;  %v1011_v36 = vld [vmem:[%s1921_s0 + $0x8] sm:$0xf] }
  0x20   :  { %533 = vmatpush.bf16.msra.mxu0 %v1295_v12  ;;  %v1260_v38 = vld [vmem:[%s1921_s0 + $0xc] sm:$0xf]  ;;  %v1013_v39 = vld [vmem:[%s1921_s0 + $0x18] sm:$0xf0]  ;;  %v1004_v40 = vor.u32 %v1261_v33, %v1003_v32  ;;  %v1008_v41 = vor.u32 %v1259_v34, %v1005_v35  ;;  %v1012_v42 = vor.u32 %v1262_v37, %v1011_v36  ;;  %v1019_v44 = vld [vmem:[%s1921_s0 + $0x20] sm:$0xf] }
  0x21   :  { %582 = vmatpush.bf16.msra.mxu1 %v1303_v13  ;;  %v1016_v43 = vor.u32 %v1260_v38, %v1013_v39  ;;  %v1265_v45 = vld [vmem:[%s1921_s0 + $0x2c] sm:$0xf0]  ;;  %v1263_v46 = vld [vmem:[%s1921_s0 + $0x24] sm:$0xf]  ;;  %v1021_v47 = vld [vmem:[%s1921_s0 + $0x30] sm:$0xf0] }
  0x22   :  { %631 = vmatpush.bf16.msra.mxu2 %v1311_v14  ;;  %v1027_v48 = vld [vmem:[%s1921_s0 + $0x28] sm:$0xf]  ;;  %v1266_v49 = vld [vmem:[%s1921_s0 + $0x34] sm:$0xf0]  ;;  %v1264_v50 = vld [vmem:[%s1921_s0 + $0x2c] sm:$0xf]  ;;  %v1020_v52 = vor.u32 %v1265_v45, %v1019_v44  ;;  %v1024_v53 = vor.u32 %v1263_v46, %v1021_v47 }
  0x23   :  { %680 = vmatpush.bf16.msra.mxu3 %v1319_v15  ;;  %v1029_v51 = vld [vmem:[%s1921_s0 + $0x38] sm:$0xf0]  ;;  %v1028_v54 = vor.u32 %v1266_v49, %v1027_v48  ;;  %v1035_v56 = vld [vmem:[%s1921_s0 + $0x40] sm:$0xf]  ;;  %v1269_v57 = vld [vmem:[%s1921_s0 + $0x4c] sm:$0xf0] }
  0x24   :  { %534 = vmatpush.bf16.msra.mxu0 %v1294_v16  ;;  %v1032_v55 = vor.u32 %v1264_v50, %v1029_v51  ;;  %v1267_v58 = vld [vmem:[%s1921_s0 + $0x44] sm:$0xf]  ;;  %v1037_v59 = vld [vmem:[%s1921_s0 + $0x50] sm:$0xf0]  ;;  %v1043_v60 = vld [vmem:[%s1921_s0 + $0x48] sm:$0xf]  ;;  %v1036_v0 = vor.u32 %v1269_v57, %v1035_v56 }
  0x25   :  { %583 = vmatpush.bf16.msra.mxu1 %v1302_v17  ;;  %v1270_v61 = vld [vmem:[%s1921_s0 + $0x54] sm:$0xf0]  ;;  %v1268_v62 = vld [vmem:[%s1921_s0 + $0x4c] sm:$0xf]  ;;  %v1045_v63 = vld [vmem:[%s1921_s0 + $0x58] sm:$0xf0]  ;;  %v1040_v1 = vor.u32 %v1267_v58, %v1037_v59 }
  0x26   :  { %632 = vmatpush.bf16.msra.mxu2 %v1310_v18  ;;  %v1044_v2 = vor.u32 %v1270_v61, %v1043_v60  ;;  %v1048_v3 = vor.u32 %v1268_v62, %v1045_v63  ;;  %v1051_v4 = vld [vmem:[%s1921_s0 + $0x60] sm:$0xf]  ;;  %v1273_v5 = vld [vmem:[%s1921_s0 + $0x6c] sm:$0xf0]  ;;  %v1271_v6 = vld [vmem:[%s1921_s0 + $0x64] sm:$0xf] }
  0x27   :  { %681 = vmatpush.bf16.msra.mxu3 %v1318_v19  ;;  %v1053_v7 = vld [vmem:[%s1921_s0 + $0x70] sm:$0xf0]  ;;  %v1059_v8 = vld [vmem:[%s1921_s0 + $0x68] sm:$0xf]  ;;  %v1274_v9 = vld [vmem:[%s1921_s0 + $0x74] sm:$0xf0]  ;;  %v1052_v12 = vor.u32 %v1273_v5, %v1051_v4 }
  0x28   :  { %535 = vmatpush.bf16.msra.mxu0 %v1293_v20  ;;  %v1272_v10 = vld [vmem:[%s1921_s0 + $0x6c] sm:$0xf]  ;;  %v1061_v11 = vld [vmem:[%s1921_s0 + $0x78] sm:$0xf0]  ;;  %v1056_v13 = vor.u32 %v1271_v6, %v1053_v7  ;;  %v1060_v14 = vor.u32 %v1274_v9, %v1059_v8  ;;  %v1067_v16 = vld [vmem:[%s1921_s0 + $0x80] sm:$0xf] }
  0x29   :  { %584 = vmatpush.bf16.msra.mxu1 %v1301_v21  ;;  %v1064_v15 = vor.u32 %v1272_v10, %v1061_v11  ;;  %v1277_v17 = vld [vmem:[%s1921_s0 + $0x8c] sm:$0xf0]  ;;  %v1275_v18 = vld [vmem:[%s1921_s0 + $0x84] sm:$0xf]  ;;  %v1069_v19 = vld [vmem:[%s1921_s0 + $0x90] sm:$0xf0] }
  0x2a   :  { %633 = vmatpush.bf16.msra.mxu2 %v1309_v22  ;;  %v1075_v20 = vld [vmem:[%s1921_s0 + $0x88] sm:$0xf]  ;;  %v1278_v21 = vld [vmem:[%s1921_s0 + $0x94] sm:$0xf0]  ;;  %v1276_v22 = vld [vmem:[%s1921_s0 + $0x8c] sm:$0xf] }
  0x2b   :  { %682 = vmatpush.bf16.msra.mxu3 %v1317_v23  ;;  %v1077_v23 = vld [vmem:[%s1921_s0 + $0x98] sm:$0xf0]  ;;  %v1091_v32 = vld [vmem:[%s1921_s0 + $0xa8] sm:$0xf]  ;;  %v1282_v33 = vld [vmem:[%s1921_s0 + $0xb4] sm:$0xf0] }
  0x2c   :  { %536 = vmatpush.bf16.msra.mxu0 %v1292_v24  ;;  %v1068_v24 = vor.u32 %v1277_v17, %v1067_v16  ;;  %v1280_v34 = vld [vmem:[%s1921_s0 + $0xac] sm:$0xf]  ;;  %v1093_v35 = vld [vmem:[%s1921_s0 + $0xb8] sm:$0xf0]  ;;  %v1092_v38 = vor.u32 %v1282_v33, %v1091_v32  ;;  %v1107_v44 = vld [vmem:[%s1921_s0 + $0xc8] sm:$0xf] }
  0x2d   :  { %585 = vmatpush.bf16.msra.mxu1 %v1300_v25  ;;  %v1072_v25 = vor.u32 %v1275_v18, %v1069_v19  ;;  %v1096_v39 = vor.u32 %v1280_v34, %v1093_v35  ;;  %v1286_v45 = vld [vmem:[%s1921_s0 + $0xd4] sm:$0xf0]  ;;  %v1284_v46 = vld [vmem:[%s1921_s0 + $0xcc] sm:$0xf]  ;;  %v1109_v47 = vld [vmem:[%s1921_s0 + $0xd8] sm:$0xf0] }
  0x2e   :  { %634 = vmatpush.bf16.msra.mxu2 %v1308_v26  ;;  %v1076_v26 = vor.u32 %v1278_v21, %v1075_v20  ;;  %v1108_v50 = vor.u32 %v1286_v45, %v1107_v44  ;;  %v1112_v51 = vor.u32 %v1284_v46, %v1109_v47  ;;  %v1123_v56 = vld [vmem:[%s1921_s0 + $0xe8] sm:$0xf]  ;;  %v1290_v57 = vld [vmem:[%s1921_s0 + $0xf4] sm:$0xf0]  ;;  %v1288_v58 = vld [vmem:[%s1921_s0 + $0xec] sm:$0xf] }
  0x2f   :  { %683 = vmatpush.bf16.msra.mxu3 %v1316_v27  ;;  %v1080_v27 = vor.u32 %v1276_v22, %v1077_v23  ;;  %v1125_v59 = vld [vmem:[%s1921_s0 + $0xf8] sm:$0xf0]  ;;  %v1124_v62 = vor.u32 %v1290_v57, %v1123_v56  ;;  %v797_v5 = vld [vmem:[%s1925_s4 + $0x68] sm:$0xff]  ;;  %v792_v44 = vld [vmem:[%s1925_s4 + $0x40] sm:$0xff] }
  0x30   :  { %537 = vmatpush.bf16.msra.mxu0 %v1291_v28  ;;  %v1083_v28 = vld [vmem:[%s1921_s0 + $0xa0] sm:$0xf]  ;;  %v1128_v63 = vor.u32 %v1288_v58, %v1125_v59  ;;  %v795_v21 = vld [vmem:[%s1925_s4 + $0x58] sm:$0xff]  ;;  %v789_v59 = vld [vmem:[%s1925_s4 + $0x28] sm:$0xff] }
  0x31   :  { %586 = vmatpush.bf16.msra.mxu1 %v1299_v29  ;;  %v1281_v29 = vld [vmem:[%s1921_s0 + $0xac] sm:$0xf0] }
  0x32   :  { %635 = vmatpush.bf16.msra.mxu2 %v1307_v30  ;;  %v1279_v30 = vld [vmem:[%s1921_s0 + $0xa4] sm:$0xf]  ;;  %v1084_v36 = vor.u32 %v1281_v29, %v1083_v28  ;;  %v794_v29 = vld [vmem:[%s1925_s4 + $0x50] sm:$0xff] }
  0x33   :  { %684 = vmatpush.bf16.msra.mxu3 %v1315_v31  ;;  %538 = vmatmul.bf16.vlgmr.msra.gmra.mxu0 %v1004_v40  ;;  %v1085_v31 = vld [vmem:[%s1921_s0 + $0xb0] sm:$0xf0]  ;;  %v1099_v40 = vld [vmem:[%s1921_s0 + $0xc0] sm:$0xf] }
  0x34   :  { %587 = vmatmul.bf16.vlgmr.msra.gmra.mxu1 %v1008_v41  ;;  %v1088_v37 = vor.u32 %v1279_v30, %v1085_v31  ;;  %v1285_v41 = vld [vmem:[%s1921_s0 + $0xcc] sm:$0xf0] }
  0x35   :  { %636 = vmatmul.bf16.vlgmr.msra.gmra.mxu2 %v1012_v42  ;;  %v1283_v42 = vld [vmem:[%s1921_s0 + $0xc4] sm:$0xf]  ;;  %v1100_v48 = vor.u32 %v1285_v41, %v1099_v40 }
  0x36   :  { %685 = vmatmul.bf16.vlgmr.msra.gmra.mxu3 %v1016_v43  ;;  %v1101_v43 = vld [vmem:[%s1921_s0 + $0xd0] sm:$0xf0] }
  0x37   :  { %v1104_v49 = vor.u32 %v1283_v42, %v1101_v43 }
  0x43   :  { %543 = vmatmul.bf16.gmra.mxu0 %v1020_v52  ;;  %v1115_v52 = vld [vmem:[%s1921_s0 + $0xe0] sm:$0xf] }
  0x44   :  { %592 = vmatmul.bf16.gmra.mxu1 %v1024_v53  ;;  %v1289_v53 = vld [vmem:[%s1921_s0 + $0xec] sm:$0xf0] }
  0x45   :  { %641 = vmatmul.bf16.gmra.mxu2 %v1028_v54  ;;  %v1287_v54 = vld [vmem:[%s1921_s0 + $0xe4] sm:$0xf]  ;;  %v1116_v60 = vor.u32 %v1289_v53, %v1115_v52 }
  0x46   :  { %690 = vmatmul.bf16.gmra.mxu3 %v1032_v55  ;;  %v1117_v55 = vld [vmem:[%s1921_s0 + $0xf0] sm:$0xf0] }
  0x47   :  { %v1120_v61 = vor.u32 %v1287_v54, %v1117_v55  ;;  %v790_v54 = vld [vmem:[%s1925_s4 + $0x30] sm:$0xff] }
  0x53   :  { %548 = vmatmul.bf16.gmra.mxu0 %v1036_v0  ;;  %v799_v0 = vld [vmem:[%s1925_s4 + $0x78] sm:$0xff] }
  0x54   :  { %597 = vmatmul.bf16.gmra.mxu1 %v1040_v1  ;;  %800 = vmatpush.msrb.mxu0 %v799_v0  ;;  %v798_v1 = vld [vmem:[%s1925_s4 + $0x70] sm:$0xff] }
  0x55   :  { %646 = vmatmul.bf16.gmra.mxu2 %v1044_v2  ;;  %820 = vmatpush.msrb.mxu1 %v799_v0  ;;  %v788_v0 = vld [vmem:[%s1925_s4 + $0x20] sm:$0xff] }
  0x56   :  { %695 = vmatmul.bf16.gmra.mxu3 %v1048_v3  ;;  %801 = vmatpush.msrb.mxu0 %v798_v1 }
  0x57   :  { %821 = vmatpush.msrb.mxu1 %v798_v1 }
  0x58   :  { %802 = vmatpush.msrb.mxu0 %v797_v5 }
  0x59   :  { %822 = vmatpush.msrb.mxu1 %v797_v5  ;;  %v787_v5 = vld [vmem:[%s1925_s4 + $0x18] sm:$0xff] }
  0x63   :  { %553 = vmatmul.bf16.gmra.mxu0 %v1052_v12 }
  0x64   :  { %602 = vmatmul.bf16.gmra.mxu1 %v1056_v13  ;;  %v796_v13 = vld [vmem:[%s1925_s4 + $0x60] sm:$0xff] }
  0x65   :  { %651 = vmatmul.bf16.gmra.mxu2 %v1060_v14  ;;  %803 = vmatpush.msrb.mxu0 %v796_v13 }
  0x66   :  { %700 = vmatmul.bf16.gmra.mxu3 %v1064_v15  ;;  %823 = vmatpush.msrb.mxu1 %v796_v13 }
  0x67   :  { %804 = vmatpush.msrb.mxu0 %v795_v21 }
  0x68   :  { %824 = vmatpush.msrb.mxu1 %v795_v21 }
  0x69   :  { %805 = vmatpush.msrb.mxu0 %v794_v29 }
  0x6a   :  { %825 = vmatpush.msrb.mxu1 %v794_v29 }
  0x73   :  { %558 = vmatmul.bf16.gmra.mxu0 %v1068_v24 }
  0x74   :  { %607 = vmatmul.bf16.gmra.mxu1 %v1072_v25 }
  0x75   :  { %656 = vmatmul.bf16.gmra.mxu2 %v1076_v26 }
  0x76   :  { %705 = vmatmul.bf16.gmra.mxu3 %v1080_v27 }
  0x83   :  { %563 = vmatmul.bf16.gmra.mxu0 %v1084_v36 }
  0x84   :  { %612 = vmatmul.bf16.gmra.mxu1 %v1088_v37  ;;  %v793_v37 = vld [vmem:[%s1925_s4 + $0x48] sm:$0xff] }
  0x85   :  { %661 = vmatmul.bf16.gmra.mxu2 %v1092_v38  ;;  %806 = vmatpush.msrb.mxu0 %v793_v37 }
  0x86   :  { %710 = vmatmul.bf16.gmra.mxu3 %v1096_v39  ;;  %826 = vmatpush.msrb.mxu1 %v793_v37 }
  0x87   :  { %807 = vmatpush.msrb.mxu0 %v792_v44 }
  0x88   :  { %827 = vmatpush.msrb.mxu1 %v792_v44 }
  0x93   :  { %568 = vmatmul.bf16.gmra.mxu0 %v1100_v48 }
  0x94   :  { %617 = vmatmul.bf16.gmra.mxu1 %v1104_v49  ;;  %v791_v49 = vld [vmem:[%s1925_s4 + $0x38] sm:$0xff] }
  0x95   :  { %666 = vmatmul.bf16.gmra.mxu2 %v1108_v50  ;;  %808 = vmatpush.msrb.mxu0 %v791_v49 }
  0x96   :  { %715 = vmatmul.bf16.gmra.mxu3 %v1112_v51  ;;  %828 = vmatpush.msrb.mxu1 %v791_v49 }
  0x97   :  { %809 = vmatpush.msrb.mxu0 %v790_v54 }
  0x98   :  { %829 = vmatpush.msrb.mxu1 %v790_v54 }
  0x99   :  { %810 = vmatpush.msrb.mxu0 %v789_v59 }
  0x9a   :  { %830 = vmatpush.msrb.mxu1 %v789_v59 }
  0x9b   :  { %811 = vmatpush.msrb.mxu0 %v788_v0 }
  0x9c   :  { %831 = vmatpush.msrb.mxu1 %v788_v0 }
  0x9d   :  { %812 = vmatpush.msrb.mxu0 %v787_v5 }
  0x9e   :  { %832 = vmatpush.msrb.mxu1 %v787_v5 }
  0xa3   :  { %573 = vmatmul.bf16.gmra.mxu0 %v1116_v60 }
  0xa4   :  { %622 = vmatmul.bf16.gmra.mxu1 %v1120_v61 }
  0xa5   :  { %671 = vmatmul.bf16.gmra.mxu2 %v1124_v62 }
  0xa6   :  { %720 = vmatmul.bf16.gmra.mxu3 %v1128_v63 }
  0xb0   :  { %v539_v2 = vpop.f32.mrf.mxu0 }
  0xb1   :  { %v588_v3 = vpop.f32.mrf.mxu1 }
  0xb2   :  { %v589_v4 = vadd.f32 %v588_v3, %v539_v2 }
  0xb8   :  { %v637_v6 = vpop.f32.mrf.mxu2  ;;  %v541_v9 = vpop.f32.mrf.mxu0 }
  0xb9   :  { %v686_v7 = vpop.f32.mrf.mxu3  ;;  %v638_v8 = vadd.f32 %v637_v6, %v589_v4  ;;  %v590_v10 = vpop.f32.mrf.mxu1 }
  0xba   :  { %v591_v11 = vadd.f32 %v590_v10, %v541_v9  ;;  %v786_v10 = vld [vmem:[%s1925_s4 + $0x10] sm:$0xff] }
  0xbb   :  { %v1738_v12 = vadd.f32 %v686_v7, %v638_v8  ;;  %813 = vmatpush.msrb.mxu0 %v786_v10  ;;  %833 = vmatpush.msrb.mxu1 %v786_v10 }
  0xbd   :  { %v747_v21 = vmul.f32 %v1738_v12, %v1738_v12 }
  0xc0   :  { %v639_v14 = vpop.f32.mrf.mxu2  ;;  %v544_v17 = vpop.f32.mrf.mxu0 }
  0xc1   :  { %v688_v15 = vpop.f32.mrf.mxu3  ;;  %v640_v16 = vadd.f32 %v639_v14, %v591_v11  ;;  %v593_v18 = vpop.f32.mrf.mxu1 }
  0xc2   :  { %v594_v19 = vadd.f32 %v593_v18, %v544_v17 }
  0xc3   :  { %v1743_v20 = vadd.f32 %v688_v15, %v640_v16 }
  0xc5   :  { %v748_v18 = vmul.f32 %v1743_v20, %v1743_v20 }
  0xc8   :  { %v642_v22 = vpop.f32.mrf.mxu2  ;;  %v546_v25 = vpop.f32.mrf.mxu0 }
  0xc9   :  { %v691_v23 = vpop.f32.mrf.mxu3  ;;  %v643_v24 = vadd.f32 %v642_v22, %v594_v19  ;;  %v595_v26 = vpop.f32.mrf.mxu1  ;;  %v726_v22 = vadd.f32 %v1743_v20, %v1738_v12 }
  0xca   :  { %v596_v27 = vadd.f32 %v595_v26, %v546_v25 }
  0xcb   :  { %v1748_v28 = vadd.f32 %v691_v23, %v643_v24 }
  0xcd   :  { %v749_v23 = vmul.f32 %v1748_v28, %v1748_v28 }
  0xd0   :  { %v644_v30 = vpop.f32.mrf.mxu2  ;;  %v549_v33 = vpop.f32.mrf.mxu0 }
  0xd1   :  { %v693_v31 = vpop.f32.mrf.mxu3  ;;  %v645_v32 = vadd.f32 %v644_v30, %v596_v27  ;;  %v598_v34 = vpop.f32.mrf.mxu1  ;;  %v763_v30 = vadd.f32 %v748_v18, %v747_v21  ;;  %v863_v18 = vld [vmem:[#allocation7 + $0x10] sm:$0xff] }
  0xd2   :  { %v599_v35 = vadd.f32 %v598_v34, %v549_v33  ;;  %v785_v34 = vld [vmem:[%s1925_s4 + $0x8] sm:$0xff] }
  0xd3   :  { %v1753_v36 = vadd.f32 %v693_v31, %v645_v32  ;;  %v727_v31 = vadd.f32 %v726_v22, %v1748_v28  ;;  %814 = vmatpush.msrb.mxu0 %v785_v34  ;;  %834 = vmatpush.msrb.mxu1 %v785_v34 }
  0xd5   :  { %v750_v37 = vmul.f32 %v1753_v36, %v1753_v36 }
  0xd8   :  { %v647_v38 = vpop.f32.mrf.mxu2  ;;  %v551_v41 = vpop.f32.mrf.mxu0 }
  0xd9   :  { %v696_v39 = vpop.f32.mrf.mxu3  ;;  %v648_v40 = vadd.f32 %v647_v38, %v599_v35  ;;  %v600_v42 = vpop.f32.mrf.mxu1  ;;  %v784_v35 = vld [vmem:[%s1925_s4] sm:$0xff] }
  0xda   :  { %v601_v16 = vadd.f32 %v600_v42, %v551_v41  ;;  %v728_v41 = vadd.f32 %v727_v31, %v1753_v36  ;;  %815 = vmatpush.msrb.mxu0 %v784_v35  ;;  %835 = vmatpush.msrb.mxu1 %v784_v35 }
  0xdb   :  { %v1758_v43 = vadd.f32 %v696_v39, %v648_v40  ;;  %v764_v40 = vadd.f32 %v763_v30, %v749_v23  ;;  %v862_v23 = vld [vmem:[#allocation7 + $0x8] sm:$0xff] }
  0xdd   :  { %v751_v42 = vmul.f32 %v1758_v43, %v1758_v43  ;;  %v765_v49 = vadd.f32 %v764_v40, %v750_v37 }
  0xdf   :  { %v766_v54 = vadd.f32 %v765_v49, %v751_v42 }
  0xe0   :  { %v649_v45 = vpop.f32.mrf.mxu2  ;;  %v554_v47 = vpop.f32.mrf.mxu0 }
  0xe1   :  { %v1763_v46 = vpop.f32.mrf.mxu3  ;;  %v603_v48 = vpop.f32.mrf.mxu1  ;;  %v650_v19 = vadd.f32 %v649_v45, %v601_v16 }
  0xe2   :  { %v604_v17 = vadd.f32 %v603_v48, %v554_v47 }
  0xe3   :  { %v1815_v38 = vadd.f32 %v1763_v46, %v650_v19  ;;  %v729_v46 = vadd.f32 %v728_v41, %v1758_v43 }
  0xe8   :  { %v652_v50 = vpop.f32.mrf.mxu2  ;;  %v556_v52 = vpop.f32.mrf.mxu0 }
  0xe9   :  { %v1768_v51 = vpop.f32.mrf.mxu3  ;;  %v605_v53 = vpop.f32.mrf.mxu1  ;;  %v653_v24 = vadd.f32 %v652_v50, %v604_v17  ;;  %v752_v50 = vmul.f32 %v1815_v38, %v1815_v38  ;;  %v864_v17 = vld [vmem:[#allocation7 + $0x18] sm:$0xff] }
  0xea   :  { %v606_v25 = vadd.f32 %v605_v53, %v556_v52  ;;  %881 = vmatpush.msrb.mxu2 %v864_v17  ;;  %904 = vmatpush.msrb.mxu3 %v864_v17 }
  0xeb   :  { %v1821_v44 = vadd.f32 %v1768_v51, %v653_v24  ;;  %v767_v0 = vadd.f32 %v766_v54, %v752_v50 }
  0xec   :  { %882 = vmatpush.msrb.mxu2 %v863_v18  ;;  %905 = vmatpush.msrb.mxu3 %v863_v18  ;;  %v861_v18 = vld [vmem:[#allocation7] sm:$0xff] }
  0xed   :  { %v753_v51 = vmul.f32 %v1821_v44, %v1821_v44 }
  0xee   :  { %883 = vmatpush.msrb.mxu2 %v862_v23  ;;  %906 = vmatpush.msrb.mxu3 %v862_v23 }
  0xef   :  { %v768_v16 = vadd.f32 %v767_v0, %v753_v51 }
  0xf0   :  { %v654_v55 = vpop.f32.mrf.mxu2  ;;  %v559_v57 = vpop.f32.mrf.mxu0  ;;  %884 = vmatpush.msrb.mxu2 %v861_v18  ;;  %907 = vmatpush.msrb.mxu3 %v861_v18 }
  0xf1   :  { %v1773_v56 = vpop.f32.mrf.mxu3  ;;  %v608_v58 = vpop.f32.mrf.mxu1  ;;  %v655_v39 = vadd.f32 %v654_v55, %v606_v25  ;;  %v730_v55 = vadd.f32 %v729_v46, %v1815_v38 }
  0xf2   :  { %v609_v26 = vadd.f32 %v608_v58, %v559_v57 }
  0xf3   :  { %v1827_v52 = vadd.f32 %v1773_v56, %v655_v39 }
  0xf5   :  { %v754_v56 = vmul.f32 %v1827_v52, %v1827_v52 }
  0xf7   :  { %v769_v19 = vadd.f32 %v768_v16, %v754_v56 }
  0xf8   :  { %v657_v60 = vpop.f32.mrf.mxu2  ;;  %v561_v62 = vpop.f32.mrf.mxu0 }
  0xf9   :  { %v1778_v61 = vpop.f32.mrf.mxu3  ;;  %v610_v63 = vpop.f32.mrf.mxu1  ;;  %v658_v45 = vadd.f32 %v657_v60, %v609_v26 }
  0xfa   :  { %v611_v47 = vadd.f32 %v610_v63, %v561_v62 }
  0xfb   :  { %v1833_v57 = vadd.f32 %v1778_v61, %v658_v45 }
 0x100   :  { %v659_v1 = vpop.f32.mrf.mxu2  ;;  %v564_v3 = vpop.f32.mrf.mxu0 }
 0x101   :  { %v1783_v2 = vpop.f32.mrf.mxu3  ;;  %v613_v4 = vpop.f32.mrf.mxu1  ;;  %v660_v53 = vadd.f32 %v659_v1, %v611_v47 }
 0x102   :  { %v614_v48 = vadd.f32 %v613_v4, %v564_v3  ;;  %v731_v3 = vadd.f32 %v730_v55, %v1821_v44 }
 0x103   :  { %v1839_v5 = vadd.f32 %v1783_v2, %v660_v53 }
 0x104   :  { %v732_v61 = vadd.f32 %v731_v3, %v1827_v52 }
 0x106   :  { %v733_v2 = vadd.f32 %v732_v61, %v1833_v57 }
 0x108   :  { %v662_v6 = vpop.f32.mrf.mxu2  ;;  %v566_v8 = vpop.f32.mrf.mxu0  ;;  %v734_v26 = vadd.f32 %v733_v2, %v1839_v5 }
 0x109   :  { %v1788_v7 = vpop.f32.mrf.mxu3  ;;  %v615_v9 = vpop.f32.mrf.mxu1  ;;  %v663_v60 = vadd.f32 %v662_v6, %v614_v48  ;;  %v755_v6 = vmul.f32 %v1833_v57, %v1833_v57 }
 0x10a   :  { %v616_v62 = vadd.f32 %v615_v9, %v566_v8 }
 0x10b   :  { %v1845_v8 = vadd.f32 %v1788_v7, %v663_v60  ;;  %v770_v7 = vadd.f32 %v769_v19, %v755_v6 }
 0x110   :  { %v664_v11 = vpop.f32.mrf.mxu2  ;;  %v569_v14 = vpop.f32.mrf.mxu0 }
 0x111   :  { %v1793_v13 = vpop.f32.mrf.mxu3  ;;  %v618_v15 = vpop.f32.mrf.mxu1  ;;  %v665_v10 = vadd.f32 %v664_v11, %v616_v62  ;;  %v756_v11 = vmul.f32 %v1839_v5, %v1839_v5 }
 0x112   :  { %v619_v63 = vadd.f32 %v618_v15, %v569_v14 }
 0x113   :  { %v1851_v21 = vadd.f32 %v1793_v13, %v665_v10  ;;  %v771_v13 = vadd.f32 %v770_v7, %v756_v11 }
 0x118   :  { %v667_v27 = vpop.f32.mrf.mxu2  ;;  %v571_v32 = vpop.f32.mrf.mxu0 }
 0x119   :  { %v1803_v29 = vpop.f32.mrf.mxu3  ;;  %v620_v33 = vpop.f32.mrf.mxu1  ;;  %v668_v9 = vadd.f32 %v667_v27, %v619_v63  ;;  %v757_v27 = vmul.f32 %v1845_v8, %v1845_v8 }
 0x11a   :  { %v621_v14 = vadd.f32 %v620_v33, %v571_v32  ;;  %v735_v32 = vadd.f32 %v734_v26, %v1845_v8  ;;  %v758_v33 = vmul.f32 %v1851_v21, %v1851_v21 }
 0x11b   :  { %v1857_v30 = vadd.f32 %v1803_v29, %v668_v9  ;;  %v772_v39 = vadd.f32 %v771_v13, %v757_v27 }
 0x11c   :  { %v736_v40 = vadd.f32 %v735_v32, %v1851_v21 }
 0x11d   :  { %v759_v29 = vmul.f32 %v1857_v30, %v1857_v30  ;;  %v773_v42 = vadd.f32 %v772_v39, %v758_v33 }
 0x11e   :  { %v737_v45 = vadd.f32 %v736_v40, %v1857_v30  ;;  %v858_v40 = vld [vmem:[#allocation6] sm:$0x1] }
 0x11f   :  { %v774_v46 = vadd.f32 %v773_v42, %v759_v29 }
 0x120   :  { %v669_v58 = vpop.f32.mrf.mxu2  ;;  %v574_v1 = vpop.f32.mrf.mxu0 }
 0x121   :  { %v718_v59 = vpop.f32.mrf.mxu3  ;;  %v623_v4 = vpop.f32.mrf.mxu1  ;;  %v670_v22 = vadd.f32 %v669_v58, %v621_v14 }
 0x122   :  { %v624_v15 = vadd.f32 %v623_v4, %v574_v1 }
 0x123   :  { %v1862_v34 = vadd.f32 %v718_v59, %v670_v22 }
 0x125   :  { %v760_v47 = vmul.f32 %v1862_v34, %v1862_v34  ;;  %v738_v50 = vadd.f32 %v737_v45, %v1862_v34 }
 0x127   :  { %v775_v51 = vadd.f32 %v774_v46, %v760_v47 }
 0x128   :  { %v672_v24 = vpop.f32.mrf.mxu2  ;;  %v576_v35 = vpop.f32.mrf.mxu0 }
 0x129   :  { %v721_v25 = vpop.f32.mrf.mxu3  ;;  %v673_v31 = vadd.f32 %v672_v24, %v624_v15  ;;  %v625_v37 = vpop.f32.mrf.mxu1 }
 0x12a   :  { %v626_v48 = vadd.f32 %v625_v37, %v576_v35  ;;  %v845_v35 = vld [vmem:[#allocation4] sm:$0x1] }
 0x12b   :  { %v1867_v41 = vadd.f32 %v721_v25, %v673_v31 }
 0x12d   :  { %v761_v53 = vmul.f32 %v1867_v41, %v1867_v41  ;;  %v739_v58 = vadd.f32 %v738_v50, %v1867_v41 }
 0x12f   :  { %v776_v60 = vadd.f32 %v775_v51, %v761_v53 }
 0x130   :  { %v674_v49 = vpop.f32.mrf.mxu2 }
 0x131   :  { %v675_v54 = vadd.f32 %v674_v49, %v626_v48  ;;  %v723_v55 = vpop.f32.mrf.mxu3 }
 0x133   :  { %v1876_v59 = vadd.f32 %v723_v55, %v675_v54 }
 0x135   :  { %v740_v62 = vadd.f32 %v739_v58, %v1876_v59  ;;  %v762_v63 = vmul.f32 %v1876_v59, %v1876_v59 }
 0x137   :  { %v741_v0 = vrot.slane %v740_v62, 4  ;;  %v777_v3 = vadd.f32 %v776_v60, %v762_v63 }
 0x139   :  { %v742_v56 = vadd.f32 %v741_v0, %v740_v62  ;;  %v778_v1 = vrot.slane %v777_v3, 4 }
 0x13b   :  { %v743_v4 = vrot.slane %v742_v56, 2  ;;  %v779_v10 = vadd.f32 %v778_v1, %v777_v3 }
 0x13d   :  { %v744_v16 = vadd.f32 %v743_v4, %v742_v56  ;;  %v780_v61 = vrot.slane %v779_v10, 2 }
 0x13f   :  { %v745_v6 = vrot.slane %v744_v16, 1  ;;  %v781_v9 = vadd.f32 %v780_v61, %v779_v10 }
 0x141   :  { %v746_v14 = vadd.f32 %v745_v6, %v744_v16  ;;  %v782_v15 = vrot.slane %v781_v9, 1 }
 0x143   :  { %816 = vmatmul.f32.vlgmr.msrb.gmra.mxu0 %v746_v14  ;;  %v783_v17 = vadd.f32 %v782_v15, %v781_v9 }
 0x145   :  { %836 = vmatmul.f32.vlgmr.msrb.gmra.mxu1 %v783_v17 }
 0x1c0   :  { %v817_v19 = vpop.f32.mrf.mxu0 }
 0x1c1   :  { %v840_v2 = vmul.f32 0.001953125, %v817_v19 }
 0x1c2   :  { %v837_v11 = vpop.f32.mrf.mxu1 }
 0x1c3   :  { %v842_v22 = vmul.f32 %v840_v2, %v840_v2  ;;  %v841_v23 = vmul.f32 0.001953125, %v837_v11 }
 0x1c5   :  { %v843_v7 = vsub.f32 %v841_v23, %v842_v22 }
 0x1c7   :  { %v844_v24 = vmax.f32 %v843_v7, 0.0 }
 0x1c9   :  { %v846_v25 = vadd.f32 1e-05, %v844_v24 }
 0x1cb   :  { %1378 = vrsqrt.f32 %v846_v25  ;;  %vm853_vm1 = vweird.f32 %v846_v25 }
 0x1d1   :  { %v1379_v26 = vpop.eup %1378 }
 0x1d2   :  { %v848_v27 = vmul.f32 %v1379_v26, %v846_v25  ;;  %vm854_vm0 = vweird.f32 %v1379_v26 }
 0x1d3   :  { %vm855_vm2 = vmor %vm853_vm1, %vm854_vm0 }
 0x1d4   :  { %v849_v31 = vmul.f32 %v1379_v26, %v848_v27 }
 0x1d6   :  { %v850_v13 = vmul.f32 0.5, %v849_v31 }
 0x1d8   :  { %v851_v32 = vsub.f32 1.5, %v850_v13 }
 0x1da   :  { %v852_v33 = vmul.f32 %v1379_v26, %v851_v32 }
 0x1dc   :  { %v856_v37 = vsel %vm855_vm2, %v1379_v26, %v852_v33 }
 0x1dd   :  { %v857_v39 = vmul.f32 %v856_v37, %v845_v35 }
 0x1df   :  { %1257 = vmatmul.msk.f32.vlgmr.msrb.gmra.mxu2 %vm865_vm3, %v857_v39  ;;  %v859_v29 = vmul.f32 %v857_v39, %v840_v2 }
 0x1e1   :  { %v860_v42 = vsub.f32 %v858_v40, %v859_v29 }
 0x1e3   :  { %1258 = vmatmul.msk.f32.vlgmr.msrb.gmra.mxu3 %vm865_vm3, %v860_v42 }
 0x262   :  { %v886_v45 = vpop.f32.mrf.mxu2 }
 0x263   :  { %v912_v47 = vperm.slane %v886_v45, 0 }
 0x265   :  { %v913_v48 = vmul.f32 %v912_v47, %v1738_v12  ;;  %v914_v46 = vmul.f32 %v912_v47, %v1743_v20  ;;  %v915_v50 = vmul.f32 %v912_v47, %v1748_v28  ;;  %v916_v53 = vmul.f32 %v912_v47, %v1753_v36 }
 0x266   :  { %v909_v49 = vpop.f32.mrf.mxu3  ;;  %v917_v54 = vmul.f32 %v912_v47, %v1758_v43  ;;  %v918_v55 = vmul.f32 %v912_v47, %v1815_v38  ;;  %v919_v51 = vmul.f32 %v912_v47, %v1821_v44  ;;  %v920_v58 = vmul.f32 %v912_v47, %v1827_v52 }
 0x267   :  { %v921_v60 = vmul.f32 %v912_v47, %v1833_v57  ;;  %v922_v62 = vmul.f32 %v912_v47, %v1839_v5  ;;  %v923_v12 = vmul.f32 %v912_v47, %v1845_v8  ;;  %v924_v20 = vmul.f32 %v912_v47, %v1851_v21 }
 0x268   :  { %v929_v63 = vperm.slane %v909_v49, 0  ;;  %v925_v28 = vmul.f32 %v912_v47, %v1857_v30  ;;  %v926_v36 = vmul.f32 %v912_v47, %v1862_v34  ;;  %v927_v43 = vmul.f32 %v912_v47, %v1867_v41 }
 0x269   :  { %v928_v38 = vmul.f32 %v912_v47, %v1876_v59 }
 0x26a   :  { %v930_v44 = vadd.f32 %v929_v63, %v913_v48  ;;  %v931_v0 = vadd.f32 %v929_v63, %v914_v46  ;;  %v932_v52 = vadd.f32 %v929_v63, %v915_v50  ;;  %v933_v3 = vadd.f32 %v929_v63, %v916_v53 }
 0x26b   :  { %v934_v57 = vadd.f32 %v929_v63, %v917_v54  ;;  %v935_v56 = vadd.f32 %v929_v63, %v918_v55  ;;  %v936_v5 = vadd.f32 %v929_v63, %v919_v51  ;;  %v937_v1 = vadd.f32 %v929_v63, %v920_v58 }
 0x26c   :  { %v938_v8 = vadd.f32 %v929_v63, %v921_v60  ;;  %v939_v4 = vadd.f32 %v929_v63, %v922_v62  ;;  %v940_v21 = vadd.f32 %v929_v63, %v923_v12  ;;  %v941_v10 = vadd.f32 %v929_v63, %v924_v20 }
 0x26d   :  { %v942_v16 = vadd.f32 %v929_v63, %v925_v28  ;;  %v943_v30 = vadd.f32 %v929_v63, %v926_v36  ;;  %v944_v61 = vadd.f32 %v929_v63, %v927_v43  ;;  %v945_v34 = vadd.f32 %v929_v63, %v928_v38 }
 0x26e   :  { %v946_v6 = vmax.f32 %v930_v44, 0.0  ;;  %v947_v41 = vmax.f32 %v931_v0, 0.0  ;;  %v948_v9 = vmax.f32 %v932_v52, 0.0  ;;  %v949_v59 = vmax.f32 %v933_v3, 0.0 }
 0x26f   :  { %v950_v14 = vmax.f32 %v934_v57, 0.0  ;;  %v951_v15 = vmax.f32 %v935_v56, 0.0  ;;  %v952_v17 = vmax.f32 %v936_v5, 0.0  ;;  %v953_v18 = vmax.f32 %v937_v1, 0.0 }
 0x270   :  { %v954_v19 = vmax.f32 %v938_v8, 0.0  ;;  %v955_v2 = vmax.f32 %v939_v4, 0.0  ;;  %v956_v11 = vmax.f32 %v940_v21, 0.0  ;;  %v957_v22 = vmax.f32 %v941_v10, 0.0 }
 0x271   :  { %v958_v23 = vmax.f32 %v942_v16, 0.0  ;;  %v959_v7 = vmax.f32 %v943_v30, 0.0  ;;  %v1326_v24 = vpack.c.bf16 %v947_v41, %v946_v6  ;;  %v1331_v25 = vpack.c.bf16 %v949_v59, %v948_v9 }
 0x272   :  { %v1336_v26 = vpack.c.bf16 %v951_v15, %v950_v14  ;;  %v960_v27 = vmax.f32 %v944_v61, 0.0  ;;  %v961_v31 = vmax.f32 %v945_v34, 0.0  ;;  %v1341_v13 = vpack.c.bf16 %v953_v18, %v952_v17 }
 0x273   :  { %1327 = vst [vmem:[%s1927_s6] sm:$0xff] %v1326_v24   ;;  %v1346_v32 = vpack.c.bf16 %v955_v2, %v954_v19  ;;  %v1351_v33 = vpack.c.bf16 %v957_v22, %v956_v11  ;;  %v1356_v35 = vpack.c.bf16 %v959_v7, %v958_v23 }
 0x274   :  { %1363 = vst [vmem:[%s1927_s6 + $0x8] sm:$0xff] %v1331_v25   ;;  %v1361_v37 = vpack.c.bf16 %v961_v31, %v960_v27 }
 0x275   :  { %1364 = vst [vmem:[%s1927_s6 + $0x10] sm:$0xff] %v1336_v26  }
 0x276   :  { %1365 = vst [vmem:[%s1927_s6 + $0x18] sm:$0xff] %v1341_v13  }
 0x277   :  { %1366 = vst [vmem:[%s1927_s6 + $0x20] sm:$0xff] %v1346_v32  }
 0x278   :  { %1367 = vst [vmem:[%s1927_s6 + $0x28] sm:$0xff] %v1351_v33  }
 0x279   :  { %1368 = vst [vmem:[%s1927_s6 + $0x30] sm:$0xff] %v1356_v35  }
 0x27a   :  { %1369 = vst [vmem:[%s1927_s6 + $0x38] sm:$0xff] %v1361_v37  }
 0x27b   :  { %998 = vsyncpa [#allocation3], 1 }
 0x27c   :  { %999 = vsyncpa [#allocation5], 1 }
 0x27d   :  { %1000 = vsyncpa [#allocation8], 1 }

// kernel: my_generator_forward.8
= control target key start
LH: loop header
LB: loop body
LE: loop exit
PB: predicated region body
PF: predicated region fallthrough
CT: control target
= control target key end

     0   :  { %vm1156_vm3 = vcmask 261120   ;;  %s3702_s1 = inlined_call_operand.vmem [shape: bf16[256,128], index: 1, kind: input, shape index: {}]   ;;  %s3703_s0 = inlined_call_operand.vmem [shape: bf16[512,256], index: 0, kind: input, shape index: {}]   ;;  %s3704_s4 = inlined_call_operand.vmem [shape: f32[128,32], index: 4, kind: input, shape index: {}]   ;;  %s3705_s5 = inlined_call_operand.vmem [shape: f32[32,128], index: 5, kind: input, shape index: {}]   ;;  %s3706_s2 = inlined_call_operand.vmem [shape: f32[1,32], index: 2, kind: input, shape index: {}]   ;;  %s3707_s3 = inlined_call_operand.vmem [shape: f32[1,32], index: 3, kind: input, shape index: {}]   ;;  %s3708_s6 = inlined_call_operand.vmem [shape: bf16[512,128], index: 6, kind: output, shape index: {}]  }
   0x1   :  { %v1922_v0 = vld [vmem:[%s3702_s1 + $0x38] sm:$0xff]  ;;  %v1921_v2 = vld [vmem:[%s3702_s1 + $0x30] sm:$0xff]  ;;  %v1920_v4 = vld [vmem:[%s3702_s1 + $0x28] sm:$0xff] }
   0x2   :  { %v1930_v1 = vld [vmem:[%s3702_s1 + $0x78] sm:$0xff]  ;;  %535 = vmatpush.bf16.msra.mxu0 %v1922_v0  ;;  %v1929_v3 = vld [vmem:[%s3702_s1 + $0x70] sm:$0xff]  ;;  %2122 = vmatpush.bf16.msra.mxu2 %v1922_v0  ;;  %v1928_v5 = vld [vmem:[%s3702_s1 + $0x68] sm:$0xff] }
   0x3   :  { %704 = vmatpush.bf16.msra.mxu1 %v1930_v1  ;;  %2130 = vmatpush.bf16.msra.mxu3 %v1930_v1  ;;  %v1919_v6 = vld [vmem:[%s3702_s1 + $0x20] sm:$0xff]  ;;  %v1918_v8 = vld [vmem:[%s3702_s1 + $0x18] sm:$0xff]  ;;  %v1917_v10 = vld [vmem:[%s3702_s1 + $0x10] sm:$0xff] }
   0x4   :  { %v1927_v7 = vld [vmem:[%s3702_s1 + $0x60] sm:$0xff]  ;;  %v1926_v9 = vld [vmem:[%s3702_s1 + $0x58] sm:$0xff]  ;;  %v1925_v11 = vld [vmem:[%s3702_s1 + $0x50] sm:$0xff] }
   0x5   :  { %v1916_v12 = vld [vmem:[%s3702_s1 + $0x8] sm:$0xff]  ;;  %v1915_v14 = vld [vmem:[%s3702_s1] sm:$0xff]  ;;  %v1539_v22 = vld [vmem:[%s3703_s0 + $0x10] sm:$0xf] }
   0x6   :  { %536 = vmatpush.bf16.msra.mxu0 %v1921_v2  ;;  %2123 = vmatpush.bf16.msra.mxu2 %v1921_v2  ;;  %v1924_v13 = vld [vmem:[%s3702_s1 + $0x48] sm:$0xff]  ;;  %v1923_v15 = vld [vmem:[%s3702_s1 + $0x40] sm:$0xff]  ;;  %v1854_v23 = vld [vmem:[%s3703_s0 + $0x14] sm:$0xf0] }
   0x7   :  { %705 = vmatpush.bf16.msra.mxu1 %v1929_v3  ;;  %2131 = vmatpush.bf16.msra.mxu3 %v1929_v3  ;;  %v1531_v16 = vld [vmem:[%s3703_s0] sm:$0xf]  ;;  %v1852_v17 = vld [vmem:[%s3703_s0 + $0x4] sm:$0xf0]  ;;  %v1851_v18 = vld [vmem:[%s3703_s0 + $0x4] sm:$0xf]  ;;  %v1540_v26 = vor.u32 %v1854_v23, %v1539_v22 }
   0x8   :  { %v1533_v19 = vld [vmem:[%s3703_s0 + $0x8] sm:$0xf0]  ;;  %v1532_v20 = vor.u32 %v1852_v17, %v1531_v16  ;;  %v1853_v24 = vld [vmem:[%s3703_s0 + $0x14] sm:$0xf]  ;;  %v1541_v25 = vld [vmem:[%s3703_s0 + $0x18] sm:$0xf0] }
   0x9   :  { %v1536_v21 = vor.u32 %v1851_v18, %v1533_v19  ;;  %v1544_v27 = vor.u32 %v1853_v24, %v1541_v25  ;;  %v1547_v28 = vld [vmem:[%s3703_s0 + $0x20] sm:$0xf]  ;;  %v1856_v29 = vld [vmem:[%s3703_s0 + $0x24] sm:$0xf0]  ;;  %v1855_v30 = vld [vmem:[%s3703_s0 + $0x24] sm:$0xf] }
   0xa   :  { %537 = vmatpush.bf16.msra.mxu0 %v1920_v4  ;;  %2124 = vmatpush.bf16.msra.mxu2 %v1920_v4  ;;  %v1549_v31 = vld [vmem:[%s3703_s0 + $0x28] sm:$0xf0]  ;;  %v1548_v32 = vor.u32 %v1856_v29, %v1547_v28  ;;  %v1667_v34 = vld [vmem:[%s3703_s0 + $0x110] sm:$0xf]  ;;  %v1886_v35 = vld [vmem:[%s3703_s0 + $0x114] sm:$0xf0] }
   0xb   :  { %706 = vmatpush.bf16.msra.mxu1 %v1928_v5  ;;  %2132 = vmatpush.bf16.msra.mxu3 %v1928_v5  ;;  %v1552_v33 = vor.u32 %v1855_v30, %v1549_v31  ;;  %v1885_v36 = vld [vmem:[%s3703_s0 + $0x114] sm:$0xf]  ;;  %v1668_v37 = vor.u32 %v1886_v35, %v1667_v34  ;;  %v1669_v38 = vld [vmem:[%s3703_s0 + $0x118] sm:$0xf0]  ;;  %v1555_v40 = vld [vmem:[%s3703_s0 + $0x30] sm:$0xf] }
   0xc   :  { %v1672_v39 = vor.u32 %v1885_v36, %v1669_v38  ;;  %v1858_v41 = vld [vmem:[%s3703_s0 + $0x34] sm:$0xf0]  ;;  %v1857_v42 = vld [vmem:[%s3703_s0 + $0x34] sm:$0xf]  ;;  %v1557_v43 = vld [vmem:[%s3703_s0 + $0x38] sm:$0xf0] }
   0xd   :  { %v1556_v44 = vor.u32 %v1858_v41, %v1555_v40  ;;  %v1560_v45 = vor.u32 %v1857_v42, %v1557_v43  ;;  %v1675_v46 = vld [vmem:[%s3703_s0 + $0x120] sm:$0xf]  ;;  %v1888_v47 = vld [vmem:[%s3703_s0 + $0x124] sm:$0xf0]  ;;  %v1887_v48 = vld [vmem:[%s3703_s0 + $0x124] sm:$0xf] }
   0xe   :  { %538 = vmatpush.bf16.msra.mxu0 %v1919_v6  ;;  %2125 = vmatpush.bf16.msra.mxu2 %v1919_v6  ;;  %v1676_v49 = vor.u32 %v1888_v47, %v1675_v46  ;;  %v1677_v50 = vld [vmem:[%s3703_s0 + $0x128] sm:$0xf0]  ;;  %v1563_v52 = vld [vmem:[%s3703_s0 + $0x40] sm:$0xf]  ;;  %v1860_v53 = vld [vmem:[%s3703_s0 + $0x44] sm:$0xf0] }
   0xf   :  { %707 = vmatpush.bf16.msra.mxu1 %v1927_v7  ;;  %2133 = vmatpush.bf16.msra.mxu3 %v1927_v7  ;;  %v1680_v51 = vor.u32 %v1887_v48, %v1677_v50  ;;  %v1859_v54 = vld [vmem:[%s3703_s0 + $0x44] sm:$0xf]  ;;  %v1565_v55 = vld [vmem:[%s3703_s0 + $0x48] sm:$0xf0]  ;;  %v1564_v56 = vor.u32 %v1860_v53, %v1563_v52  ;;  %v1683_v58 = vld [vmem:[%s3703_s0 + $0x130] sm:$0xf] }
  0x10   :  { %v1568_v57 = vor.u32 %v1859_v54, %v1565_v55  ;;  %v1890_v59 = vld [vmem:[%s3703_s0 + $0x134] sm:$0xf0]  ;;  %v1889_v60 = vld [vmem:[%s3703_s0 + $0x134] sm:$0xf]  ;;  %v1685_v62 = vld [vmem:[%s3703_s0 + $0x138] sm:$0xf0] }
  0x11   :  { %v1684_v61 = vor.u32 %v1890_v59, %v1683_v58  ;;  %v1688_v63 = vor.u32 %v1889_v60, %v1685_v62  ;;  %v1571_v0 = vld [vmem:[%s3703_s0 + $0x50] sm:$0xf]  ;;  %v1862_v1 = vld [vmem:[%s3703_s0 + $0x54] sm:$0xf0]  ;;  %v1861_v2 = vld [vmem:[%s3703_s0 + $0x54] sm:$0xf] }
  0x12   :  { %539 = vmatpush.bf16.msra.mxu0 %v1918_v8  ;;  %2126 = vmatpush.bf16.msra.mxu2 %v1918_v8  ;;  %v1573_v3 = vld [vmem:[%s3703_s0 + $0x58] sm:$0xf0]  ;;  %v1572_v4 = vor.u32 %v1862_v1, %v1571_v0  ;;  %v1579_v6 = vld [vmem:[%s3703_s0 + $0x60] sm:$0xf]  ;;  %v1864_v7 = vld [vmem:[%s3703_s0 + $0x64] sm:$0xf0] }
  0x13   :  { %708 = vmatpush.bf16.msra.mxu1 %v1926_v9  ;;  %2134 = vmatpush.bf16.msra.mxu3 %v1926_v9  ;;  %v1576_v5 = vor.u32 %v1861_v2, %v1573_v3  ;;  %v1863_v8 = vld [vmem:[%s3703_s0 + $0x64] sm:$0xf]  ;;  %v1581_v9 = vld [vmem:[%s3703_s0 + $0x68] sm:$0xf0]  ;;  %v1587_v18 = vld [vmem:[%s3703_s0 + $0x70] sm:$0xf] }
  0x14   :  { %v1693_v16 = vld [vmem:[%s3703_s0 + $0x148] sm:$0xf0]  ;;  %v1866_v19 = vld [vmem:[%s3703_s0 + $0x74] sm:$0xf0]  ;;  %v1699_v22 = vld [vmem:[%s3703_s0 + $0x150] sm:$0xf] }
  0x15   :  { %v1894_v23 = vld [vmem:[%s3703_s0 + $0x154] sm:$0xf0]  ;;  %v1893_v24 = vld [vmem:[%s3703_s0 + $0x154] sm:$0xf]  ;;  %v1588_v25 = vor.u32 %v1866_v19, %v1587_v18  ;;  %v1701_v28 = vld [vmem:[%s3703_s0 + $0x158] sm:$0xf0] }
  0x16   :  { %540 = vmatpush.bf16.msra.mxu0 %v1917_v10  ;;  %2127 = vmatpush.bf16.msra.mxu2 %v1917_v10  ;;  %v1691_v10 = vld [vmem:[%s3703_s0 + $0x140] sm:$0xf]  ;;  %v1704_v29 = vor.u32 %v1893_v24, %v1701_v28  ;;  %v1868_v31 = vld [vmem:[%s3703_s0 + $0x84] sm:$0xf0]  ;;  %v1895_v36 = vld [vmem:[%s3703_s0 + $0x164] sm:$0xf] }
  0x17   :  { %709 = vmatpush.bf16.msra.mxu1 %v1925_v11  ;;  %2135 = vmatpush.bf16.msra.mxu3 %v1925_v11  ;;  %v1892_v11 = vld [vmem:[%s3703_s0 + $0x144] sm:$0xf0]  ;;  %v1595_v30 = vld [vmem:[%s3703_s0 + $0x80] sm:$0xf]  ;;  %v1709_v40 = vld [vmem:[%s3703_s0 + $0x168] sm:$0xf0] }
  0x18   :  { %v1707_v34 = vld [vmem:[%s3703_s0 + $0x160] sm:$0xf]  ;;  %v1896_v35 = vld [vmem:[%s3703_s0 + $0x164] sm:$0xf0]  ;;  %v1712_v43 = vor.u32 %v1895_v36, %v1709_v40  ;;  %v1603_v48 = vld [vmem:[%s3703_s0 + $0x90] sm:$0xf] }
  0x19   :  { %v1869_v50 = vld [vmem:[%s3703_s0 + $0x94] sm:$0xf]  ;;  %v1715_v52 = vld [vmem:[%s3703_s0 + $0x170] sm:$0xf]  ;;  %v1898_v53 = vld [vmem:[%s3703_s0 + $0x174] sm:$0xf0] }
  0x1a   :  { %541 = vmatpush.bf16.msra.mxu0 %v1916_v12  ;;  %2128 = vmatpush.bf16.msra.mxu2 %v1916_v12  ;;  %v1891_v12 = vld [vmem:[%s3703_s0 + $0x144] sm:$0xf]  ;;  %v1897_v54 = vld [vmem:[%s3703_s0 + $0x174] sm:$0xf]  ;;  %v1717_v58 = vld [vmem:[%s3703_s0 + $0x178] sm:$0xf0] }
  0x1b   :  { %710 = vmatpush.bf16.msra.mxu1 %v1924_v13  ;;  %2136 = vmatpush.bf16.msra.mxu3 %v1924_v13  ;;  %v1580_v13 = vor.u32 %v1864_v7, %v1579_v6  ;;  %v1696_v17 = vor.u32 %v1891_v12, %v1693_v16  ;;  %v1611_v2 = vld [vmem:[%s3703_s0 + $0xa0] sm:$0xf]  ;;  %v1872_v3 = vld [vmem:[%s3703_s0 + $0xa4] sm:$0xf0]  ;;  %v1725_v12 = vld [vmem:[%s3703_s0 + $0x188] sm:$0xf0] }
  0x1c   :  { %v1723_v6 = vld [vmem:[%s3703_s0 + $0x180] sm:$0xf]  ;;  %v1900_v7 = vld [vmem:[%s3703_s0 + $0x184] sm:$0xf0]  ;;  %v1731_v24 = vld [vmem:[%s3703_s0 + $0x190] sm:$0xf] }
  0x1e   :  { %542 = vmatpush.bf16.msra.mxu0 %v1915_v14  ;;  %2129 = vmatpush.bf16.msra.mxu2 %v1915_v14  ;;  %v1584_v14 = vor.u32 %v1863_v8, %v1581_v9  ;;  %v1899_v8 = vld [vmem:[%s3703_s0 + $0x184] sm:$0xf]  ;;  %v1612_v9 = vor.u32 %v1872_v3, %v1611_v2  ;;  %v1090_v2 = vld [vmem:[%s3704_s4 + $0x78] sm:$0xff] }
  0x1f   :  { %711 = vmatpush.bf16.msra.mxu1 %v1923_v15  ;;  %2137 = vmatpush.bf16.msra.mxu3 %v1923_v15  ;;  %v1692_v15 = vor.u32 %v1892_v11, %v1691_v10  ;;  %v1724_v11 = vor.u32 %v1900_v7, %v1723_v6  ;;  %v1635_v6 = vld [vmem:[%s3703_s0 + $0xd0] sm:$0xf]  ;;  %v1878_v7 = vld [vmem:[%s3703_s0 + $0xd4] sm:$0xf0] }
  0x21   :  { %543 = vmatmul.bf16.vlgmr.msra.gmra.mxu0 %v1532_v20  ;;  %628 = vmatmul.bf16.vlgmr.msra.gmra.mxu2 %v1668_v37  ;;  %v1865_v20 = vld [vmem:[%s3703_s0 + $0x74] sm:$0xf]  ;;  %v1596_v37 = vor.u32 %v1868_v31, %v1595_v30  ;;  %v1733_v30 = vld [vmem:[%s3703_s0 + $0x198] sm:$0xf0] }
  0x22   :  { %712 = vmatmul.bf16.vlgmr.msra.gmra.mxu1 %v1536_v21  ;;  %797 = vmatmul.bf16.vlgmr.msra.gmra.mxu3 %v1672_v39  ;;  %v1589_v21 = vld [vmem:[%s3703_s0 + $0x78] sm:$0xf0]  ;;  %v1708_v39 = vor.u32 %v1896_v35, %v1707_v34 }
  0x23   :  { %1091 = vmatpush.msrb.mxu2 %v1090_v2  ;;  %1111 = vmatpush.msrb.mxu3 %v1090_v2 }
  0x31   :  { %548 = vmatmul.bf16.gmra.mxu0 %v1540_v26  ;;  %633 = vmatmul.bf16.gmra.mxu2 %v1676_v49  ;;  %v1592_v26 = vor.u32 %v1865_v20, %v1589_v21  ;;  %v1870_v49 = vld [vmem:[%s3703_s0 + $0x94] sm:$0xf0]  ;;  %v1619_v20 = vld [vmem:[%s3703_s0 + $0xb0] sm:$0xf] }
  0x32   :  { %717 = vmatmul.bf16.gmra.mxu1 %v1544_v27  ;;  %802 = vmatmul.bf16.gmra.mxu3 %v1680_v51  ;;  %v1700_v27 = vor.u32 %v1894_v23, %v1699_v22  ;;  %v1605_v51 = vld [vmem:[%s3703_s0 + $0x98] sm:$0xf0]  ;;  %v1604_v55 = vor.u32 %v1870_v49, %v1603_v48  ;;  %v1874_v21 = vld [vmem:[%s3703_s0 + $0xb4] sm:$0xf0]  ;;  %v1873_v22 = vld [vmem:[%s3703_s0 + $0xb4] sm:$0xf] }
  0x33   :  { %v1621_v23 = vld [vmem:[%s3703_s0 + $0xb8] sm:$0xf0] }
  0x34   :  { %v1624_v28 = vor.u32 %v1873_v22, %v1621_v23 }
  0x41   :  { %553 = vmatmul.bf16.gmra.mxu0 %v1548_v32  ;;  %638 = vmatmul.bf16.gmra.mxu2 %v1684_v61  ;;  %v1867_v32 = vld [vmem:[%s3703_s0 + $0x84] sm:$0xf]  ;;  %v1720_v61 = vor.u32 %v1897_v54, %v1717_v58 }
  0x42   :  { %722 = vmatmul.bf16.gmra.mxu1 %v1552_v33  ;;  %807 = vmatmul.bf16.gmra.mxu3 %v1688_v63  ;;  %v1597_v33 = vld [vmem:[%s3703_s0 + $0x88] sm:$0xf0] }
  0x43   :  { %v1600_v38 = vor.u32 %v1867_v32, %v1597_v33 }
  0x51   :  { %558 = vmatmul.bf16.gmra.mxu0 %v1556_v44  ;;  %643 = vmatmul.bf16.gmra.mxu2 %v1692_v15  ;;  %v1728_v15 = vor.u32 %v1899_v8, %v1725_v12  ;;  %v1877_v8 = vld [vmem:[%s3703_s0 + $0xd4] sm:$0xf] }
  0x52   :  { %727 = vmatmul.bf16.gmra.mxu1 %v1560_v45  ;;  %812 = vmatmul.bf16.gmra.mxu3 %v1696_v17 }
  0x61   :  { %563 = vmatmul.bf16.gmra.mxu0 %v1564_v56  ;;  %648 = vmatmul.bf16.gmra.mxu2 %v1700_v27  ;;  %v1608_v56 = vor.u32 %v1869_v50, %v1605_v51  ;;  %v1620_v27 = vor.u32 %v1874_v21, %v1619_v20  ;;  %v1739_v50 = vld [vmem:[%s3703_s0 + $0x1a0] sm:$0xf]  ;;  %v1904_v51 = vld [vmem:[%s3703_s0 + $0x1a4] sm:$0xf0]  ;;  %v1749_v21 = vld [vmem:[%s3703_s0 + $0x1b8] sm:$0xf0] }
  0x62   :  { %732 = vmatmul.bf16.gmra.mxu1 %v1568_v57  ;;  %817 = vmatmul.bf16.gmra.mxu3 %v1704_v29  ;;  %v1716_v57 = vor.u32 %v1898_v53, %v1715_v52  ;;  %v1903_v52 = vld [vmem:[%s3703_s0 + $0x1a4] sm:$0xf] }
  0x71   :  { %568 = vmatmul.bf16.gmra.mxu0 %v1572_v4  ;;  %653 = vmatmul.bf16.gmra.mxu2 %v1708_v39  ;;  %v1871_v4 = vld [vmem:[%s3703_s0 + $0xa4] sm:$0xf] }
  0x72   :  { %737 = vmatmul.bf16.gmra.mxu1 %v1576_v5  ;;  %822 = vmatmul.bf16.gmra.mxu3 %v1712_v43  ;;  %v1613_v5 = vld [vmem:[%s3703_s0 + $0xa8] sm:$0xf0]  ;;  %v1875_v43 = vld [vmem:[%s3703_s0 + $0xc4] sm:$0xf] }
  0x73   :  { %v1616_v10 = vor.u32 %v1871_v4, %v1613_v5 }
  0x81   :  { %573 = vmatmul.bf16.gmra.mxu0 %v1580_v13  ;;  %658 = vmatmul.bf16.gmra.mxu2 %v1716_v57 }
  0x82   :  { %742 = vmatmul.bf16.gmra.mxu1 %v1584_v14  ;;  %827 = vmatmul.bf16.gmra.mxu3 %v1720_v61 }
  0x91   :  { %578 = vmatmul.bf16.gmra.mxu0 %v1588_v25  ;;  %663 = vmatmul.bf16.gmra.mxu2 %v1724_v11  ;;  %v1902_v25 = vld [vmem:[%s3703_s0 + $0x194] sm:$0xf0] }
  0x92   :  { %747 = vmatmul.bf16.gmra.mxu1 %v1592_v26  ;;  %832 = vmatmul.bf16.gmra.mxu3 %v1728_v15  ;;  %v1901_v26 = vld [vmem:[%s3703_s0 + $0x194] sm:$0xf]  ;;  %v1732_v29 = vor.u32 %v1902_v25, %v1731_v24 }
  0x93   :  { %v1736_v33 = vor.u32 %v1901_v26, %v1733_v30  ;;  %v1905_v15 = vld [vmem:[%s3703_s0 + $0x1b4] sm:$0xf] }
  0x94   :  { %v1752_v24 = vor.u32 %v1905_v15, %v1749_v21 }
  0x9e   :  { %v544_v41 = vpop.f32.mrf.mxu0 }
  0x9f   :  { %v713_v42 = vpop.f32.mrf.mxu1 }
  0xa0   :  { %v2403_v44 = vadd.f32 %v713_v42, %v544_v41  ;;  %v1627_v41 = vld [vmem:[%s3703_s0 + $0xc0] sm:$0xf]  ;;  %v1876_v42 = vld [vmem:[%s3703_s0 + $0xc4] sm:$0xf0] }
  0xa1   :  { %583 = vmatmul.bf16.gmra.mxu0 %v1596_v37  ;;  %668 = vmatmul.bf16.gmra.mxu2 %v1732_v29  ;;  %v1628_v53 = vor.u32 %v1876_v42, %v1627_v41  ;;  %v1089_v29 = vld [vmem:[%s3704_s4 + $0x70] sm:$0xff] }
  0xa2   :  { %752 = vmatmul.bf16.gmra.mxu1 %v1600_v38  ;;  %837 = vmatmul.bf16.gmra.mxu3 %v1736_v33  ;;  %v1643_v33 = vld [vmem:[%s3703_s0 + $0xe0] sm:$0xf] }
  0xa3   :  { %1092 = vmatpush.msrb.mxu2 %v1089_v29  ;;  %1112 = vmatpush.msrb.mxu3 %v1089_v29 }
  0xa4   :  { %v629_v35 = vpop.f32.mrf.mxu2 }
  0xa5   :  { %v798_v36 = vpop.f32.mrf.mxu3 }
  0xa6   :  { %v546_v45 = vpop.f32.mrf.mxu0  ;;  %v2489_v37 = vadd.f32 %v798_v36, %v629_v35  ;;  %v1880_v35 = vld [vmem:[%s3703_s0 + $0xe4] sm:$0xf0]  ;;  %v1879_v36 = vld [vmem:[%s3703_s0 + $0xe4] sm:$0xf] }
  0xa7   :  { %v715_v46 = vpop.f32.mrf.mxu1 }
  0xa8   :  { %v2405_v47 = vadd.f32 %v715_v46, %v546_v45  ;;  %v1629_v45 = vld [vmem:[%s3703_s0 + $0xc8] sm:$0xf0] }
  0xa9   :  { %v1632_v54 = vor.u32 %v1875_v43, %v1629_v45  ;;  %v1755_v43 = vld [vmem:[%s3703_s0 + $0x1c0] sm:$0xf]  ;;  %v1908_v45 = vld [vmem:[%s3703_s0 + $0x1c4] sm:$0xf0] }
  0xac   :  { %v631_v46 = vpop.f32.mrf.mxu2 }
  0xad   :  { %v800_v48 = vpop.f32.mrf.mxu3 }
  0xae   :  { %v549_v59 = vpop.f32.mrf.mxu0  ;;  %v2505_v49 = vadd.f32 %v800_v48, %v631_v46  ;;  %v1907_v46 = vld [vmem:[%s3703_s0 + $0x1c4] sm:$0xf]  ;;  %v1644_v48 = vor.u32 %v1880_v35, %v1643_v33  ;;  %v1659_v35 = vld [vmem:[%s3703_s0 + $0x100] sm:$0xf] }
  0xaf   :  { %v718_v60 = vpop.f32.mrf.mxu1 }
  0xb0   :  { %v2431_v62 = vadd.f32 %v718_v60, %v549_v59 }
  0xb1   :  { %588 = vmatmul.bf16.gmra.mxu0 %v1604_v55  ;;  %v1740_v55 = vor.u32 %v1904_v51, %v1739_v50  ;;  %v1756_v51 = vor.u32 %v1908_v45, %v1755_v43 }
  0xb2   :  { %3729 = vst [vmem:[#allocation2_spill] sm:$0xff] %v2431_v62  ;;  %757 = vmatmul.bf16.gmra.mxu1 %v1608_v56  ;;  %v1741_v56 = vld [vmem:[%s3703_s0 + $0x1a8] sm:$0xf0] }
  0xb3   :  { %v1744_v59 = vor.u32 %v1903_v52, %v1741_v56  ;;  %673 = vmatmul.bf16.gmra.mxu2 %v1740_v55  ;;  %v1757_v52 = vld [vmem:[%s3703_s0 + $0x1c8] sm:$0xf0] }
  0xb4   :  { %v634_v61 = vpop.f32.mrf.mxu2  ;;  %v1760_v55 = vor.u32 %v1907_v46, %v1757_v52  ;;  %v1771_v46 = vld [vmem:[%s3703_s0 + $0x1e0] sm:$0xf] }
  0xb5   :  { %842 = vmatmul.bf16.gmra.mxu3 %v1744_v59 }
  0xb6   :  { %v551_v63 = vpop.f32.mrf.mxu0 }
  0xb7   :  { %v720_v0 = vpop.f32.mrf.mxu1 }
  0xb8   :  { %v2433_v1 = vadd.f32 %v720_v0, %v551_v63  ;;  %v803_v63 = vpop.f32.mrf.mxu3 }
  0xb9   :  { %v2521_v0 = vadd.f32 %v803_v63, %v634_v61 }
  0xba   :  { %3730 = vst [vmem:[#allocation3_spill] sm:$0xff] %v2433_v1 }
  0xbe   :  { %v554_v13 = vpop.f32.mrf.mxu0 }
  0xbf   :  { %v723_v14 = vpop.f32.mrf.mxu1 }
  0xc0   :  { %v2459_v16 = vadd.f32 %v723_v14, %v554_v13  ;;  %v805_v11 = vpop.f32.mrf.mxu3  ;;  %v1747_v13 = vld [vmem:[%s3703_s0 + $0x1b0] sm:$0xf]  ;;  %v1906_v14 = vld [vmem:[%s3703_s0 + $0x1b4] sm:$0xf0] }
  0xc1   :  { %593 = vmatmul.bf16.gmra.mxu0 %v1612_v9  ;;  %v1637_v9 = vld [vmem:[%s3703_s0 + $0xd8] sm:$0xf0]  ;;  %v1748_v20 = vor.u32 %v1906_v14, %v1747_v13  ;;  %v1909_v13 = vld [vmem:[%s3703_s0 + $0x1d4] sm:$0xf] }
  0xc2   :  { %762 = vmatmul.bf16.gmra.mxu1 %v1616_v10  ;;  %v636_v10 = vpop.f32.mrf.mxu2 }
  0xc3   :  { %v2540_v12 = vadd.f32 %v805_v11, %v636_v10  ;;  %678 = vmatmul.bf16.gmra.mxu2 %v1748_v20  ;;  %v1763_v10 = vld [vmem:[%s3703_s0 + $0x1d0] sm:$0xf]  ;;  %v1910_v11 = vld [vmem:[%s3703_s0 + $0x1d4] sm:$0xf0] }
  0xc5   :  { %847 = vmatmul.bf16.gmra.mxu3 %v1752_v24 }
  0xc6   :  { %v556_v17 = vpop.f32.mrf.mxu0 }
  0xc7   :  { %v725_v18 = vpop.f32.mrf.mxu1 }
  0xc8   :  { %v2461_v19 = vadd.f32 %v725_v18, %v556_v17  ;;  %v1636_v17 = vor.u32 %v1878_v7, %v1635_v6  ;;  %v1640_v18 = vor.u32 %v1877_v8, %v1637_v9  ;;  %v1881_v6 = vld [vmem:[%s3703_s0 + $0xf4] sm:$0xf]  ;;  %v1653_v7 = vld [vmem:[%s3703_s0 + $0xf8] sm:$0xf0] }
  0xc9   :  { %v1656_v15 = vor.u32 %v1881_v6, %v1653_v7 }
  0xca   :  { %v639_v26 = vpop.f32.mrf.mxu2 }
  0xce   :  { %v559_v31 = vpop.f32.mrf.mxu0 }
  0xcf   :  { %v728_v32 = vpop.f32.mrf.mxu1 }
  0xd0   :  { %v2487_v34 = vadd.f32 %v728_v32, %v559_v31 }
  0xd1   :  { %598 = vmatmul.bf16.gmra.mxu0 %v1620_v27  ;;  %v808_v27 = vpop.f32.mrf.mxu3 }
  0xd2   :  { %3731 = vst [vmem:[#allocation4_spill] sm:$0xff] %v2487_v34  ;;  %767 = vmatmul.bf16.gmra.mxu1 %v1624_v28  ;;  %v2556_v28 = vadd.f32 %v808_v27, %v639_v26  ;;  %v1087_v26 = vld [vmem:[%s3704_s4 + $0x60] sm:$0xff] }
  0xd3   :  { %683 = vmatmul.bf16.gmra.mxu2 %v1756_v51 }
  0xd5   :  { %852 = vmatmul.bf16.gmra.mxu3 %v1760_v55 }
  0xd6   :  { %v561_v38 = vpop.f32.mrf.mxu0 }
  0xd7   :  { %v730_v39 = vpop.f32.mrf.mxu1 }
  0xd8   :  { %v2491_v40 = vadd.f32 %v730_v39, %v561_v38  ;;  %v1645_v38 = vld [vmem:[%s3703_s0 + $0xe8] sm:$0xf0]  ;;  %v641_v39 = vpop.f32.mrf.mxu2 }
  0xd9   :  { %v810_v41 = vpop.f32.mrf.mxu3  ;;  %v1648_v50 = vor.u32 %v1879_v36, %v1645_v38  ;;  %v1884_v36 = vld [vmem:[%s3703_s0 + $0x104] sm:$0xf0]  ;;  %v1883_v38 = vld [vmem:[%s3703_s0 + $0x104] sm:$0xf] }
  0xda   :  { %3732 = vst [vmem:[#allocation5_spill] sm:$0xff] %v2491_v40  ;;  %v2575_v42 = vadd.f32 %v810_v41, %v641_v39  ;;  %v1661_v39 = vld [vmem:[%s3703_s0 + $0x108] sm:$0xf0]  ;;  %v1660_v51 = vor.u32 %v1884_v36, %v1659_v35  ;;  %v1085_v36 = vld [vmem:[%s3704_s4 + $0x50] sm:$0xff] }
  0xdb   :  { %v1664_v52 = vor.u32 %v1883_v38, %v1661_v39 }
  0xdc   :  { %3737 = vst [vmem:[#allocation10_spill] sm:$0xff] %v2575_v42 }
  0xde   :  { %v564_v57 = vpop.f32.mrf.mxu0 }
  0xdf   :  { %v733_v58 = vpop.f32.mrf.mxu1 }
  0xe0   :  { %v2519_v60 = vadd.f32 %v733_v58, %v564_v57  ;;  %v2591_v57 = vpop.f32.mrf.mxu2  ;;  %v1088_v58 = vld [vmem:[%s3704_s4 + $0x68] sm:$0xff] }
  0xe1   :  { %603 = vmatmul.bf16.gmra.mxu0 %v1628_v53  ;;  %v2596_v59 = vpop.f32.mrf.mxu3  ;;  %1093 = vmatpush.msrb.mxu2 %v1088_v58 }
  0xe2   :  { %3733 = vst [vmem:[#allocation6_spill] sm:$0xff] %v2519_v60  ;;  %772 = vmatmul.bf16.gmra.mxu1 %v1632_v54  ;;  %1113 = vmatpush.msrb.mxu3 %v1088_v58 }
  0xe3   :  { %1094 = vmatpush.msrb.mxu2 %v1087_v26 }
  0xe4   :  { %1114 = vmatpush.msrb.mxu3 %v1087_v26 }
  0xe6   :  { %v566_v3 = vpop.f32.mrf.mxu0 }
  0xe7   :  { %v735_v4 = vpop.f32.mrf.mxu1 }
  0xe8   :  { %v2526_v5 = vadd.f32 %v735_v4, %v566_v3  ;;  %v1651_v3 = vld [vmem:[%s3703_s0 + $0xf0] sm:$0xf]  ;;  %v1882_v4 = vld [vmem:[%s3703_s0 + $0xf4] sm:$0xf0]  ;;  %v2612_v8 = vpop.f32.mrf.mxu2 }
  0xe9   :  { %v2614_v9 = vpop.f32.mrf.mxu3  ;;  %v1652_v14 = vor.u32 %v1882_v4, %v1651_v3  ;;  %v1086_v4 = vld [vmem:[%s3704_s4 + $0x58] sm:$0xff] }
  0xea   :  { %3734 = vst [vmem:[#allocation7_spill] sm:$0xff] %v2526_v5  ;;  %1095 = vmatpush.msrb.mxu2 %v1086_v4  ;;  %1115 = vmatpush.msrb.mxu3 %v1086_v4 }
  0xec   :  { %1096 = vmatpush.msrb.mxu2 %v1085_v36  ;;  %1116 = vmatpush.msrb.mxu3 %v1085_v36 }
  0xee   :  { %v569_v22 = vpop.f32.mrf.mxu0 }
  0xef   :  { %v738_v23 = vpop.f32.mrf.mxu1 }
  0xf0   :  { %v2554_v25 = vadd.f32 %v738_v23, %v569_v22  ;;  %v649_v24 = vpop.f32.mrf.mxu2 }
  0xf1   :  { %608 = vmatmul.bf16.gmra.mxu0 %v1636_v17  ;;  %v1764_v17 = vor.u32 %v1910_v11, %v1763_v10  ;;  %v818_v27 = vpop.f32.mrf.mxu3 }
  0xf2   :  { %3735 = vst [vmem:[#allocation8_spill] sm:$0xff] %v2554_v25  ;;  %777 = vmatmul.bf16.gmra.mxu1 %v1640_v18  ;;  %v1765_v18 = vld [vmem:[%s3703_s0 + $0x1d8] sm:$0xf0]  ;;  %v2633_v29 = vadd.f32 %v818_v27, %v649_v24 }
  0xf3   :  { %v1768_v22 = vor.u32 %v1909_v13, %v1765_v18  ;;  %688 = vmatmul.bf16.gmra.mxu2 %v1764_v17  ;;  %v1779_v18 = vld [vmem:[%s3703_s0 + $0x1f0] sm:$0xf]  ;;  %v1781_v24 = vld [vmem:[%s3703_s0 + $0x1f8] sm:$0xf0] }
  0xf5   :  { %857 = vmatmul.bf16.gmra.mxu3 %v1768_v22 }
  0xf6   :  { %v571_v30 = vpop.f32.mrf.mxu0 }
  0xf7   :  { %v740_v31 = vpop.f32.mrf.mxu1 }
  0xf8   :  { %v2561_v32 = vadd.f32 %v740_v31, %v571_v30  ;;  %v651_v41 = vpop.f32.mrf.mxu2 }
  0xf9   :  { %v820_v43 = vpop.f32.mrf.mxu3 }
  0xfa   :  { %3736 = vst [vmem:[#allocation9_spill] sm:$0xff] %v2561_v32  ;;  %v2649_v45 = vadd.f32 %v820_v43, %v651_v41 }
  0xfe   :  { %v574_v53 = vpop.f32.mrf.mxu0 }
  0xff   :  { %v743_v54 = vpop.f32.mrf.mxu1 }
 0x100   :  { %v2589_v56 = vadd.f32 %v743_v54, %v574_v53  ;;  %v1773_v54 = vld [vmem:[%s3703_s0 + $0x1e8] sm:$0xf0]  ;;  %v654_v3 = vpop.f32.mrf.mxu2 }
 0x101   :  { %613 = vmatmul.bf16.gmra.mxu0 %v1644_v48  ;;  %v1912_v48 = vld [vmem:[%s3703_s0 + $0x1e4] sm:$0xf0]  ;;  %v823_v6 = vpop.f32.mrf.mxu3 }
 0x102   :  { %3738 = vst [vmem:[#allocation11_spill] sm:$0xff] %v2589_v56  ;;  %782 = vmatmul.bf16.gmra.mxu1 %v1648_v50  ;;  %v1911_v50 = vld [vmem:[%s3703_s0 + $0x1e4] sm:$0xf]  ;;  %v1772_v53 = vor.u32 %v1912_v48, %v1771_v46  ;;  %v2668_v7 = vadd.f32 %v823_v6, %v654_v3 }
 0x104   :  { %693 = vmatmul.bf16.gmra.mxu2 %v1772_v53 }
 0x106   :  { %v576_v61 = vpop.f32.mrf.mxu0 }
 0x107   :  { %v745_v63 = vpop.f32.mrf.mxu1 }
 0x108   :  { %v2598_v2 = vadd.f32 %v745_v63, %v576_v61  ;;  %v1776_v61 = vor.u32 %v1911_v50, %v1773_v54 }
 0x10a   :  { %3739 = vst [vmem:[#allocation12_spill] sm:$0xff] %v2598_v2  ;;  %862 = vmatmul.bf16.gmra.mxu3 %v1776_v61 }
 0x10e   :  { %v579_v20 = vpop.f32.mrf.mxu0 }
 0x10f   :  { %v748_v21 = vpop.f32.mrf.mxu1 }
 0x110   :  { %v2628_v23 = vadd.f32 %v748_v21, %v579_v20  ;;  %v1914_v20 = vld [vmem:[%s3703_s0 + $0x1f4] sm:$0xf0]  ;;  %v1913_v21 = vld [vmem:[%s3703_s0 + $0x1f4] sm:$0xf] }
 0x111   :  { %618 = vmatmul.bf16.gmra.mxu0 %v1652_v14  ;;  %v656_v14 = vpop.f32.mrf.mxu2  ;;  %v1780_v22 = vor.u32 %v1914_v20, %v1779_v18 }
 0x112   :  { %3740 = vst [vmem:[#allocation13_spill] sm:$0xff] %v2628_v23  ;;  %787 = vmatmul.bf16.gmra.mxu1 %v1656_v15  ;;  %v825_v15 = vpop.f32.mrf.mxu3 }
 0x113   :  { %v2672_v17 = vadd.f32 %v825_v15, %v656_v14  ;;  %v1083_v15 = vld [vmem:[%s3704_s4 + $0x40] sm:$0xff] }
 0x114   :  { %698 = vmatmul.bf16.gmra.mxu2 %v1780_v22 }
 0x116   :  { %v581_v30 = vpop.f32.mrf.mxu0 }
 0x117   :  { %v750_v31 = vpop.f32.mrf.mxu1 }
 0x118   :  { %v2635_v33 = vadd.f32 %v750_v31, %v581_v30  ;;  %v1784_v30 = vor.u32 %v1913_v21, %v1781_v24 }
 0x119   :  { %v659_v35 = vpop.f32.mrf.mxu2 }
 0x11a   :  { %3741 = vst [vmem:[#allocation14_spill] sm:$0xff] %v2635_v33  ;;  %867 = vmatmul.bf16.gmra.mxu3 %v1784_v30  ;;  %v828_v38 = vpop.f32.mrf.mxu3 }
 0x11b   :  { %v2691_v39 = vadd.f32 %v828_v38, %v659_v35 }
 0x11d   :  { %3743 = vst [vmem:[#allocation16_spill] sm:$0xff] %v2691_v39 }
 0x11e   :  { %v584_v55 = vpop.f32.mrf.mxu0 }
 0x11f   :  { %v753_v58 = vpop.f32.mrf.mxu1 }
 0x120   :  { %v2663_v63 = vadd.f32 %v753_v58, %v584_v55 }
 0x121   :  { %623 = vmatmul.bf16.gmra.mxu0 %v1660_v51  ;;  %v661_v48 = vpop.f32.mrf.mxu2  ;;  %v1084_v51 = vld [vmem:[%s3704_s4 + $0x48] sm:$0xff] }
 0x122   :  { %792 = vmatmul.bf16.gmra.mxu1 %v1664_v52  ;;  %v830_v50 = vpop.f32.mrf.mxu3  ;;  %1097 = vmatpush.msrb.mxu2 %v1084_v51 }
 0x123   :  { %v2698_v52 = vadd.f32 %v830_v50, %v661_v48  ;;  %1117 = vmatpush.msrb.mxu3 %v1084_v51 }
 0x124   :  { %1098 = vmatpush.msrb.mxu2 %v1083_v15 }
 0x125   :  { %3745 = vst [vmem:[#allocation18_spill] sm:$0xff] %v2698_v52  ;;  %1118 = vmatpush.msrb.mxu3 %v1083_v15 }
 0x126   :  { %v586_v10 = vpop.f32.mrf.mxu0 }
 0x127   :  { %v755_v11 = vpop.f32.mrf.mxu1 }
 0x128   :  { %v2670_v13 = vadd.f32 %v755_v11, %v586_v10 }
 0x129   :  { %v664_v58 = vpop.f32.mrf.mxu2 }
 0x12a   :  { %3742 = vst [vmem:[#allocation15_spill] sm:$0xff] %v2670_v13  ;;  %v833_v61 = vpop.f32.mrf.mxu3 }
 0x12b   :  { %v2702_v3 = vadd.f32 %v833_v61, %v664_v58 }
 0x12e   :  { %v589_v26 = vpop.f32.mrf.mxu0 }
 0x12f   :  { %v758_v27 = vpop.f32.mrf.mxu1 }
 0x130   :  { %v2686_v31 = vadd.f32 %v758_v27, %v589_v26 }
 0x131   :  { %v666_v11 = vpop.f32.mrf.mxu2 }
 0x132   :  { %v835_v14 = vpop.f32.mrf.mxu3 }
 0x133   :  { %v2709_v18 = vadd.f32 %v835_v14, %v666_v11  ;;  %v873_v11 = vadd.f32 %v2405_v47, %v2403_v44  ;;  %v944_v14 = vmul.f32 %v2431_v62, %v2431_v62 }
 0x136   :  { %v591_v41 = vpop.f32.mrf.mxu0 }
 0x137   :  { %v760_v43 = vpop.f32.mrf.mxu1 }
 0x138   :  { %v2693_v46 = vadd.f32 %v760_v43, %v591_v41  ;;  %v1082_v41 = vld [vmem:[%s3704_s4 + $0x38] sm:$0xff] }
 0x139   :  { %v669_v24 = vpop.f32.mrf.mxu2  ;;  %1099 = vmatpush.msrb.mxu2 %v1082_v41  ;;  %1119 = vmatpush.msrb.mxu3 %v1082_v41 }
 0x13a   :  { %3744 = vst [vmem:[#allocation17_spill] sm:$0xff] %v2693_v46  ;;  %v838_v26 = vpop.f32.mrf.mxu3 }
 0x13b   :  { %v2713_v27 = vadd.f32 %v838_v26, %v669_v24  ;;  %v1081_v24 = vld [vmem:[%s3704_s4 + $0x30] sm:$0xff] }
 0x13c   :  { %1100 = vmatpush.msrb.mxu2 %v1081_v24  ;;  %1120 = vmatpush.msrb.mxu3 %v1081_v24  ;;  %v949_v24 = vmul.f32 %v2491_v40, %v2491_v40 }
 0x13e   :  { %v594_v53 = vpop.f32.mrf.mxu0 }
 0x13f   :  { %v763_v54 = vpop.f32.mrf.mxu1 }
 0x140   :  { %v2700_v55 = vadd.f32 %v763_v54, %v594_v53 }
 0x141   :  { %v671_v36 = vpop.f32.mrf.mxu2 }
 0x142   :  { %v840_v38 = vpop.f32.mrf.mxu3 }
 0x143   :  { %v2722_v43 = vadd.f32 %v840_v38, %v671_v36  ;;  %v946_v38 = vmul.f32 %v2459_v16, %v2459_v16 }
 0x146   :  { %v596_v4 = vpop.f32.mrf.mxu0 }
 0x147   :  { %v765_v6 = vpop.f32.mrf.mxu1 }
 0x148   :  { %v2704_v10 = vadd.f32 %v765_v6, %v596_v4  ;;  %v943_v4 = vmul.f32 %v2405_v47, %v2405_v47  ;;  %v942_v6 = vmul.f32 %v2403_v44, %v2403_v44 }
 0x149   :  { %v674_v51 = vpop.f32.mrf.mxu2 }
 0x14a   :  { %v843_v53 = vpop.f32.mrf.mxu3  ;;  %v1006_v15 = vadd.f32 %v943_v4, %v942_v6  ;;  %v947_v6 = vmul.f32 %v2461_v19, %v2461_v19 }
 0x14b   :  { %v2728_v54 = vadd.f32 %v843_v53, %v674_v51 }
 0x14c   :  { %v1007_v26 = vadd.f32 %v1006_v15, %v944_v14  ;;  %v948_v14 = vmul.f32 %v2487_v34, %v2487_v34 }
 0x14e   :  { %v599_v20 = vpop.f32.mrf.mxu0 }
 0x14f   :  { %v768_v21 = vpop.f32.mrf.mxu1 }
 0x150   :  { %v2711_v22 = vadd.f32 %v768_v21, %v599_v20  ;;  %v874_v20 = vadd.f32 %v873_v11, %v2431_v62  ;;  %v945_v21 = vmul.f32 %v2433_v1, %v2433_v1 }
 0x152   :  { %v875_v36 = vadd.f32 %v874_v20, %v2433_v1  ;;  %v1008_v53 = vadd.f32 %v1007_v26, %v945_v21  ;;  %v950_v26 = vmul.f32 %v2519_v60, %v2519_v60 }
 0x154   :  { %v876_v4 = vadd.f32 %v875_v36, %v2459_v16  ;;  %v1009_v11 = vadd.f32 %v1008_v53, %v946_v38 }
 0x156   :  { %v2715_v30 = vpop.f32.mrf.mxu0  ;;  %v877_v62 = vadd.f32 %v876_v4, %v2461_v19  ;;  %v1010_v15 = vadd.f32 %v1009_v11, %v947_v6  ;;  %v951_v6 = vmul.f32 %v2526_v5, %v2526_v5 }
 0x157   :  { %v2717_v35 = vpop.f32.mrf.mxu1 }
 0x158   :  { %v878_v20 = vadd.f32 %v877_v62, %v2487_v34  ;;  %v1011_v1 = vadd.f32 %v1010_v15, %v948_v14  ;;  %v952_v14 = vmul.f32 %v2554_v25, %v2554_v25  ;;  %v2777_v15 = vpop.f32.mrf.mxu2 }
 0x15a   :  { %v879_v21 = vadd.f32 %v878_v20, %v2491_v40  ;;  %v1012_v53 = vadd.f32 %v1011_v1, %v949_v24  ;;  %v2779_v20 = vpop.f32.mrf.mxu3  ;;  %v953_v1 = vmul.f32 %v2561_v32, %v2561_v32  ;;  %v1080_v24 = vld [vmem:[%s3704_s4 + $0x28] sm:$0xff] }
 0x15b   :  { %1101 = vmatpush.msrb.mxu2 %v1080_v24  ;;  %1121 = vmatpush.msrb.mxu3 %v1080_v24  ;;  %v956_v24 = vmul.f32 %v2628_v23, %v2628_v23 }
 0x15c   :  { %v880_v4 = vadd.f32 %v879_v21, %v2519_v60  ;;  %v1013_v62 = vadd.f32 %v1012_v53, %v950_v26  ;;  %v954_v53 = vmul.f32 %v2589_v56, %v2589_v56 }
 0x15e   :  { %v2724_v48 = vpop.f32.mrf.mxu0  ;;  %v881_v11 = vadd.f32 %v880_v4, %v2526_v5  ;;  %v1014_v40 = vadd.f32 %v1013_v62, %v951_v6 }
 0x15f   :  { %v2726_v50 = vpop.f32.mrf.mxu1 }
 0x160   :  { %v882_v34 = vadd.f32 %v881_v11, %v2554_v25  ;;  %v1015_v21 = vadd.f32 %v1014_v40, %v952_v14  ;;  %v955_v11 = vmul.f32 %v2598_v2, %v2598_v2  ;;  %v957_v14 = vmul.f32 %v2635_v33, %v2635_v33 }
 0x162   :  { %v883_v26 = vadd.f32 %v882_v34, %v2561_v32  ;;  %v1016_v6 = vadd.f32 %v1015_v21, %v953_v1  ;;  %v2799_v32 = vpop.f32.mrf.mxu2  ;;  %v2801_v1 = vpop.f32.mrf.mxu3 }
 0x164   :  { %v884_v62 = vadd.f32 %v883_v26, %v2589_v56  ;;  %v1017_v25 = vadd.f32 %v1016_v6, %v954_v53  ;;  %v958_v53 = vmul.f32 %v2663_v63, %v2663_v63  ;;  %v960_v56 = vmul.f32 %v2686_v31, %v2686_v31 }
 0x166   :  { %v2730_v58 = vpop.f32.mrf.mxu0  ;;  %v885_v60 = vadd.f32 %v884_v62, %v2598_v2  ;;  %v1018_v40 = vadd.f32 %v1017_v25, %v955_v11 }
 0x167   :  { %v2732_v61 = vpop.f32.mrf.mxu1 }
 0x168   :  { %v886_v34 = vadd.f32 %v885_v60, %v2628_v23  ;;  %v1019_v21 = vadd.f32 %v1018_v40, %v956_v24  ;;  %v959_v60 = vmul.f32 %v2670_v13, %v2670_v13 }
 0x16a   :  { %v887_v26 = vadd.f32 %v886_v34, %v2635_v33  ;;  %v1020_v2 = vadd.f32 %v1019_v21, %v957_v14  ;;  %v961_v34 = vmul.f32 %v2693_v46, %v2693_v46  ;;  %v962_v21 = vmul.f32 %v2700_v55, %v2700_v55 }
 0x16c   :  { %v888_v25 = vadd.f32 %v887_v26, %v2663_v63  ;;  %v1021_v11 = vadd.f32 %v1020_v2, %v958_v53  ;;  %v2818_v26 = vpop.f32.mrf.mxu2  ;;  %v2820_v2 = vpop.f32.mrf.mxu3 }
 0x16e   :  { %v2751_v41 = vpop.f32.mrf.mxu0  ;;  %v889_v23 = vadd.f32 %v888_v25, %v2670_v13  ;;  %v1022_v24 = vadd.f32 %v1021_v11, %v959_v60 }
 0x16f   :  { %v2753_v51 = vpop.f32.mrf.mxu1 }
 0x170   :  { %v890_v40 = vadd.f32 %v889_v23, %v2686_v31  ;;  %v1023_v33 = vadd.f32 %v1022_v24, %v960_v56  ;;  %v963_v23 = vmul.f32 %v2704_v10, %v2704_v10  ;;  %v2827_v56 = vadd.f32 %v2717_v35, %v2715_v30 }
 0x171   :  { %v2841_v30 = vadd.f32 %v2732_v61, %v2730_v58 }
 0x172   :  { %v891_v14 = vadd.f32 %v890_v40, %v2693_v46  ;;  %v1024_v13 = vadd.f32 %v1023_v33, %v961_v34  ;;  %v964_v40 = vmul.f32 %v2711_v22, %v2711_v22  ;;  %v2834_v46 = vadd.f32 %v2726_v50, %v2724_v48 }
 0x173   :  { %3747 = vst [vmem:[#allocation20_spill] sm:$0xff] %v2841_v30  ;;  %v2848_v48 = vadd.f32 %v2753_v51, %v2751_v41 }
 0x174   :  { %v892_v60 = vadd.f32 %v891_v14, %v2700_v55  ;;  %v1025_v11 = vadd.f32 %v1024_v13, %v962_v21  ;;  %3746 = vst [vmem:[#allocation19_spill] sm:$0xff] %v2834_v46  ;;  %v965_v14 = vmul.f32 %v2827_v56, %v2827_v56  ;;  %v966_v21 = vmul.f32 %v2834_v46, %v2834_v46  ;;  %v2857_v61 = vpop.f32.mrf.mxu2 }
 0x175   :  { %v968_v51 = vmul.f32 %v2848_v48, %v2848_v48 }
 0x176   :  { %v2767_v36 = vpop.f32.mrf.mxu0  ;;  %v893_v24 = vadd.f32 %v892_v60, %v2704_v10  ;;  %v1026_v33 = vadd.f32 %v1025_v11, %v963_v23 }
 0x177   :  { %v2769_v38 = vpop.f32.mrf.mxu1 }
 0x178   :  { %v894_v34 = vadd.f32 %v893_v24, %v2711_v22  ;;  %v1027_v13 = vadd.f32 %v1026_v33, %v964_v40  ;;  %v967_v24 = vmul.f32 %v2841_v30, %v2841_v30  ;;  %v2855_v58 = vadd.f32 %v2769_v38, %v2767_v36  ;;  %v2859_v40 = vpop.f32.mrf.mxu3 }
 0x17a   :  { %v895_v35 = vadd.f32 %v894_v34, %v2827_v56  ;;  %v1028_v23 = vadd.f32 %v1027_v13, %v965_v14 }
 0x17c   :  { %v896_v11 = vadd.f32 %v895_v35, %v2834_v46  ;;  %v1029_v33 = vadd.f32 %v1028_v23, %v966_v21  ;;  %v969_v35 = vmul.f32 %v2855_v58, %v2855_v58 }
 0x17e   :  { %v614_v4 = vpop.f32.mrf.mxu0  ;;  %v897_v41 = vadd.f32 %v896_v11, %v2841_v30  ;;  %v1030_v14 = vadd.f32 %v1029_v33, %v967_v24 }
 0x17f   :  { %v783_v5 = vpop.f32.mrf.mxu1 }
 0x180   :  { %v2864_v34 = vadd.f32 %v783_v5, %v614_v4  ;;  %v898_v13 = vadd.f32 %v897_v41, %v2848_v48  ;;  %v1031_v38 = vadd.f32 %v1030_v14, %v968_v51 }
 0x182   :  { %v899_v46 = vadd.f32 %v898_v13, %v2855_v58  ;;  %v970_v21 = vmul.f32 %v2864_v34, %v2864_v34  ;;  %v1032_v5 = vadd.f32 %v1031_v38, %v969_v35 }
 0x184   :  { %v900_v4 = vadd.f32 %v899_v46, %v2864_v34  ;;  %v2891_v46 = vpop.f32.mrf.mxu3 }
 0x186   :  { %v616_v6 = vpop.f32.mrf.mxu0 }
 0x187   :  { %v785_v62 = vpop.f32.mrf.mxu1 }
 0x188   :  { %v2869_v36 = vadd.f32 %v785_v62, %v616_v6  ;;  %v1033_v6 = vadd.f32 %v1032_v5, %v970_v21 }
 0x18a   :  { %v971_v24 = vmul.f32 %v2869_v36, %v2869_v36  ;;  %v901_v62 = vadd.f32 %v900_v4, %v2869_v36 }
 0x18e   :  { %v619_v53 = vpop.f32.mrf.mxu0 }
 0x18f   :  { %v788_v25 = vpop.f32.mrf.mxu1 }
 0x190   :  { %v2874_v23 = vadd.f32 %v788_v25, %v619_v53  ;;  %v1079_v53 = vld [vmem:[%s3704_s4 + $0x20] sm:$0xff]  ;;  %v2889_v25 = vpop.f32.mrf.mxu2 }
 0x191   :  { %1102 = vmatpush.msrb.mxu2 %v1079_v53  ;;  %1122 = vmatpush.msrb.mxu3 %v1079_v53 }
 0x192   :  { %v972_v41 = vmul.f32 %v2874_v23, %v2874_v23 }
 0x196   :  { %v621_v50 = vpop.f32.mrf.mxu0 }
 0x197   :  { %v790_v60 = vpop.f32.mrf.mxu1 }
 0x198   :  { %v2879_v33 = vadd.f32 %v790_v60, %v621_v50  ;;  %v1034_v50 = vadd.f32 %v1033_v6, %v971_v24  ;;  %v902_v60 = vadd.f32 %v901_v62, %v2874_v23  ;;  %v976_v62 = vmul.f32 %v2489_v37, %v2489_v37 }
 0x19a   :  { %3748 = vst [vmem:[#allocation21_spill] sm:$0xff] %v2879_v33  ;;  %v973_v14 = vmul.f32 %v2879_v33, %v2879_v33  ;;  %v1035_v13 = vadd.f32 %v1034_v50, %v972_v41 }
 0x19e   :  { %v624_v11 = vpop.f32.mrf.mxu0 }
 0x19f   :  { %v793_v30 = vpop.f32.mrf.mxu1 }
 0x1a0   :  { %v2884_v51 = vadd.f32 %v793_v30, %v624_v11  ;;  %v903_v30 = vadd.f32 %v902_v60, %v2879_v33  ;;  %v1036_v11 = vadd.f32 %v1035_v13, %v973_v14  ;;  %v2908_v60 = vpop.f32.mrf.mxu2  ;;  %v2910_v33 = vpop.f32.mrf.mxu3  ;;  %v977_v14 = vmul.f32 %v2505_v49, %v2505_v49 }
 0x1a2   :  { %v974_v35 = vmul.f32 %v2884_v51, %v2884_v51  ;;  %v904_v5 = vadd.f32 %v903_v30, %v2884_v51 }
 0x1a4   :  { %v1037_v53 = vadd.f32 %v1036_v11, %v974_v35  ;;  %v978_v35 = vmul.f32 %v2521_v0, %v2521_v0  ;;  %v979_v11 = vmul.f32 %v2540_v12, %v2540_v12 }
 0x1a6   :  { %v626_v38 = vpop.f32.mrf.mxu0 }
 0x1a7   :  { %v795_v21 = vpop.f32.mrf.mxu1 }
 0x1a8   :  { %v2900_v4 = vadd.f32 %v795_v21, %v626_v38 }
 0x1aa   :  { %v905_v24 = vadd.f32 %v904_v5, %v2900_v4  ;;  %v975_v6 = vmul.f32 %v2900_v4, %v2900_v4 }
 0x1ac   :  { %v906_v41 = vadd.f32 %v905_v24, %v2489_v37  ;;  %v1038_v50 = vadd.f32 %v1037_v53, %v975_v6  ;;  %v980_v24 = vmul.f32 %v2556_v28, %v2556_v28  ;;  %v2925_v6 = vadd.f32 %v2596_v59, %v2591_v57 }
 0x1ae   :  { %v907_v13 = vadd.f32 %v906_v41, %v2505_v49  ;;  %v1039_v30 = vadd.f32 %v1038_v50, %v976_v62  ;;  %v981_v50 = vmul.f32 %v2575_v42, %v2575_v42  ;;  %v982_v57 = vmul.f32 %v2925_v6, %v2925_v6 }
 0x1b0   :  { %v908_v38 = vadd.f32 %v907_v13, %v2521_v0  ;;  %v1040_v21 = vadd.f32 %v1039_v30, %v977_v14  ;;  %v2932_v14 = vadd.f32 %v2614_v9, %v2612_v8  ;;  %v984_v9 = vmul.f32 %v2633_v29, %v2633_v29 }
 0x1b2   :  { %v909_v5 = vadd.f32 %v908_v38, %v2540_v12  ;;  %v1041_v53 = vadd.f32 %v1040_v21, %v978_v35  ;;  %v2935_v35 = vpop.f32.mrf.mxu2  ;;  %v2937_v38 = vpop.f32.mrf.mxu3 }
 0x1b4   :  { %v910_v62 = vadd.f32 %v909_v5, %v2556_v28  ;;  %v1042_v41 = vadd.f32 %v1041_v53, %v979_v11  ;;  %v983_v11 = vmul.f32 %v2932_v14, %v2932_v14 }
 0x1b6   :  { %v911_v13 = vadd.f32 %v910_v62, %v2575_v42  ;;  %v1043_v30 = vadd.f32 %v1042_v41, %v980_v24  ;;  %v985_v62 = vmul.f32 %v2649_v45, %v2649_v45 }
 0x1b8   :  { %v912_v59 = vadd.f32 %v911_v13, %v2925_v6  ;;  %v1044_v21 = vadd.f32 %v1043_v30, %v981_v50  ;;  %v1078_v50 = vld [vmem:[%s3704_s4 + $0x18] sm:$0xff]  ;;  %v986_v13 = vmul.f32 %v2668_v7, %v2668_v7 }
 0x1b9   :  { %1103 = vmatpush.msrb.mxu2 %v1078_v50  ;;  %1123 = vmatpush.msrb.mxu3 %v1078_v50 }
 0x1ba   :  { %v913_v5 = vadd.f32 %v912_v59, %v2932_v14  ;;  %v1045_v8 = vadd.f32 %v1044_v21, %v982_v57  ;;  %v2957_v59 = vpop.f32.mrf.mxu2  ;;  %v2959_v21 = vpop.f32.mrf.mxu3 }
 0x1bc   :  { %v914_v53 = vadd.f32 %v913_v5, %v2633_v29  ;;  %v1046_v24 = vadd.f32 %v1045_v8, %v983_v11  ;;  %v987_v11 = vmul.f32 %v2672_v17, %v2672_v17 }
 0x1be   :  { %v915_v41 = vadd.f32 %v914_v53, %v2649_v45  ;;  %v1047_v42 = vadd.f32 %v1046_v24, %v984_v9  ;;  %v1077_v9 = vld [vmem:[%s3704_s4 + $0x10] sm:$0xff]  ;;  %v988_v53 = vmul.f32 %v2691_v39, %v2691_v39 }
 0x1bf   :  { %1104 = vmatpush.msrb.mxu2 %v1077_v9  ;;  %1124 = vmatpush.msrb.mxu3 %v1077_v9 }
 0x1c0   :  { %v916_v30 = vadd.f32 %v915_v41, %v2668_v7  ;;  %v1048_v57 = vadd.f32 %v1047_v42, %v985_v62  ;;  %v989_v62 = vmul.f32 %v2698_v52, %v2698_v52 }
 0x1c2   :  { %v1049_v5 = vadd.f32 %v1048_v57, %v986_v13  ;;  %v917_v8 = vadd.f32 %v916_v30, %v2672_v17  ;;  %v1076_v13 = vld [vmem:[%s3704_s4 + $0x8] sm:$0xff]  ;;  %v990_v30 = vmul.f32 %v2702_v3, %v2702_v3 }
 0x1c3   :  { %1105 = vmatpush.msrb.mxu2 %v1076_v13  ;;  %1125 = vmatpush.msrb.mxu3 %v1076_v13 }
 0x1c4   :  { %v918_v42 = vadd.f32 %v917_v8, %v2691_v39  ;;  %v1050_v24 = vadd.f32 %v1049_v5, %v987_v11  ;;  %v991_v11 = vmul.f32 %v2709_v18, %v2709_v18  ;;  %v993_v39 = vmul.f32 %v2722_v43, %v2722_v43 }
 0x1c6   :  { %v919_v41 = vadd.f32 %v918_v42, %v2698_v52  ;;  %v1051_v50 = vadd.f32 %v1050_v24, %v988_v53  ;;  %v696_v42 = vpop.f32.mrf.mxu2  ;;  %v865_v53 = vpop.f32.mrf.mxu3  ;;  %v992_v24 = vmul.f32 %v2713_v27, %v2713_v27 }
 0x1c8   :  { %v920_v57 = vadd.f32 %v919_v41, %v2702_v3  ;;  %v1052_v9 = vadd.f32 %v1051_v50, %v989_v62  ;;  %v2989_v62 = vadd.f32 %v2779_v20, %v2777_v15  ;;  %v3006_v20 = vadd.f32 %v2820_v2, %v2818_v26 }
 0x1c9   :  { %v3020_v26 = vadd.f32 %v2891_v46, %v2889_v25  ;;  %v3035_v46 = vadd.f32 %v2937_v38, %v2935_v35 }
 0x1ca   :  { %v921_v5 = vadd.f32 %v920_v57, %v2709_v18  ;;  %v1053_v8 = vadd.f32 %v1052_v9, %v990_v30  ;;  %v1075_v30 = vld [vmem:[%s3704_s4] sm:$0xff]  ;;  %v994_v57 = vmul.f32 %v2728_v54, %v2728_v54  ;;  %v2999_v9 = vadd.f32 %v2801_v1, %v2799_v32 }
 0x1cb   :  { %1106 = vmatpush.msrb.mxu2 %v1075_v30  ;;  %1126 = vmatpush.msrb.mxu3 %v1075_v30  ;;  %v3013_v32 = vadd.f32 %v2859_v40, %v2857_v61 }
 0x1cc   :  { %v922_v52 = vadd.f32 %v921_v5, %v2713_v27  ;;  %v1054_v13 = vadd.f32 %v1053_v8, %v991_v11 }
 0x1ce   :  { %v923_v41 = vadd.f32 %v922_v52, %v2722_v43  ;;  %v1055_v50 = vadd.f32 %v1054_v13, %v992_v24  ;;  %v995_v52 = vmul.f32 %v2989_v62, %v2989_v62  ;;  %v996_v24 = vmul.f32 %v2999_v9, %v2999_v9  ;;  %v699_v13 = vpop.f32.mrf.mxu2 }
 0x1d0   :  { %v924_v11 = vadd.f32 %v923_v41, %v2728_v54  ;;  %v1056_v15 = vadd.f32 %v1055_v50, %v993_v39  ;;  %v868_v41 = vpop.f32.mrf.mxu3  ;;  %v997_v50 = vmul.f32 %v3006_v20, %v3006_v20 }
 0x1d2   :  { %v925_v5 = vadd.f32 %v924_v11, %v2989_v62  ;;  %v1057_v8 = vadd.f32 %v1056_v15, %v994_v57  ;;  %v998_v57 = vmul.f32 %v3013_v32, %v3013_v32  ;;  %v3028_v11 = vadd.f32 %v2910_v33, %v2908_v60 }
 0x1d3   :  { %v3042_v33 = vadd.f32 %v2959_v21, %v2957_v59 }
 0x1d4   :  { %v926_v1 = vadd.f32 %v925_v5, %v2999_v9  ;;  %v1058_v39 = vadd.f32 %v1057_v8, %v995_v52  ;;  %v999_v52 = vmul.f32 %v3020_v26, %v3020_v26 }
 0x1d6   :  { %v927_v2 = vadd.f32 %v926_v1, %v3006_v20  ;;  %v1059_v30 = vadd.f32 %v1058_v39, %v996_v24  ;;  %v1000_v24 = vmul.f32 %v3028_v11, %v3028_v11  ;;  %v1001_v39 = vmul.f32 %v3035_v46, %v3035_v46  ;;  %v701_v35 = vpop.f32.mrf.mxu2 }
 0x1d8   :  { %v928_v61 = vadd.f32 %v927_v2, %v3013_v32  ;;  %v1060_v40 = vadd.f32 %v1059_v30, %v997_v50  ;;  %v3047_v50 = vadd.f32 %v865_v53, %v696_v42  ;;  %v870_v38 = vpop.f32.mrf.mxu3 }
 0x1da   :  { %v929_v15 = vadd.f32 %v928_v61, %v3020_v26  ;;  %v1061_v25 = vadd.f32 %v1060_v40, %v998_v57  ;;  %v1002_v57 = vmul.f32 %v3042_v33, %v3042_v33  ;;  %v3052_v61 = vadd.f32 %v868_v41, %v699_v13 }
 0x1db   :  { %v1003_v40 = vmul.f32 %v3047_v50, %v3047_v50 }
 0x1dc   :  { %v1062_v5 = vadd.f32 %v1061_v25, %v999_v52  ;;  %v930_v8 = vadd.f32 %v929_v15, %v3028_v11  ;;  %v3057_v15 = vadd.f32 %v870_v38, %v701_v35  ;;  %v1004_v52 = vmul.f32 %v3052_v61, %v3052_v61 }
 0x1de   :  { %v1063_v60 = vadd.f32 %v1062_v5, %v1000_v24  ;;  %v931_v1 = vadd.f32 %v930_v8, %v3035_v46  ;;  %v1005_v13 = vmul.f32 %v3057_v15, %v3057_v15 }
 0x1e0   :  { %v1064_v2 = vadd.f32 %v1063_v60, %v1001_v39  ;;  %v932_v30 = vadd.f32 %v931_v1, %v3042_v33 }
 0x1e2   :  { %v1065_v59 = vadd.f32 %v1064_v2, %v1002_v57  ;;  %v933_v21 = vadd.f32 %v932_v30, %v3047_v50 }
 0x1e4   :  { %v1066_v42 = vadd.f32 %v1065_v59, %v1003_v40  ;;  %v934_v53 = vadd.f32 %v933_v21, %v3052_v61  ;;  %v1155_v40 = vld [vmem:[%s3705_s5 + $0x18] sm:$0xff] }
 0x1e5   :  { %1172 = vmatpush.msra.mxu2 %v1155_v40  ;;  %1195 = vmatpush.msra.mxu3 %v1155_v40 }
 0x1e6   :  { %v1067_v25 = vadd.f32 %v1066_v42, %v1004_v52  ;;  %v935_v5 = vadd.f32 %v934_v53, %v3057_v15  ;;  %v1154_v42 = vld [vmem:[%s3705_s5 + $0x10] sm:$0xff]  ;;  %v1153_v53 = vld [vmem:[%s3705_s5 + $0x8] sm:$0xff]  ;;  %v1152_v52 = vld [vmem:[%s3705_s5] sm:$0xff] }
 0x1e7   :  { %1173 = vmatpush.msra.mxu2 %v1154_v42  ;;  %1196 = vmatpush.msra.mxu3 %v1154_v42  ;;  %v1149_v42 = vld [vmem:[%s3707_s3] sm:$0x1] }
 0x1e8   :  { %v936_v41 = vrot.slane %v935_v5, 4  ;;  %v1068_v8 = vadd.f32 %v1067_v25, %v1005_v13 }
 0x1e9   :  { %1174 = vmatpush.msra.mxu2 %v1153_v53  ;;  %1197 = vmatpush.msra.mxu3 %v1153_v53 }
 0x1ea   :  { %v937_v24 = vadd.f32 %v936_v41, %v935_v5  ;;  %v1069_v60 = vrot.slane %v1068_v8, 4 }
 0x1eb   :  { %1175 = vmatpush.msra.mxu2 %v1152_v52  ;;  %1198 = vmatpush.msra.mxu3 %v1152_v52 }
 0x1ec   :  { %v938_v1 = vrot.slane %v937_v24, 2  ;;  %v1070_v39 = vadd.f32 %v1069_v60, %v1068_v8 }
 0x1ee   :  { %v939_v35 = vadd.f32 %v938_v1, %v937_v24  ;;  %v1071_v38 = vrot.slane %v1070_v39, 2 }
 0x1f0   :  { %v940_v2 = vrot.slane %v939_v35, 1  ;;  %v1072_v30 = vadd.f32 %v1071_v38, %v1070_v39 }
 0x1f2   :  { %v941_v57 = vadd.f32 %v940_v2, %v939_v35  ;;  %v1073_v59 = vrot.slane %v1072_v30, 1 }
 0x1f4   :  { %1107 = vmatmul.f32.vlgmr.msrb.gmra.mxu2 %v941_v57  ;;  %v1074_v21 = vadd.f32 %v1073_v59, %v1072_v30  ;;  %v1136_v57 = vld [vmem:[%s3706_s2] sm:$0x1] }
 0x1f6   :  { %1127 = vmatmul.f32.vlgmr.msrb.gmra.mxu3 %v1074_v21 }
 0x277   :  { %v1108_v25 = vpop.f32.mrf.mxu2 }
 0x278   :  { %v1131_v5 = vmul.f32 0.00048828125, %v1108_v25 }
 0x279   :  { %v1128_v13 = vpop.f32.mrf.mxu3 }
 0x27a   :  { %v1133_v41 = vmul.f32 %v1131_v5, %v1131_v5  ;;  %v1132_v8 = vmul.f32 0.00048828125, %v1128_v13 }
 0x27c   :  { %v1134_v24 = vsub.f32 %v1132_v8, %v1133_v41 }
 0x27e   :  { %v1135_v60 = vmax.f32 %v1134_v24, 0.0  ;;  %v3749_v24 = vld [vmem:[#allocation2_spill] sm:$0xff] }
 0x280   :  { %v1137_v1 = vadd.f32 1e-05, %v1135_v60 }
 0x282   :  { %2138 = vrsqrt.f32 %v1137_v1  ;;  %vm1144_vm1 = vweird.f32 %v1137_v1 }
 0x288   :  { %v2139_v39 = vpop.eup %2138 }
 0x289   :  { %v1139_v35 = vmul.f32 %v2139_v39, %v1137_v1  ;;  %vm1145_vm0 = vweird.f32 %v2139_v39  ;;  %v3750_v1 = vld [vmem:[#allocation3_spill] sm:$0xff] }
 0x28a   :  { %vm1146_vm2 = vmor %vm1144_vm1, %vm1145_vm0 }
 0x28b   :  { %v1140_v38 = vmul.f32 %v2139_v39, %v1139_v35  ;;  %v3751_v35 = vld [vmem:[#allocation4_spill] sm:$0xff] }
 0x28d   :  { %v1141_v2 = vmul.f32 0.5, %v1140_v38  ;;  %v3752_v38 = vld [vmem:[#allocation5_spill] sm:$0xff] }
 0x28f   :  { %v1142_v30 = vsub.f32 1.5, %v1141_v2 }
 0x291   :  { %v1143_v59 = vmul.f32 %v2139_v39, %v1142_v30  ;;  %v3753_v30 = vld [vmem:[#allocation6_spill] sm:$0xff] }
 0x293   :  { %v1147_v21 = vsel %vm1146_vm2, %v2139_v39, %v1143_v59  ;;  %v3754_v59 = vld [vmem:[#allocation7_spill] sm:$0xff] }
 0x294   :  { %v1148_v40 = vmul.f32 %v1147_v21, %v1136_v57  ;;  %v3755_v21 = vld [vmem:[#allocation8_spill] sm:$0xff] }
 0x296   :  { %v1150_v53 = vmul.f32 %v1148_v40, %v1131_v5  ;;  %1849 = vmatmul.msk.f32.vlgmr.msra.gmra.mxu2 %vm1156_vm3, %v1148_v40  ;;  %v3756_v40 = vld [vmem:[#allocation9_spill] sm:$0xff] }
 0x298   :  { %v1151_v52 = vsub.f32 %v1149_v42, %v1150_v53  ;;  %v3757_v53 = vld [vmem:[#allocation11_spill] sm:$0xff] }
 0x29a   :  { %1850 = vmatmul.msk.f32.vlgmr.msra.gmra.mxu3 %vm1156_vm3, %v1151_v52 }
 0x319   :  { %v1177_v25 = vpop.f32.mrf.mxu2 }
 0x31a   :  { %v3083_v13 = vperm.slane %v1177_v25, 0  ;;  %v3758_v25 = vld [vmem:[#allocation12_spill] sm:$0xff] }
 0x31c   :  { %v3087_v41 = vmul.f32 %v3083_v13, %v2403_v44  ;;  %v3091_v8 = vmul.f32 %v3083_v13, %v2405_v47  ;;  %v3095_v60 = vmul.f32 %v3083_v13, %v3749_v24  ;;  %v3099_v5 = vmul.f32 %v3083_v13, %v3750_v1  ;;  %v3759_v1 = vld [vmem:[#allocation13_spill] sm:$0xff] }
 0x31d   :  { %v3103_v39 = vmul.f32 %v3083_v13, %v2459_v16  ;;  %v3107_v44 = vmul.f32 %v3083_v13, %v2461_v19  ;;  %v3111_v47 = vmul.f32 %v3083_v13, %v3751_v35  ;;  %v3115_v2 = vmul.f32 %v3083_v13, %v3752_v38  ;;  %v3760_v38 = vld [vmem:[#allocation14_spill] sm:$0xff] }
 0x31e   :  { %v3119_v57 = vmul.f32 %v3083_v13, %v3753_v30  ;;  %v3123_v16 = vmul.f32 %v3083_v13, %v3754_v59  ;;  %v3127_v19 = vmul.f32 %v3083_v13, %v3755_v21  ;;  %v3131_v42 = vmul.f32 %v3083_v13, %v3756_v40  ;;  %v3761_v21 = vld [vmem:[#allocation15_spill] sm:$0xff] }
 0x31f   :  { %v3135_v52 = vmul.f32 %v3083_v13, %v3757_v53  ;;  %v3139_v24 = vmul.f32 %v3083_v13, %v3758_v25  ;;  %v3143_v35 = vmul.f32 %v3083_v13, %v3759_v1  ;;  %v3147_v30 = vmul.f32 %v3083_v13, %v3760_v38  ;;  %v3763_v25 = vld [vmem:[#allocation17_spill] sm:$0xff] }
 0x320   :  { %v3151_v59 = vmul.f32 %v3083_v13, %v2663_v63  ;;  %v3155_v40 = vmul.f32 %v3083_v13, %v3761_v21  ;;  %v3159_v53 = vmul.f32 %v3083_v13, %v2686_v31  ;;  %v3163_v1 = vmul.f32 %v3083_v13, %v3763_v25 }
 0x321   :  { %v3167_v38 = vmul.f32 %v3083_v13, %v2700_v55  ;;  %v3171_v63 = vmul.f32 %v3083_v13, %v2704_v10  ;;  %v3175_v21 = vmul.f32 %v3083_v13, %v2711_v22  ;;  %v3179_v31 = vmul.f32 %v3083_v13, %v2827_v56 }
 0x322   :  { %3762 = vst [vmem:[#allocation2_spill] sm:$0xff] %v3159_v53  ;;  %v3765_v53 = vld [vmem:[#allocation19_spill] sm:$0xff]  ;;  %v3191_v10 = vmul.f32 %v3083_v13, %v2848_v48  ;;  %v3195_v22 = vmul.f32 %v3083_v13, %v2855_v58  ;;  %v3199_v56 = vmul.f32 %v3083_v13, %v2864_v34  ;;  %v3215_v58 = vmul.f32 %v3083_v13, %v2884_v51 }
 0x323   :  { %3764 = vst [vmem:[#allocation3_spill] sm:$0xff] %v3163_v1  ;;  %v3183_v25 = vmul.f32 %v3083_v13, %v3765_v53  ;;  %v3766_v1 = vld [vmem:[#allocation20_spill] sm:$0xff]  ;;  %v3203_v53 = vmul.f32 %v3083_v13, %v2869_v36  ;;  %v3219_v34 = vmul.f32 %v3083_v13, %v2900_v4  ;;  %v3223_v36 = vmul.f32 %v3083_v13, %v2489_v37 }
 0x324   :  { %v3187_v55 = vmul.f32 %v3083_v13, %v3766_v1  ;;  %v3207_v1 = vmul.f32 %v3083_v13, %v2874_v23  ;;  %v3227_v23 = vmul.f32 %v3083_v13, %v2505_v49  ;;  %v3235_v51 = vmul.f32 %v3083_v13, %v2540_v12 }
 0x325   :  { %3769 = vst [vmem:[#allocation5_spill] sm:$0xff] %v3219_v34  ;;  %v3239_v4 = vmul.f32 %v3083_v13, %v2556_v28  ;;  %v3771_v34 = vld [vmem:[#allocation10_spill] sm:$0xff]  ;;  %v3247_v49 = vmul.f32 %v3083_v13, %v2925_v6  ;;  %v3255_v12 = vmul.f32 %v3083_v13, %v2633_v29  ;;  %v3259_v28 = vmul.f32 %v3083_v13, %v2649_v45 }
 0x326   :  { %3767 = vst [vmem:[#allocation4_spill] sm:$0xff] %v3187_v55  ;;  %v3768_v55 = vld [vmem:[#allocation21_spill] sm:$0xff]  ;;  %v3243_v37 = vmul.f32 %v3083_v13, %v3771_v34  ;;  %v3263_v34 = vmul.f32 %v3083_v13, %v2668_v7  ;;  %v3267_v6 = vmul.f32 %v3083_v13, %v2672_v17  ;;  %v3279_v45 = vmul.f32 %v3083_v13, %v2702_v3 }
 0x327   :  { %v3211_v48 = vmul.f32 %v3083_v13, %v3768_v55  ;;  %3770 = vst [vmem:[#allocation6_spill] sm:$0xff] %v3227_v23  ;;  %v3231_v55 = vmul.f32 %v3083_v13, %v2521_v0  ;;  %v1200_v23 = vpop.f32.mrf.mxu3  ;;  %v3251_v0 = vmul.f32 %v3083_v13, %v2932_v14  ;;  %v3283_v7 = vmul.f32 %v3083_v13, %v2709_v18 }
 0x328   :  { %3772 = vst [vmem:[#allocation7_spill] sm:$0xff] %v3247_v49  ;;  %v3774_v49 = vld [vmem:[#allocation16_spill] sm:$0xff]  ;;  %v3287_v17 = vmul.f32 %v3083_v13, %v2713_v27  ;;  %v3301_v3 = vmul.f32 %v3083_v13, %v2989_v62  ;;  %v3305_v18 = vmul.f32 %v3083_v13, %v2999_v9  ;;  %v3309_v27 = vmul.f32 %v3083_v13, %v3006_v20 }
 0x329   :  { %3773 = vst [vmem:[#allocation8_spill] sm:$0xff] %v3251_v0  ;;  %v3271_v14 = vmul.f32 %v3083_v13, %v3774_v49  ;;  %v3776_v0 = vld [vmem:[#allocation18_spill] sm:$0xff]  ;;  %v3291_v49 = vmul.f32 %v3083_v13, %v2722_v43  ;;  %v3313_v43 = vmul.f32 %v3083_v13, %v3013_v32  ;;  %v3321_v62 = vmul.f32 %v3083_v13, %v3028_v11 }
 0x32a   :  { %v3275_v29 = vmul.f32 %v3083_v13, %v3776_v0  ;;  %v3297_v0 = vmul.f32 %v3083_v13, %v2728_v54  ;;  %3777 = vst [vmem:[#allocation11_spill] sm:$0xff] %v3309_v27  ;;  %v3317_v54 = vmul.f32 %v3083_v13, %v3020_v26  ;;  %v3325_v9 = vmul.f32 %v3083_v13, %v3035_v46 }
 0x32b   :  { %3775 = vst [vmem:[#allocation9_spill] sm:$0xff] %v3271_v14  ;;  %v3293_v14 = vperm.slane %v1200_v23, 0  ;;  %v3329_v20 = vmul.f32 %v3083_v13, %v3042_v33  ;;  %v3333_v32 = vmul.f32 %v3083_v13, %v3047_v50  ;;  %v3337_v26 = vmul.f32 %v3083_v13, %v3052_v61 }
 0x32c   :  { %3778 = vst [vmem:[#allocation12_spill] sm:$0xff] %v3313_v43  ;;  %v3341_v11 = vmul.f32 %v3083_v13, %v3057_v15 }
 0x32d   :  { %3779 = vst [vmem:[#allocation13_spill] sm:$0xff] %v3317_v54  ;;  %v1269_v46 = vadd.f32 %v3293_v14, %v3087_v41  ;;  %v1270_v23 = vadd.f32 %v3293_v14, %v3091_v8  ;;  %v1271_v33 = vadd.f32 %v3293_v14, %v3095_v60  ;;  %v1272_v50 = vadd.f32 %v3293_v14, %v3099_v5 }
 0x32e   :  { %3780 = vst [vmem:[#allocation14_spill] sm:$0xff] %v3321_v62  ;;  %v1273_v61 = vadd.f32 %v3293_v14, %v3103_v39  ;;  %v1275_v15 = vadd.f32 %v3293_v14, %v3111_v47  ;;  %v1276_v13 = vadd.f32 %v3293_v14, %v3115_v2  ;;  %v1277_v41 = vadd.f32 %v3293_v14, %v3119_v57 }
 0x32f   :  { %3781 = vst [vmem:[#allocation15_spill] sm:$0xff] %v3325_v9  ;;  %v1278_v8 = vadd.f32 %v3293_v14, %v3123_v16  ;;  %v3365_v60 = vadd.f32 %v3293_v14, %v3127_v19  ;;  %v3369_v5 = vadd.f32 %v3293_v14, %v3131_v42  ;;  %v3373_v39 = vadd.f32 %v3293_v14, %v3135_v52  ;;  %v3786_v19 = vld [vmem:[#allocation2_spill] sm:$0xff]  ;;  %v3787_v52 = vld [vmem:[#allocation3_spill] sm:$0xff] }
 0x330   :  { %3782 = vst [vmem:[#allocation17_spill] sm:$0xff] %v3329_v20  ;;  %v3381_v47 = vadd.f32 %v3293_v14, %v3143_v35  ;;  %v3385_v2 = vadd.f32 %v3293_v14, %v3147_v30  ;;  %v3389_v57 = vadd.f32 %v3293_v14, %v3151_v59  ;;  %v3393_v16 = vadd.f32 %v3293_v14, %v3155_v40 }
 0x331   :  { %3783 = vst [vmem:[#allocation19_spill] sm:$0xff] %v3333_v32  ;;  %v3397_v42 = vadd.f32 %v3293_v14, %v3786_v19  ;;  %v3405_v35 = vadd.f32 %v3293_v14, %v3167_v38  ;;  %v3409_v30 = vadd.f32 %v3293_v14, %v3171_v63  ;;  %v3413_v59 = vadd.f32 %v3293_v14, %v3175_v21  ;;  %v3790_v32 = vld [vmem:[#allocation6_spill] sm:$0xff] }
 0x332   :  { %3784 = vst [vmem:[#allocation20_spill] sm:$0xff] %v3337_v26  ;;  %v1274_v26 = vadd.f32 %v3293_v14, %v3107_v44  ;;  %v3377_v44 = vadd.f32 %v3293_v14, %v3139_v24  ;;  %v3401_v24 = vadd.f32 %v3293_v14, %v3787_v52  ;;  %v3417_v40 = vadd.f32 %v3293_v14, %v3179_v31  ;;  %v3788_v52 = vld [vmem:[#allocation4_spill] sm:$0xff] }
 0x333   :  { %3785 = vst [vmem:[#allocation21_spill] sm:$0xff] %v3341_v11  ;;  %v3421_v19 = vadd.f32 %v3293_v14, %v3183_v25  ;;  %v3425_v38 = vadd.f32 %v3293_v14, %v3788_v52  ;;  %v3429_v63 = vadd.f32 %v3293_v14, %v3191_v10  ;;  %v3433_v21 = vadd.f32 %v3293_v14, %v3195_v22  ;;  %v3789_v11 = vld [vmem:[#allocation5_spill] sm:$0xff] }
 0x334   :  { %v3437_v31 = vadd.f32 %v3293_v14, %v3199_v56  ;;  %v3441_v25 = vadd.f32 %v3293_v14, %v3203_v53  ;;  %v3445_v52 = vadd.f32 %v3293_v14, %v3207_v1  ;;  %v3449_v10 = vadd.f32 %v3293_v14, %v3211_v48 }
 0x335   :  { %v3453_v22 = vadd.f32 %v3293_v14, %v3215_v58  ;;  %v3457_v56 = vadd.f32 %v3293_v14, %v3789_v11  ;;  %v3461_v53 = vadd.f32 %v3293_v14, %v3223_v36  ;;  %v3465_v1 = vadd.f32 %v3293_v14, %v3790_v32 }
 0x336   :  { %v3469_v48 = vadd.f32 %v3293_v14, %v3231_v55  ;;  %v3473_v58 = vadd.f32 %v3293_v14, %v3235_v51  ;;  %v1333_v20 = vmax.f32 %v1269_v46, 0.0  ;;  %v1334_v9 = vmax.f32 %v1270_v23, 0.0  ;;  %v3794_v46 = vld [vmem:[#allocation8_spill] sm:$0xff] }
 0x337   :  { %v1335_v11 = vmax.f32 %v1271_v33, 0.0  ;;  %v1336_v62 = vmax.f32 %v1272_v50, 0.0  ;;  %v1337_v54 = vmax.f32 %v1273_v61, 0.0  ;;  %v1338_v43 = vmax.f32 %v1274_v26, 0.0 }
 0x338   :  { %3791 = vst [vmem:[#allocation10_spill] sm:$0xff] %v3469_v48  ;;  %v3477_v36 = vadd.f32 %v3293_v14, %v3239_v4  ;;  %v3481_v32 = vadd.f32 %v3293_v14, %v3243_v37  ;;  %v1339_v55 = vmax.f32 %v1275_v15, 0.0  ;;  %v1340_v27 = vmax.f32 %v1276_v13, 0.0  ;;  %v3792_v48 = vld [vmem:[#allocation7_spill] sm:$0xff] }
 0x339   :  { %v3485_v51 = vadd.f32 %v3293_v14, %v3792_v48  ;;  %v3489_v23 = vadd.f32 %v3293_v14, %v3794_v46  ;;  %v1341_v33 = vmax.f32 %v1277_v41, 0.0  ;;  %v1342_v26 = vmax.f32 %v1278_v8, 0.0 }
 0x33a   :  { %v3493_v4 = vadd.f32 %v3293_v14, %v3255_v12  ;;  %v1343_v50 = vmax.f32 %v3365_v60, 0.0  ;;  %v1344_v37 = vmax.f32 %v3369_v5, 0.0  ;;  %v1345_v61 = vmax.f32 %v3373_v39, 0.0 }
 0x33b   :  { %3793 = vst [vmem:[#allocation16_spill] sm:$0xff] %v3485_v51  ;;  %v1346_v15 = vmax.f32 %v3377_v44, 0.0  ;;  %v1934_v13 = vpack.c.bf16 %v1334_v9, %v1333_v20  ;;  %v1939_v48 = vpack.c.bf16 %v1336_v62, %v1335_v11  ;;  %v1944_v51 = vpack.c.bf16 %v1338_v43, %v1337_v54  ;;  %v3795_v62 = vld [vmem:[#allocation9_spill] sm:$0xff] }
 0x33c   :  { %v3501_v46 = vadd.f32 %v3293_v14, %v3259_v28  ;;  %v1347_v41 = vmax.f32 %v3381_v47, 0.0  ;;  %v1348_v12 = vmax.f32 %v3385_v2, 0.0  ;;  %v1949_v8 = vpack.c.bf16 %v1340_v27, %v1339_v55 }
 0x33d   :  { %v3507_v60 = vadd.f32 %v3293_v14, %v3263_v34  ;;  %v1349_v5 = vmax.f32 %v3389_v57, 0.0  ;;  %v1350_v39 = vmax.f32 %v3393_v16, 0.0  ;;  %1935 = vst [vmem:[%s3708_s6] sm:$0xff] %v1934_v13   ;;  %v1954_v43 = vpack.c.bf16 %v1342_v26, %v1341_v33 }
 0x33e   :  { %v3516_v28 = vadd.f32 %v3293_v14, %v3267_v6  ;;  %v1351_v54 = vmax.f32 %v3397_v42, 0.0  ;;  %v1352_v27 = vmax.f32 %v3401_v24, 0.0  ;;  %2091 = vst [vmem:[%s3708_s6 + $0x8] sm:$0xff] %v1939_v48   ;;  %v1959_v34 = vpack.c.bf16 %v1344_v37, %v1343_v50 }
 0x33f   :  { %v3525_v9 = vadd.f32 %v3293_v14, %v3795_v62  ;;  %v1353_v20 = vmax.f32 %v3405_v35, 0.0  ;;  %v1354_v44 = vmax.f32 %v3409_v30, 0.0  ;;  %2092 = vst [vmem:[%s3708_s6 + $0x10] sm:$0xff] %v1944_v51   ;;  %v1964_v6 = vpack.c.bf16 %v1346_v15, %v1345_v61  ;;  %v3798_v15 = vld [vmem:[#allocation12_spill] sm:$0xff] }
 0x340   :  { %v3534_v47 = vadd.f32 %v3293_v14, %v3275_v29  ;;  %v1355_v2 = vmax.f32 %v3413_v59, 0.0  ;;  %v1356_v57 = vmax.f32 %v3417_v40, 0.0  ;;  %2093 = vst [vmem:[%s3708_s6 + $0x18] sm:$0xff] %v1949_v8   ;;  %v1969_v16 = vpack.c.bf16 %v1348_v12, %v1347_v41 }
 0x341   :  { %v3543_v42 = vadd.f32 %v3293_v14, %v3279_v45  ;;  %v1357_v24 = vmax.f32 %v3421_v19, 0.0  ;;  %v1358_v35 = vmax.f32 %v3425_v38, 0.0  ;;  %2094 = vst [vmem:[%s3708_s6 + $0x20] sm:$0xff] %v1954_v43   ;;  %v1974_v29 = vpack.c.bf16 %v1350_v39, %v1349_v5  ;;  %v3801_v43 = vld [vmem:[#allocation14_spill] sm:$0xff] }
 0x342   :  { %v3552_v30 = vadd.f32 %v3293_v14, %v3283_v7  ;;  %v1359_v59 = vmax.f32 %v3429_v63, 0.0  ;;  %v1360_v40 = vmax.f32 %v3433_v21, 0.0  ;;  %2095 = vst [vmem:[%s3708_s6 + $0x28] sm:$0xff] %v1959_v34   ;;  %v1979_v45 = vpack.c.bf16 %v1352_v27, %v1351_v54  ;;  %v3799_v13 = vld [vmem:[#allocation16_spill] sm:$0xff] }
 0x343   :  { %v3561_v19 = vadd.f32 %v3293_v14, %v3287_v17  ;;  %v1361_v38 = vmax.f32 %v3437_v31, 0.0  ;;  %v1362_v11 = vmax.f32 %v3441_v25, 0.0  ;;  %2096 = vst [vmem:[%s3708_s6 + $0x30] sm:$0xff] %v1964_v6   ;;  %v1984_v7 = vpack.c.bf16 %v1354_v44, %v1353_v20 }
 0x344   :  { %v3570_v63 = vadd.f32 %v3293_v14, %v3291_v49  ;;  %v1363_v21 = vmax.f32 %v3445_v52, 0.0  ;;  %v1364_v55 = vmax.f32 %v3449_v10, 0.0  ;;  %2097 = vst [vmem:[%s3708_s6 + $0x38] sm:$0xff] %v1969_v16   ;;  %v1989_v17 = vpack.c.bf16 %v1356_v57, %v1355_v2 }
 0x345   :  { %v3579_v31 = vadd.f32 %v3293_v14, %v3297_v0  ;;  %v1365_v25 = vmax.f32 %v3453_v22, 0.0  ;;  %v1366_v51 = vmax.f32 %v3457_v56, 0.0  ;;  %2098 = vst [vmem:[%s3708_s6 + $0x40] sm:$0xff] %v1974_v29   ;;  %v1994_v49 = vpack.c.bf16 %v1358_v35, %v1357_v24  ;;  %v3796_v56 = vld [vmem:[#allocation10_spill] sm:$0xff] }
 0x346   :  { %v3588_v52 = vadd.f32 %v3293_v14, %v3301_v3  ;;  %v1367_v10 = vmax.f32 %v3461_v53, 0.0  ;;  %v1368_v33 = vmax.f32 %v3465_v1, 0.0  ;;  %2099 = vst [vmem:[%s3708_s6 + $0x48] sm:$0xff] %v1979_v45   ;;  %v1999_v0 = vpack.c.bf16 %v1360_v40, %v1359_v59  ;;  %v3797_v53 = vld [vmem:[#allocation11_spill] sm:$0xff]  ;;  %v3806_v45 = vld [vmem:[#allocation21_spill] sm:$0xff] }
 0x347   :  { %v3597_v22 = vadd.f32 %v3293_v14, %v3305_v18  ;;  %v1369_v26 = vmax.f32 %v3796_v56, 0.0  ;;  %v1370_v50 = vmax.f32 %v3473_v58, 0.0  ;;  %2100 = vst [vmem:[%s3708_s6 + $0x50] sm:$0xff] %v1984_v7   ;;  %v2004_v3 = vpack.c.bf16 %v1362_v11, %v1361_v38 }
 0x348   :  { %v1324_v1 = vadd.f32 %v3293_v14, %v3797_v53  ;;  %v1371_v37 = vmax.f32 %v3477_v36, 0.0  ;;  %v1372_v61 = vmax.f32 %v3481_v32, 0.0  ;;  %2101 = vst [vmem:[%s3708_s6 + $0x58] sm:$0xff] %v1989_v17   ;;  %v2009_v18 = vpack.c.bf16 %v1364_v55, %v1363_v21  ;;  %v3800_v36 = vld [vmem:[#allocation13_spill] sm:$0xff] }
 0x349   :  { %v1325_v58 = vadd.f32 %v3293_v14, %v3798_v15  ;;  %v1373_v48 = vmax.f32 %v3799_v13, 0.0  ;;  %v1374_v41 = vmax.f32 %v3489_v23, 0.0  ;;  %2102 = vst [vmem:[%s3708_s6 + $0x60] sm:$0xff] %v1994_v49   ;;  %v2014_v12 = vpack.c.bf16 %v1366_v51, %v1365_v25 }
 0x34a   :  { %v1326_v32 = vadd.f32 %v3293_v14, %v3800_v36  ;;  %v1375_v8 = vmax.f32 %v3493_v4, 0.0  ;;  %v1376_v5 = vmax.f32 %v3501_v46, 0.0  ;;  %2103 = vst [vmem:[%s3708_s6 + $0x68] sm:$0xff] %v1999_v0   ;;  %v2019_v39 = vpack.c.bf16 %v1368_v33, %v1367_v10  ;;  %v3802_v4 = vld [vmem:[#allocation15_spill] sm:$0xff] }
 0x34b   :  { %v1327_v23 = vadd.f32 %v3293_v14, %v3801_v43  ;;  %v1377_v54 = vmax.f32 %v3507_v60, 0.0  ;;  %v1378_v27 = vmax.f32 %v3516_v28, 0.0  ;;  %2104 = vst [vmem:[%s3708_s6 + $0x70] sm:$0xff] %v2004_v3   ;;  %v2024_v34 = vpack.c.bf16 %v1370_v50, %v1369_v26  ;;  %v3803_v60 = vld [vmem:[#allocation17_spill] sm:$0xff] }
 0x34c   :  { %v1328_v46 = vadd.f32 %v3293_v14, %v3802_v4  ;;  %v1379_v62 = vmax.f32 %v3525_v9, 0.0  ;;  %v1380_v20 = vmax.f32 %v3534_v47, 0.0  ;;  %2105 = vst [vmem:[%s3708_s6 + $0x78] sm:$0xff] %v2009_v18   ;;  %v2029_v44 = vpack.c.bf16 %v1372_v61, %v1371_v37  ;;  %v3804_v9 = vld [vmem:[#allocation19_spill] sm:$0xff] }
 0x34d   :  { %v1329_v28 = vadd.f32 %v3293_v14, %v3803_v60  ;;  %v1381_v6 = vmax.f32 %v3543_v42, 0.0  ;;  %v1382_v2 = vmax.f32 %v3552_v30, 0.0  ;;  %2106 = vst [vmem:[%s3708_s6 + $0x80] sm:$0xff] %v2014_v12   ;;  %v2034_v57 = vpack.c.bf16 %v1374_v41, %v1373_v48  ;;  %v3805_v42 = vld [vmem:[#allocation20_spill] sm:$0xff] }
 0x34e   :  { %v1330_v47 = vadd.f32 %v3293_v14, %v3804_v9  ;;  %v1383_v16 = vmax.f32 %v3561_v19, 0.0  ;;  %v1384_v24 = vmax.f32 %v3570_v63, 0.0  ;;  %2107 = vst [vmem:[%s3708_s6 + $0x88] sm:$0xff] %v2019_v39   ;;  %v2039_v35 = vpack.c.bf16 %v1376_v5, %v1375_v8 }
 0x34f   :  { %v1331_v29 = vadd.f32 %v3293_v14, %v3805_v42  ;;  %v1385_v30 = vmax.f32 %v3579_v31, 0.0  ;;  %v1386_v59 = vmax.f32 %v3588_v52, 0.0  ;;  %2108 = vst [vmem:[%s3708_s6 + $0x90] sm:$0xff] %v2024_v34   ;;  %v2044_v40 = vpack.c.bf16 %v1378_v27, %v1377_v54 }
 0x350   :  { %v1332_v19 = vadd.f32 %v3293_v14, %v3806_v45  ;;  %v1387_v38 = vmax.f32 %v3597_v22, 0.0  ;;  %v1388_v11 = vmax.f32 %v1324_v1, 0.0  ;;  %2109 = vst [vmem:[%s3708_s6 + $0x98] sm:$0xff] %v2029_v44   ;;  %v2049_v7 = vpack.c.bf16 %v1380_v20, %v1379_v62 }
 0x351   :  { %v1389_v63 = vmax.f32 %v1325_v58, 0.0  ;;  %v1390_v21 = vmax.f32 %v1326_v32, 0.0  ;;  %2110 = vst [vmem:[%s3708_s6 + $0xa0] sm:$0xff] %v2034_v57   ;;  %v2054_v55 = vpack.c.bf16 %v1382_v2, %v1381_v6  ;;  %v1391_v17 = vmax.f32 %v1327_v23, 0.0 }
 0x352   :  { %v1392_v31 = vmax.f32 %v1328_v46, 0.0  ;;  %2111 = vst [vmem:[%s3708_s6 + $0xa8] sm:$0xff] %v2039_v35   ;;  %v2059_v14 = vpack.c.bf16 %v1384_v24, %v1383_v16  ;;  %v1393_v25 = vmax.f32 %v1329_v28, 0.0  ;;  %v1394_v51 = vmax.f32 %v1330_v47, 0.0 }
 0x353   :  { %2112 = vst [vmem:[%s3708_s6 + $0xb0] sm:$0xff] %v2044_v40   ;;  %v2064_v49 = vpack.c.bf16 %v1386_v59, %v1385_v30  ;;  %v1395_v52 = vmax.f32 %v1331_v29, 0.0  ;;  %v1396_v10 = vmax.f32 %v1332_v19, 0.0  ;;  %v2069_v33 = vpack.c.bf16 %v1388_v11, %v1387_v38 }
 0x354   :  { %2113 = vst [vmem:[%s3708_s6 + $0xb8] sm:$0xff] %v2049_v7   ;;  %v2074_v0 = vpack.c.bf16 %v1390_v21, %v1389_v63  ;;  %v2079_v22 = vpack.c.bf16 %v1392_v31, %v1391_v17  ;;  %v2084_v56 = vpack.c.bf16 %v1394_v51, %v1393_v25 }
 0x355   :  { %2114 = vst [vmem:[%s3708_s6 + $0xc0] sm:$0xff] %v2054_v55   ;;  %v2089_v26 = vpack.c.bf16 %v1396_v10, %v1395_v52 }
 0x356   :  { %2115 = vst [vmem:[%s3708_s6 + $0xc8] sm:$0xff] %v2059_v14  }
 0x357   :  { %2116 = vst [vmem:[%s3708_s6 + $0xd0] sm:$0xff] %v2064_v49  }
 0x358   :  { %2117 = vst [vmem:[%s3708_s6 + $0xd8] sm:$0xff] %v2069_v33  }
 0x359   :  { %2118 = vst [vmem:[%s3708_s6 + $0xe0] sm:$0xff] %v2074_v0  }
 0x35a   :  { %2119 = vst [vmem:[%s3708_s6 + $0xe8] sm:$0xff] %v2079_v22  }
 0x35b   :  { %2120 = vst [vmem:[%s3708_s6 + $0xf0] sm:$0xff] %v2084_v56  }
 0x35c   :  { %2121 = vst [vmem:[%s3708_s6 + $0xf8] sm:$0xff] %v2089_v26  }

// kernel: my_generator_forward.9
= control target key start
LH: loop header
LB: loop body
LE: loop exit
PB: predicated region body
PF: predicated region fallthrough
CT: control target
= control target key end

     0   :  { %s1506_s12 = smov 0   ;;  %s1691_s0 = inlined_call_operand.vmem [shape: bf16[2048,128], index: 0, kind: input, shape index: {}]   ;;  %s1692_s1 = inlined_call_operand.vmem [shape: bf16[128,128], index: 1, kind: input, shape index: {}]   ;;  %s1693_s2 = inlined_call_operand.vmem [shape: f32[1,128], index: 2, kind: input, shape index: {}]   ;;  %s1694_s3 = inlined_call_operand.vmem [shape: bf16[2048,128], index: 3, kind: output, shape index: {}]  }
   0x1 LB: > { %s915_s13 = sadd.s32 4294967295, %s1484_s12   ;;  %p919_p0 = scmp.ge.s32.totalorder %s1484_s12, 1  ;;  %s1484_s12 = sphi %s1506_s12, %s13_s12  }
   0x2   : > { %p138_p1 = scmp.lt.s32.totalorder %s1484_s12, 5 }
   0x4   : > { %p139_p2 = pnand %p919_p0, %p138_p1 }
   0x5   : > { %s920_s22 = sshll.u32 (!%p139_p2), %s915_s13, 6 }
   0x6   : > { %142 = sbr.rel (%p139_p2) target bundleno = 309 (0x135), region = 32  ;;  %p163_p3 = scmp.lt.s32.totalorder (!%p139_p2), %s920_s22, 255 }
   0xb   : > { %v1125_v0 = vld [vmem:[%s1692_s1 + $0x38] sm:$0xff]  ;;  %v1124_v1 = vld [vmem:[%s1692_s1 + $0x30] sm:$0xff]  ;;  %v1123_v2 = vld [vmem:[%s1692_s1 + $0x28] sm:$0xff]  ;;  %s1696_s22 = smov (!%p163_p3, %s920_s22), 255 }
   0xc   : > { %498 = vmatpush.bf16.msra.mxu0 %v1125_v0  ;;  %1317 = vmatpush.bf16.msra.mxu1 %v1125_v0  ;;  %v1122_v3 = vld [vmem:[%s1692_s1 + $0x20] sm:$0xff]  ;;  %v1121_v4 = vld [vmem:[%s1692_s1 + $0x18] sm:$0xff]  ;;  %v1120_v5 = vld [vmem:[%s1692_s1 + $0x10] sm:$0xff]  ;;  %s921_s29 = sshll.u32 %s1696_s22, 2 }
   0xd   : > { %1318 = vmatpush.bf16.msra.mxu2 %v1125_v0  ;;  %1319 = vmatpush.bf16.msra.mxu3 %v1125_v0  ;;  %v1119_v6 = vld [vmem:[%s1692_s1 + $0x8] sm:$0xff]  ;;  %v1118_v7 = vld [vmem:[%s1692_s1] sm:$0xff]  ;;  %s1546_s7 = scalar_lea.vmem %s1691_s0, %s921_s29  ;;  %s1598_s13 = scalar_lea.vmem %s1694_s3, %s921_s29 }
   0xe   : > { %v1086_v8 = vld [vmem:[%s1546_s7] sm:$0xff]  ;;  %v1087_v12 = vld [vmem:[%s1546_s7 + $0x8] sm:$0xff]  ;;  %v1088_v16 = vld [vmem:[%s1546_s7 + $0x10] sm:$0xff] }
   0xf   : > { %v1094_v9 = vld [vmem:[%s1546_s7 + $0x40] sm:$0xff]  ;;  %v1095_v13 = vld [vmem:[%s1546_s7 + $0x48] sm:$0xff]  ;;  %v1096_v17 = vld [vmem:[%s1546_s7 + $0x50] sm:$0xff] }
  0x10   : > { %499 = vmatpush.bf16.msra.mxu0 %v1124_v1  ;;  %1320 = vmatpush.bf16.msra.mxu1 %v1124_v1  ;;  %v1102_v10 = vld [vmem:[%s1546_s7 + $0x80] sm:$0xff]  ;;  %v1103_v14 = vld [vmem:[%s1546_s7 + $0x88] sm:$0xff]  ;;  %v1104_v18 = vld [vmem:[%s1546_s7 + $0x90] sm:$0xff] }
  0x11   : > { %1321 = vmatpush.bf16.msra.mxu2 %v1124_v1  ;;  %1322 = vmatpush.bf16.msra.mxu3 %v1124_v1  ;;  %v1110_v11 = vld [vmem:[%s1546_s7 + $0xc0] sm:$0xff]  ;;  %v1111_v15 = vld [vmem:[%s1546_s7 + $0xc8] sm:$0xff]  ;;  %v1112_v19 = vld [vmem:[%s1546_s7 + $0xd0] sm:$0xff] }
  0x12   : > { %v1089_v20 = vld [vmem:[%s1546_s7 + $0x18] sm:$0xff]  ;;  %v1090_v24 = vld [vmem:[%s1546_s7 + $0x20] sm:$0xff]  ;;  %v1091_v28 = vld [vmem:[%s1546_s7 + $0x28] sm:$0xff] }
  0x13   : > { %v1097_v21 = vld [vmem:[%s1546_s7 + $0x58] sm:$0xff]  ;;  %v1098_v25 = vld [vmem:[%s1546_s7 + $0x60] sm:$0xff]  ;;  %v1099_v29 = vld [vmem:[%s1546_s7 + $0x68] sm:$0xff] }
  0x14   : > { %500 = vmatpush.bf16.msra.mxu0 %v1123_v2  ;;  %1323 = vmatpush.bf16.msra.mxu1 %v1123_v2  ;;  %v1105_v22 = vld [vmem:[%s1546_s7 + $0x98] sm:$0xff]  ;;  %v1106_v26 = vld [vmem:[%s1546_s7 + $0xa0] sm:$0xff]  ;;  %v1107_v30 = vld [vmem:[%s1546_s7 + $0xa8] sm:$0xff] }
  0x15   : > { %1324 = vmatpush.bf16.msra.mxu2 %v1123_v2  ;;  %1325 = vmatpush.bf16.msra.mxu3 %v1123_v2  ;;  %v1113_v23 = vld [vmem:[%s1546_s7 + $0xd8] sm:$0xff]  ;;  %v1114_v27 = vld [vmem:[%s1546_s7 + $0xe0] sm:$0xff]  ;;  %v1115_v31 = vld [vmem:[%s1546_s7 + $0xe8] sm:$0xff] }
  0x16   : > { %v1092_v32 = vld [vmem:[%s1546_s7 + $0x30] sm:$0xff]  ;;  %v1093_v36 = vld [vmem:[%s1546_s7 + $0x38] sm:$0xff]  ;;  %v1583_v42 = vld [vmem:[%s1693_s2] ss:$0 sm:$0xff] }
  0x17   : > { %v1100_v33 = vld [vmem:[%s1546_s7 + $0x70] sm:$0xff]  ;;  %v1101_v37 = vld [vmem:[%s1546_s7 + $0x78] sm:$0xff] }
  0x18   : > { %501 = vmatpush.bf16.msra.mxu0 %v1122_v3  ;;  %1326 = vmatpush.bf16.msra.mxu1 %v1122_v3  ;;  %v1108_v34 = vld [vmem:[%s1546_s7 + $0xb0] sm:$0xff]  ;;  %v1109_v38 = vld [vmem:[%s1546_s7 + $0xb8] sm:$0xff] }
  0x19   : > { %1327 = vmatpush.bf16.msra.mxu2 %v1122_v3  ;;  %1328 = vmatpush.bf16.msra.mxu3 %v1122_v3  ;;  %v1116_v35 = vld [vmem:[%s1546_s7 + $0xf0] sm:$0xff]  ;;  %v1117_v39 = vld [vmem:[%s1546_s7 + $0xf8] sm:$0xff] }
  0x1c   : > { %502 = vmatpush.bf16.msra.mxu0 %v1121_v4  ;;  %1329 = vmatpush.bf16.msra.mxu1 %v1121_v4 }
  0x1d   : > { %1330 = vmatpush.bf16.msra.mxu2 %v1121_v4  ;;  %1331 = vmatpush.bf16.msra.mxu3 %v1121_v4 }
  0x20   : > { %503 = vmatpush.bf16.msra.mxu0 %v1120_v5  ;;  %1332 = vmatpush.bf16.msra.mxu1 %v1120_v5 }
  0x21   : > { %1333 = vmatpush.bf16.msra.mxu2 %v1120_v5  ;;  %1334 = vmatpush.bf16.msra.mxu3 %v1120_v5 }
  0x24   : > { %504 = vmatpush.bf16.msra.mxu0 %v1119_v6  ;;  %1335 = vmatpush.bf16.msra.mxu1 %v1119_v6 }
  0x25   : > { %1336 = vmatpush.bf16.msra.mxu2 %v1119_v6  ;;  %1337 = vmatpush.bf16.msra.mxu3 %v1119_v6 }
  0x28   : > { %505 = vmatpush.bf16.msra.mxu0 %v1118_v7  ;;  %1338 = vmatpush.bf16.msra.mxu1 %v1118_v7 }
  0x29   : > { %1339 = vmatpush.bf16.msra.mxu2 %v1118_v7  ;;  %1340 = vmatpush.bf16.msra.mxu3 %v1118_v7 }
  0x2b   : > { %506 = vmatmul.bf16.vlgmr.msra.gmra.mxu0 %v1086_v8  ;;  %546 = vmatmul.bf16.vlgmr.msra.gmra.mxu1 %v1094_v9 }
  0x2c   : > { %586 = vmatmul.bf16.vlgmr.msra.gmra.mxu2 %v1102_v10  ;;  %626 = vmatmul.bf16.vlgmr.msra.gmra.mxu3 %v1110_v11 }
  0x3b   : > { %511 = vmatmul.bf16.gmra.mxu0 %v1087_v12  ;;  %551 = vmatmul.bf16.gmra.mxu1 %v1095_v13 }
  0x3c   : > { %591 = vmatmul.bf16.gmra.mxu2 %v1103_v14  ;;  %631 = vmatmul.bf16.gmra.mxu3 %v1111_v15 }
  0x4b   : > { %516 = vmatmul.bf16.gmra.mxu0 %v1088_v16  ;;  %556 = vmatmul.bf16.gmra.mxu1 %v1096_v17 }
  0x4c   : > { %596 = vmatmul.bf16.gmra.mxu2 %v1104_v18  ;;  %636 = vmatmul.bf16.gmra.mxu3 %v1112_v19 }
  0x5b   : > { %521 = vmatmul.bf16.gmra.mxu0 %v1089_v20  ;;  %561 = vmatmul.bf16.gmra.mxu1 %v1097_v21 }
  0x5c   : > { %601 = vmatmul.bf16.gmra.mxu2 %v1105_v22  ;;  %641 = vmatmul.bf16.gmra.mxu3 %v1113_v23 }
  0x6b   : > { %526 = vmatmul.bf16.gmra.mxu0 %v1090_v24  ;;  %566 = vmatmul.bf16.gmra.mxu1 %v1098_v25 }
  0x6c   : > { %606 = vmatmul.bf16.gmra.mxu2 %v1106_v26  ;;  %646 = vmatmul.bf16.gmra.mxu3 %v1114_v27 }
  0x7b   : > { %531 = vmatmul.bf16.gmra.mxu0 %v1091_v28  ;;  %571 = vmatmul.bf16.gmra.mxu1 %v1099_v29 }
  0x7c   : > { %611 = vmatmul.bf16.gmra.mxu2 %v1107_v30  ;;  %651 = vmatmul.bf16.gmra.mxu3 %v1115_v31 }
  0x8b   : > { %536 = vmatmul.bf16.gmra.mxu0 %v1092_v32  ;;  %576 = vmatmul.bf16.gmra.mxu1 %v1100_v33 }
  0x8c   : > { %616 = vmatmul.bf16.gmra.mxu2 %v1108_v34  ;;  %656 = vmatmul.bf16.gmra.mxu3 %v1116_v35 }
  0x9b   : > { %541 = vmatmul.bf16.gmra.mxu0 %v1093_v36  ;;  %581 = vmatmul.bf16.gmra.mxu1 %v1101_v37 }
  0x9c   : > { %621 = vmatmul.bf16.gmra.mxu2 %v1109_v38  ;;  %661 = vmatmul.bf16.gmra.mxu3 %v1117_v39 }
  0xa8   : > { %v507_v40 = vpop.f32.mrf.mxu0  ;;  %v547_v41 = vpop.f32.mrf.mxu1 }
  0xa9   : > { %v508_v43 = vadd.f32 %v1583_v42, %v507_v40  ;;  %v548_v44 = vadd.f32 %v1583_v42, %v547_v41 }
  0xab   : > { %1350 = vtanh.f32 %v508_v43 }
  0xac   : > { %1352 = vtanh.f32 %v548_v44 }
  0xaf   : > { %v587_v45 = vpop.f32.mrf.mxu2  ;;  %v627_v46 = vpop.f32.mrf.mxu3 }
  0xb0   : > { %v509_v47 = vpop.f32.mrf.mxu0  ;;  %v549_v48 = vpop.f32.mrf.mxu1  ;;  %v588_v51 = vadd.f32 %v1583_v42, %v587_v45  ;;  %v628_v52 = vadd.f32 %v1583_v42, %v627_v46 }
  0xb1   : > { %v510_v49 = vadd.f32 %v1583_v42, %v509_v47  ;;  %v550_v50 = vadd.f32 %v1583_v42, %v549_v48  ;;  %v1351_v55 = vpop.eup %1350 }
  0xb2   : > { %v1353_v60 = vpop.eup %1352 }
  0xb3   : > { %1354 = vtanh.f32 %v510_v49 }
  0xb4   : > { %1356 = vtanh.f32 %v550_v50 }
  0xb5   : > { %1358 = vtanh.f32 %v588_v51 }
  0xb6   : > { %1360 = vtanh.f32 %v628_v52 }
  0xb7   : > { %v589_v53 = vpop.f32.mrf.mxu2  ;;  %v629_v54 = vpop.f32.mrf.mxu3 }
  0xb8   : > { %v590_v56 = vadd.f32 %v1583_v42, %v589_v53  ;;  %v630_v57 = vadd.f32 %v1583_v42, %v629_v54  ;;  %v512_v58 = vpop.f32.mrf.mxu0  ;;  %v552_v59 = vpop.f32.mrf.mxu1 }
  0xb9   : > { %v1355_v61 = vpop.eup %1354  ;;  %v513_v2 = vadd.f32 %v1583_v42, %v512_v58  ;;  %v553_v4 = vadd.f32 %v1583_v42, %v552_v59 }
  0xba   : > { %1362 = vtanh.f32 %v590_v56  ;;  %v1357_v62 = vpop.eup %1356  ;;  %v1129_v63 = vpack.c.bf16 %v1355_v61, %v1351_v55 }
  0xbb   : > { %1364 = vtanh.f32 %v630_v57  ;;  %v1169_v0 = vpack.c.bf16 %v1357_v62, %v1353_v60  ;;  %v1359_v1 = vpop.eup %1358 }
  0xbc   : > { %1130 = vst [vmem:[%s1598_s13] sm:$0xff] %v1129_v63   ;;  %v1361_v3 = vpop.eup %1360  ;;  %1366 = vtanh.f32 %v513_v2 }
  0xbd   : > { %1293 = vst [vmem:[%s1598_s13 + $0x40] sm:$0xff] %v1169_v0   ;;  %1368 = vtanh.f32 %v553_v4 }
  0xbf   : > { %v592_v5 = vpop.f32.mrf.mxu2  ;;  %v632_v6 = vpop.f32.mrf.mxu3 }
  0xc0   : > { %v1363_v7 = vpop.eup %1362  ;;  %v514_v8 = vpop.f32.mrf.mxu0  ;;  %v593_v15 = vadd.f32 %v1583_v42, %v592_v5  ;;  %v633_v16 = vadd.f32 %v1583_v42, %v632_v6 }
  0xc1   : > { %v554_v9 = vpop.f32.mrf.mxu1  ;;  %v1365_v10 = vpop.eup %1364  ;;  %v1209_v11 = vpack.c.bf16 %v1363_v7, %v1359_v1  ;;  %v515_v12 = vadd.f32 %v1583_v42, %v514_v8 }
  0xc2   : > { %v555_v13 = vadd.f32 %v1583_v42, %v554_v9  ;;  %v1249_v14 = vpack.c.bf16 %v1365_v10, %v1361_v3  ;;  %v1367_v19 = vpop.eup %1366 }
  0xc3   : > { %1301 = vst [vmem:[%s1598_s13 + $0x80] sm:$0xff] %v1209_v11   ;;  %1370 = vtanh.f32 %v515_v12  ;;  %v1369_v24 = vpop.eup %1368 }
  0xc4   : > { %1309 = vst [vmem:[%s1598_s13 + $0xc0] sm:$0xff] %v1249_v14   ;;  %1372 = vtanh.f32 %v555_v13 }
  0xc5   : > { %1374 = vtanh.f32 %v593_v15 }
  0xc6   : > { %1376 = vtanh.f32 %v633_v16 }
  0xc7   : > { %v594_v17 = vpop.f32.mrf.mxu2  ;;  %v634_v18 = vpop.f32.mrf.mxu3 }
  0xc8   : > { %v595_v20 = vadd.f32 %v1583_v42, %v594_v17  ;;  %v635_v21 = vadd.f32 %v1583_v42, %v634_v18  ;;  %v517_v22 = vpop.f32.mrf.mxu0 }
  0xc9   : > { %v557_v23 = vpop.f32.mrf.mxu1  ;;  %v1371_v25 = vpop.eup %1370  ;;  %v518_v30 = vadd.f32 %v1583_v42, %v517_v22 }
  0xca   : > { %1378 = vtanh.f32 %v595_v20  ;;  %v1373_v26 = vpop.eup %1372  ;;  %v1134_v27 = vpack.c.bf16 %v1371_v25, %v1367_v19  ;;  %v558_v32 = vadd.f32 %v1583_v42, %v557_v23 }
  0xcb   : > { %1380 = vtanh.f32 %v635_v21  ;;  %v1174_v28 = vpack.c.bf16 %v1373_v26, %v1369_v24  ;;  %v1375_v29 = vpop.eup %1374 }
  0xcc   : > { %1286 = vst [vmem:[%s1598_s13 + $0x8] sm:$0xff] %v1134_v27   ;;  %v1377_v31 = vpop.eup %1376  ;;  %1382 = vtanh.f32 %v518_v30 }
  0xcd   : > { %1294 = vst [vmem:[%s1598_s13 + $0x48] sm:$0xff] %v1174_v28   ;;  %1384 = vtanh.f32 %v558_v32 }
  0xcf   : > { %v597_v33 = vpop.f32.mrf.mxu2  ;;  %v637_v34 = vpop.f32.mrf.mxu3 }
  0xd0   : > { %v1379_v35 = vpop.eup %1378  ;;  %v519_v36 = vpop.f32.mrf.mxu0  ;;  %v598_v44 = vadd.f32 %v1583_v42, %v597_v33  ;;  %v638_v45 = vadd.f32 %v1583_v42, %v637_v34 }
  0xd1   : > { %v559_v37 = vpop.f32.mrf.mxu1  ;;  %v1381_v38 = vpop.eup %1380  ;;  %v1214_v39 = vpack.c.bf16 %v1379_v35, %v1375_v29  ;;  %v520_v40 = vadd.f32 %v1583_v42, %v519_v36 }
  0xd2   : > { %v560_v41 = vadd.f32 %v1583_v42, %v559_v37  ;;  %v1254_v43 = vpack.c.bf16 %v1381_v38, %v1377_v31  ;;  %v1383_v48 = vpop.eup %1382 }
  0xd3   : > { %1302 = vst [vmem:[%s1598_s13 + $0x88] sm:$0xff] %v1214_v39   ;;  %1386 = vtanh.f32 %v520_v40  ;;  %v1385_v53 = vpop.eup %1384 }
  0xd4   : > { %1310 = vst [vmem:[%s1598_s13 + $0xc8] sm:$0xff] %v1254_v43   ;;  %1388 = vtanh.f32 %v560_v41 }
  0xd5   : > { %1390 = vtanh.f32 %v598_v44 }
  0xd6   : > { %1392 = vtanh.f32 %v638_v45 }
  0xd7   : > { %v599_v46 = vpop.f32.mrf.mxu2  ;;  %v639_v47 = vpop.f32.mrf.mxu3 }
  0xd8   : > { %v600_v49 = vadd.f32 %v1583_v42, %v599_v46  ;;  %v640_v50 = vadd.f32 %v1583_v42, %v639_v47  ;;  %v522_v51 = vpop.f32.mrf.mxu0 }
  0xd9   : > { %v562_v52 = vpop.f32.mrf.mxu1  ;;  %v1387_v54 = vpop.eup %1386  ;;  %v523_v59 = vadd.f32 %v1583_v42, %v522_v51 }
  0xda   : > { %1394 = vtanh.f32 %v600_v49  ;;  %v1389_v55 = vpop.eup %1388  ;;  %v1139_v56 = vpack.c.bf16 %v1387_v54, %v1383_v48  ;;  %v563_v61 = vadd.f32 %v1583_v42, %v562_v52 }
  0xdb   : > { %1396 = vtanh.f32 %v640_v50  ;;  %v1179_v57 = vpack.c.bf16 %v1389_v55, %v1385_v53  ;;  %v1391_v58 = vpop.eup %1390 }
  0xdc   : > { %1287 = vst [vmem:[%s1598_s13 + $0x10] sm:$0xff] %v1139_v56   ;;  %v1393_v60 = vpop.eup %1392  ;;  %1398 = vtanh.f32 %v523_v59 }
  0xdd   : > { %1295 = vst [vmem:[%s1598_s13 + $0x50] sm:$0xff] %v1179_v57   ;;  %1400 = vtanh.f32 %v563_v61 }
  0xdf   : > { %v602_v62 = vpop.f32.mrf.mxu2  ;;  %v642_v63 = vpop.f32.mrf.mxu3 }
  0xe0   : > { %v1395_v0 = vpop.eup %1394  ;;  %v524_v1 = vpop.f32.mrf.mxu0  ;;  %v603_v8 = vadd.f32 %v1583_v42, %v602_v62  ;;  %v643_v9 = vadd.f32 %v1583_v42, %v642_v63 }
  0xe1   : > { %v564_v2 = vpop.f32.mrf.mxu1  ;;  %v1397_v3 = vpop.eup %1396  ;;  %v1219_v4 = vpack.c.bf16 %v1395_v0, %v1391_v58  ;;  %v525_v5 = vadd.f32 %v1583_v42, %v524_v1 }
  0xe2   : > { %v565_v6 = vadd.f32 %v1583_v42, %v564_v2  ;;  %v1259_v7 = vpack.c.bf16 %v1397_v3, %v1393_v60  ;;  %v1399_v12 = vpop.eup %1398 }
  0xe3   : > { %1303 = vst [vmem:[%s1598_s13 + $0x90] sm:$0xff] %v1219_v4   ;;  %1402 = vtanh.f32 %v525_v5  ;;  %v1401_v17 = vpop.eup %1400 }
  0xe4   : > { %1311 = vst [vmem:[%s1598_s13 + $0xd0] sm:$0xff] %v1259_v7   ;;  %1404 = vtanh.f32 %v565_v6 }
  0xe5   : > { %1406 = vtanh.f32 %v603_v8 }
  0xe6   : > { %1408 = vtanh.f32 %v643_v9 }
  0xe7   : > { %v604_v10 = vpop.f32.mrf.mxu2  ;;  %v644_v11 = vpop.f32.mrf.mxu3 }
  0xe8   : > { %v605_v13 = vadd.f32 %v1583_v42, %v604_v10  ;;  %v645_v14 = vadd.f32 %v1583_v42, %v644_v11  ;;  %v527_v15 = vpop.f32.mrf.mxu0 }
  0xe9   : > { %v567_v16 = vpop.f32.mrf.mxu1  ;;  %v1403_v18 = vpop.eup %1402  ;;  %v528_v23 = vadd.f32 %v1583_v42, %v527_v15 }
  0xea   : > { %1410 = vtanh.f32 %v605_v13  ;;  %v1405_v19 = vpop.eup %1404  ;;  %v1144_v20 = vpack.c.bf16 %v1403_v18, %v1399_v12  ;;  %v568_v25 = vadd.f32 %v1583_v42, %v567_v16 }
  0xeb   : > { %1412 = vtanh.f32 %v645_v14  ;;  %v1184_v21 = vpack.c.bf16 %v1405_v19, %v1401_v17  ;;  %v1407_v22 = vpop.eup %1406 }
  0xec   : > { %1288 = vst [vmem:[%s1598_s13 + $0x18] sm:$0xff] %v1144_v20   ;;  %v1409_v24 = vpop.eup %1408  ;;  %1414 = vtanh.f32 %v528_v23 }
  0xed   : > { %1296 = vst [vmem:[%s1598_s13 + $0x58] sm:$0xff] %v1184_v21   ;;  %1416 = vtanh.f32 %v568_v25 }
  0xef   : > { %v607_v26 = vpop.f32.mrf.mxu2  ;;  %v647_v27 = vpop.f32.mrf.mxu3 }
  0xf0   : > { %v1411_v28 = vpop.eup %1410  ;;  %v529_v29 = vpop.f32.mrf.mxu0  ;;  %v608_v36 = vadd.f32 %v1583_v42, %v607_v26  ;;  %v648_v37 = vadd.f32 %v1583_v42, %v647_v27 }
  0xf1   : > { %v569_v30 = vpop.f32.mrf.mxu1  ;;  %v1413_v31 = vpop.eup %1412  ;;  %v1224_v32 = vpack.c.bf16 %v1411_v28, %v1407_v22  ;;  %v530_v33 = vadd.f32 %v1583_v42, %v529_v29 }
  0xf2   : > { %v570_v34 = vadd.f32 %v1583_v42, %v569_v30  ;;  %v1264_v35 = vpack.c.bf16 %v1413_v31, %v1409_v24  ;;  %v1415_v40 = vpop.eup %1414 }
  0xf3   : > { %1304 = vst [vmem:[%s1598_s13 + $0x98] sm:$0xff] %v1224_v32   ;;  %1418 = vtanh.f32 %v530_v33  ;;  %v1417_v46 = vpop.eup %1416 }
  0xf4   : > { %1312 = vst [vmem:[%s1598_s13 + $0xd8] sm:$0xff] %v1264_v35   ;;  %1420 = vtanh.f32 %v570_v34 }
  0xf5   : > { %1422 = vtanh.f32 %v608_v36 }
  0xf6   : > { %1424 = vtanh.f32 %v648_v37 }
  0xf7   : > { %v609_v38 = vpop.f32.mrf.mxu2  ;;  %v649_v39 = vpop.f32.mrf.mxu3 }
  0xf8   : > { %v610_v41 = vadd.f32 %v1583_v42, %v609_v38  ;;  %v650_v43 = vadd.f32 %v1583_v42, %v649_v39  ;;  %v532_v44 = vpop.f32.mrf.mxu0 }
  0xf9   : > { %v572_v45 = vpop.f32.mrf.mxu1  ;;  %v1419_v47 = vpop.eup %1418  ;;  %v533_v52 = vadd.f32 %v1583_v42, %v532_v44 }
  0xfa   : > { %1426 = vtanh.f32 %v610_v41  ;;  %v1421_v48 = vpop.eup %1420  ;;  %v1149_v49 = vpack.c.bf16 %v1419_v47, %v1415_v40  ;;  %v573_v54 = vadd.f32 %v1583_v42, %v572_v45 }
  0xfb   : > { %1428 = vtanh.f32 %v650_v43  ;;  %v1189_v50 = vpack.c.bf16 %v1421_v48, %v1417_v46  ;;  %v1423_v51 = vpop.eup %1422 }
  0xfc   : > { %1289 = vst [vmem:[%s1598_s13 + $0x20] sm:$0xff] %v1149_v49   ;;  %v1425_v53 = vpop.eup %1424  ;;  %1430 = vtanh.f32 %v533_v52 }
  0xfd   : > { %1297 = vst [vmem:[%s1598_s13 + $0x60] sm:$0xff] %v1189_v50   ;;  %1432 = vtanh.f32 %v573_v54 }
  0xff   : > { %v612_v55 = vpop.f32.mrf.mxu2  ;;  %v652_v56 = vpop.f32.mrf.mxu3 }
 0x100   : > { %v1427_v57 = vpop.eup %1426  ;;  %v534_v58 = vpop.f32.mrf.mxu0  ;;  %v613_v1 = vadd.f32 %v1583_v42, %v612_v55  ;;  %v653_v2 = vadd.f32 %v1583_v42, %v652_v56 }
 0x101   : > { %v574_v59 = vpop.f32.mrf.mxu1  ;;  %v1429_v60 = vpop.eup %1428  ;;  %v1229_v61 = vpack.c.bf16 %v1427_v57, %v1423_v51  ;;  %v535_v62 = vadd.f32 %v1583_v42, %v534_v58 }
 0x102   : > { %v575_v63 = vadd.f32 %v1583_v42, %v574_v59  ;;  %v1269_v0 = vpack.c.bf16 %v1429_v60, %v1425_v53  ;;  %v1431_v5 = vpop.eup %1430 }
 0x103   : > { %1305 = vst [vmem:[%s1598_s13 + $0xa0] sm:$0xff] %v1229_v61   ;;  %1434 = vtanh.f32 %v535_v62  ;;  %v1433_v10 = vpop.eup %1432 }
 0x104   : > { %1313 = vst [vmem:[%s1598_s13 + $0xe0] sm:$0xff] %v1269_v0   ;;  %1436 = vtanh.f32 %v575_v63 }
 0x105   : > { %1438 = vtanh.f32 %v613_v1 }
 0x106   : > { %1440 = vtanh.f32 %v653_v2 }
 0x107   : > { %v614_v3 = vpop.f32.mrf.mxu2  ;;  %v654_v4 = vpop.f32.mrf.mxu3 }
 0x108   : > { %v615_v6 = vadd.f32 %v1583_v42, %v614_v3  ;;  %v655_v7 = vadd.f32 %v1583_v42, %v654_v4  ;;  %v537_v8 = vpop.f32.mrf.mxu0 }
 0x109   : > { %v577_v9 = vpop.f32.mrf.mxu1  ;;  %v1435_v11 = vpop.eup %1434  ;;  %v538_v16 = vadd.f32 %v1583_v42, %v537_v8 }
 0x10a   : > { %1442 = vtanh.f32 %v615_v6  ;;  %v1437_v12 = vpop.eup %1436  ;;  %v1154_v13 = vpack.c.bf16 %v1435_v11, %v1431_v5  ;;  %v578_v18 = vadd.f32 %v1583_v42, %v577_v9 }
 0x10b   : > { %1444 = vtanh.f32 %v655_v7  ;;  %v1194_v14 = vpack.c.bf16 %v1437_v12, %v1433_v10  ;;  %v1439_v15 = vpop.eup %1438 }
 0x10c   : > { %1290 = vst [vmem:[%s1598_s13 + $0x28] sm:$0xff] %v1154_v13   ;;  %v1441_v17 = vpop.eup %1440  ;;  %1446 = vtanh.f32 %v538_v16 }
 0x10d   : > { %1298 = vst [vmem:[%s1598_s13 + $0x68] sm:$0xff] %v1194_v14   ;;  %1448 = vtanh.f32 %v578_v18 }
 0x10f   : > { %v617_v19 = vpop.f32.mrf.mxu2  ;;  %v657_v20 = vpop.f32.mrf.mxu3 }
 0x110   : > { %v1443_v21 = vpop.eup %1442  ;;  %v539_v22 = vpop.f32.mrf.mxu0  ;;  %v618_v29 = vadd.f32 %v1583_v42, %v617_v19  ;;  %v658_v30 = vadd.f32 %v1583_v42, %v657_v20 }
 0x111   : > { %v579_v23 = vpop.f32.mrf.mxu1  ;;  %v1445_v24 = vpop.eup %1444  ;;  %v1234_v25 = vpack.c.bf16 %v1443_v21, %v1439_v15  ;;  %v540_v26 = vadd.f32 %v1583_v42, %v539_v22 }
 0x112   : > { %v580_v27 = vadd.f32 %v1583_v42, %v579_v23  ;;  %v1274_v28 = vpack.c.bf16 %v1445_v24, %v1441_v17  ;;  %v1447_v33 = vpop.eup %1446 }
 0x113   : > { %1306 = vst [vmem:[%s1598_s13 + $0xa8] sm:$0xff] %v1234_v25   ;;  %1450 = vtanh.f32 %v540_v26  ;;  %v1449_v38 = vpop.eup %1448 }
 0x114   : > { %1314 = vst [vmem:[%s1598_s13 + $0xe8] sm:$0xff] %v1274_v28   ;;  %1452 = vtanh.f32 %v580_v27 }
 0x115   : > { %1454 = vtanh.f32 %v618_v29 }
 0x116   : > { %1456 = vtanh.f32 %v658_v30 }
 0x117   : > { %v619_v31 = vpop.f32.mrf.mxu2  ;;  %v659_v32 = vpop.f32.mrf.mxu3 }
 0x118   : > { %v620_v34 = vadd.f32 %v1583_v42, %v619_v31  ;;  %v660_v35 = vadd.f32 %v1583_v42, %v659_v32  ;;  %v542_v36 = vpop.f32.mrf.mxu0 }
 0x119   : > { %v582_v37 = vpop.f32.mrf.mxu1  ;;  %v1451_v39 = vpop.eup %1450  ;;  %v543_v45 = vadd.f32 %v1583_v42, %v542_v36 }
 0x11a   : > { %1458 = vtanh.f32 %v620_v34  ;;  %v1453_v40 = vpop.eup %1452  ;;  %v1159_v41 = vpack.c.bf16 %v1451_v39, %v1447_v33  ;;  %v583_v47 = vadd.f32 %v1583_v42, %v582_v37 }
 0x11b   : > { %1460 = vtanh.f32 %v660_v35  ;;  %v1199_v43 = vpack.c.bf16 %v1453_v40, %v1449_v38  ;;  %v1455_v44 = vpop.eup %1454 }
 0x11c   : > { %1291 = vst [vmem:[%s1598_s13 + $0x30] sm:$0xff] %v1159_v41   ;;  %v1457_v46 = vpop.eup %1456  ;;  %1462 = vtanh.f32 %v543_v45 }
 0x11d   : > { %1299 = vst [vmem:[%s1598_s13 + $0x70] sm:$0xff] %v1199_v43   ;;  %1464 = vtanh.f32 %v583_v47 }
 0x11f   : > { %v622_v48 = vpop.f32.mrf.mxu2  ;;  %v662_v49 = vpop.f32.mrf.mxu3 }
 0x120   : > { %v1459_v50 = vpop.eup %1458  ;;  %v544_v51 = vpop.f32.mrf.mxu0  ;;  %v623_v58 = vadd.f32 %v1583_v42, %v622_v48  ;;  %v663_v59 = vadd.f32 %v1583_v42, %v662_v49 }
 0x121   : > { %v584_v52 = vpop.f32.mrf.mxu1  ;;  %v1461_v53 = vpop.eup %1460  ;;  %v1239_v54 = vpack.c.bf16 %v1459_v50, %v1455_v44  ;;  %v545_v55 = vadd.f32 %v1583_v42, %v544_v51 }
 0x122   : > { %v585_v56 = vadd.f32 %v1583_v42, %v584_v52  ;;  %v1279_v57 = vpack.c.bf16 %v1461_v53, %v1457_v46  ;;  %v1463_v62 = vpop.eup %1462 }
 0x123   : > { %1307 = vst [vmem:[%s1598_s13 + $0xb0] sm:$0xff] %v1239_v54   ;;  %1466 = vtanh.f32 %v545_v55  ;;  %v1465_v1 = vpop.eup %1464 }
 0x124   : > { %1315 = vst [vmem:[%s1598_s13 + $0xf0] sm:$0xff] %v1279_v57   ;;  %1468 = vtanh.f32 %v585_v56 }
 0x125   : > { %1470 = vtanh.f32 %v623_v58 }
 0x126   : > { %1472 = vtanh.f32 %v663_v59 }
 0x127   : > { %v624_v60 = vpop.f32.mrf.mxu2  ;;  %v664_v61 = vpop.f32.mrf.mxu3 }
 0x128   : > { %v625_v63 = vadd.f32 %v1583_v42, %v624_v60  ;;  %v665_v0 = vadd.f32 %v1583_v42, %v664_v61 }
 0x129   : > { %v1467_v2 = vpop.eup %1466 }
 0x12a   : > { %1474 = vtanh.f32 %v625_v63  ;;  %v1469_v3 = vpop.eup %1468  ;;  %v1164_v4 = vpack.c.bf16 %v1467_v2, %v1463_v62 }
 0x12b   : > { %1476 = vtanh.f32 %v665_v0  ;;  %v1204_v5 = vpack.c.bf16 %v1469_v3, %v1465_v1  ;;  %v1471_v6 = vpop.eup %1470 }
 0x12c   : > { %1292 = vst [vmem:[%s1598_s13 + $0x38] sm:$0xff] %v1164_v4   ;;  %v1473_v7 = vpop.eup %1472 }
 0x12d   : > { %1300 = vst [vmem:[%s1598_s13 + $0x78] sm:$0xff] %v1204_v5  }
 0x130   : > { %v1475_v8 = vpop.eup %1474 }
 0x131   : > { %v1477_v9 = vpop.eup %1476  ;;  %v1244_v10 = vpack.c.bf16 %v1475_v8, %v1471_v6 }
 0x132   : > { %v1284_v11 = vpack.c.bf16 %v1477_v9, %v1473_v7 }
 0x133   : > { %1308 = vst [vmem:[%s1598_s13 + $0xb8] sm:$0xff] %v1244_v10  }
 0x134   : > { %1316 = vst [vmem:[%s1598_s13 + $0xf8] sm:$0xff] %v1284_v11  }
 0x135 PF: > { %s13_s12 = sadd.s32 1, %s1484_s12  }
 0x136   : > { %p10_p4 = scmp.ge.s32.totalorder %s13_s12, 6  }
 0x138   :  { %12 = sbr.rel (!%p10_p4) target bundleno = 1 (0x1), region = 62 }

</bundles_post_ra>
